<compile_context>
chip_gen: v6e
topology: v6e:2x2x1
jax: 0.10.0
libtpu: 0.0.40
codegen_flags: <defaults>
</compile_context>

<pallas_src>
import functools

import jax
import jax.numpy as jnp
from jax.experimental import pallas as pl
from jax.experimental.pallas import tpu as pltpu


ACT_DTYPE = jnp.bfloat16        # bf16 storage / MXU, f32 accumulation
C0, CMID, CR = 16, 32, 8        # synthetic channel widths (X3D-M uses 24/54/...)


def _pick_tm(rows, cap=512):
    """Row-tile for the pointwise kernels: big tiles to amortize the ~0.35us grid-step
    overhead, but >= 2 grid steps so both v7x TensorCores get work."""
    assert rows % 8 == 0
    tm = min(cap, max(8, (rows // 2) // 8 * 8))
    while rows % tm:
        tm -= 8
    return tm


# ----------------------------------------------------------------------------
# Kernel 1: fused stem
#   1x3x3 stride-2 spatial conv (banded matmuls over even/odd padded-H phases)
#   + 5x1x1 depthwise temporal conv + folded BN + ReLU.
#   grid=(N,): one batch per step, weights resident, lane-dense (T*Ho, Wo*C0) tiles.
# ----------------------------------------------------------------------------
def _stem_kernel(xe_ref, xo_ref, ms_ref, wt_ref, bn_ref, o_ref, *, T, Ho, kt):
    WoC = o_ref.shape[-1]
    xe = xe_ref[0].astype(jnp.float32)            # (T, Hh, Wp*Cin) even padded rows
    xo = xo_ref[0].astype(jnp.float32)            # (T, Hh, Wp*Cin) odd  padded rows

    def win(x, off):                              # H window -> (T*Ho, Wp*Cin)
        return x[:, off:off + Ho, :].reshape(T * Ho, x.shape[-1])

    # spatial conv: one banded matmul per kernel row dh (stride-2 W taps folded in)
    acc = jnp.dot(win(xe, 0), ms_ref[0], preferred_element_type=jnp.float32)
    acc += jnp.dot(win(xo, 0), ms_ref[1], preferred_element_type=jnp.float32)
    acc += jnp.dot(win(xe, 1), ms_ref[2], preferred_element_type=jnp.float32)

    # temporal depthwise 5x1x1 conv ("same" padding) on the resident result
    zpad = jnp.zeros(((kt // 2) * Ho, WoC), jnp.float32)
    yp = jnp.concatenate([zpad, acc, zpad], axis=0)        # ((T + kt - 1) * Ho, WoC)
    out = jnp.zeros((T * Ho, WoC), jnp.float32)
    for k in range(kt):
        out = out + yp[k * Ho:(k + T) * Ho, :] * wt_ref[k]
    out = out * bn_ref[0] + bn_ref[1]
    out = jnp.maximum(out, 0.0)
    o_ref[...] = out.reshape(1, T, Ho, WoC).astype(o_ref.dtype)


def stem_conv(xe, xo, ms, wt_t, bn0, *, T, Ho, WoC, kt):
    N, _, Hh, WpCin = xe.shape
    kernel = functools.partial(_stem_kernel, T=T, Ho=Ho, kt=kt)
    return pl.pallas_call(
        kernel,
        out_shape=jax.ShapeDtypeStruct((N, T, Ho, WoC), ACT_DTYPE),
        grid=(N,),
        in_specs=[
            pl.BlockSpec((1, T, Hh, WpCin), lambda n: (n, 0, 0, 0)),
            pl.BlockSpec((1, T, Hh, WpCin), lambda n: (n, 0, 0, 0)),
            pl.BlockSpec(ms.shape, lambda n: (0, 0, 0)),
            pl.BlockSpec(wt_t.shape, lambda n: (0, 0)),
            pl.BlockSpec(bn0.shape, lambda n: (0, 0)),
        ],
        out_specs=pl.BlockSpec((1, T, Ho, WoC), lambda n: (n, 0, 0, 0)),
        compiler_params=pltpu.CompilerParams(dimension_semantics=("parallel",)),
    )(xe, xo, ms, wt_t, bn0)


# ----------------------------------------------------------------------------
# Kernel 2: pointwise (1x1x1) conv as lane-dense block-diagonal matmul,
#           fused folded-BN affine + optional activation / residual add.
# ----------------------------------------------------------------------------
def _pw_kernel(x_ref, w_ref, bn_ref, o_ref, *, act):
    y = jnp.dot(x_ref[...], w_ref[...], preferred_element_type=jnp.float32)
    y = y * bn_ref[0] + bn_ref[1]
    if act == "relu":
        y = jnp.maximum(y, 0.0)
    o_ref[...] = y.astype(o_ref.dtype)


def _pw_res_kernel(x_ref, w_ref, bn_ref, r_ref, o_ref, *, act):
    y = jnp.dot(x_ref[...], w_ref[...], preferred_element_type=jnp.float32)
    y = y * bn_ref[0] + bn_ref[1] + r_ref[...].astype(jnp.float32)
    if act == "relu":
        y = jnp.maximum(y, 0.0)
    o_ref[...] = y.astype(o_ref.dtype)


def pointwise_conv(x2d, w_bd, bn, *, act="none", residual=None, tm=None):
    R, K = x2d.shape
    Co = w_bd.shape[1]
    if tm is None:
        tm = _pick_tm(R)
    assert R % tm == 0
    in_specs = [
        pl.BlockSpec((tm, K), lambda i: (i, 0)),
        pl.BlockSpec((K, Co), lambda i: (0, 0)),
        pl.BlockSpec((2, Co), lambda i: (0, 0)),     # merged (scale; bias) block
    ]
    args = [x2d, w_bd, bn]
    if residual is not None:
        in_specs.append(pl.BlockSpec((tm, Co), lambda i: (i, 0)))
        args.append(residual)
        kernel = functools.partial(_pw_res_kernel, act=act)
    else:
        kernel = functools.partial(_pw_kernel, act=act)
    return pl.pallas_call(
        kernel,
        out_shape=jax.ShapeDtypeStruct((R, Co), ACT_DTYPE),
        grid=(R // tm,),
        in_specs=in_specs,
        out_specs=pl.BlockSpec((tm, Co), lambda i: (i, 0)),
        compiler_params=pltpu.CompilerParams(dimension_semantics=("parallel",)),
    )(*args)


# ----------------------------------------------------------------------------
# Kernel 3: depthwise 3x3x3 conv (banded matmuls, single padded input stream)
#           + folded BN + full Squeeze-Excite + swish, one batch per grid step.
# ----------------------------------------------------------------------------
def _dw_se_kernel(x_ref, m_ref, bn_ref, pavg_ref, w1_ref, b1_ref, w2_ref,
                  b2_ref, scat_ref, o_ref, *, T, H, kt, kh):
    WC = o_ref.shape[-1]
    x = x_ref[0].astype(jnp.float32)              # (Tp, Hp, Wp*C)
    rows = T * H
    acc = jnp.zeros((rows, WC), jnp.float32)
    # 3x3x3 depthwise conv: W taps + per-channel weights folded into band matrices,
    # so each (dt, dh) tap is one lane-dense MXU matmul on a cheap (T,H)-shifted slab.
    for dt in range(kt):
        for dh in range(kh):
            xin = x[dt:dt + T, dh:dh + H, :].reshape(rows, x.shape[-1])
            acc += jnp.dot(xin, m_ref[dt * kh + dh],
                           preferred_element_type=jnp.float32)
    acc = acc * bn_ref[0] + bn_ref[1]             # folded BN (no activation)

    # Squeeze-Excite on the resident volume: mean over rows, then over W lane groups.
    pooled = jnp.mean(acc, axis=0, keepdims=True)                        # (1, W*C)
    pooled = jnp.dot(pooled, pavg_ref[...], preferred_element_type=jnp.float32)  # (1, C)
    h1 = jnp.dot(pooled, w1_ref[...], preferred_element_type=jnp.float32) + b1_ref[...]
    h1 = jnp.maximum(h1, 0.0)
    s = jnp.dot(h1, w2_ref[...], preferred_element_type=jnp.float32) + b2_ref[...]
    s = jax.nn.sigmoid(s)                                                # (1, C)
    s_wc = jnp.dot(s, scat_ref[...], preferred_element_type=jnp.float32)  # (1, W*C)

    y = acc * s_wc
    y = y * jax.nn.sigmoid(y)                      # swish
    o_ref[...] = y.reshape(1, T, H, WC).astype(o_ref.dtype)


def dw_se_block(hpad, mband, bn2, pavg, se_w1, se_b1, se_w2, se_b2, scat,
                *, T, H, WC, kt, kh):
    N, Tp, Hp, WpC = hpad.shape
    kernel = functools.partial(_dw_se_kernel, T=T, H=H, kt=kt, kh=kh)
    return pl.pallas_call(
        kernel,
        out_shape=jax.ShapeDtypeStruct((N, T, H, WC), ACT_DTYPE),
        grid=(N,),
        in_specs=[
            pl.BlockSpec((1, Tp, Hp, WpC), lambda n: (n, 0, 0, 0)),
            pl.BlockSpec(mband.shape, lambda n: (0, 0, 0)),
            pl.BlockSpec(bn2.shape, lambda n: (0, 0)),
            pl.BlockSpec(pavg.shape, lambda n: (0, 0)),
            pl.BlockSpec(se_w1.shape, lambda n: (0, 0)),
            pl.BlockSpec(se_b1.shape, lambda n: (0, 0)),
            pl.BlockSpec(se_w2.shape, lambda n: (0, 0)),
            pl.BlockSpec(se_b2.shape, lambda n: (0, 0)),
            pl.BlockSpec(scat.shape, lambda n: (0, 0)),
        ],
        out_specs=pl.BlockSpec((1, T, H, WC), lambda n: (n, 0, 0, 0)),
        compiler_params=pltpu.CompilerParams(dimension_semantics=("parallel",)),
    )(hpad, mband, bn2, pavg, se_w1, se_b1, se_w2, se_b2, scat)


# ----------------------------------------------------------------------------
# Parameters (synthetic, deterministic) and kernel-ready derived tensors
# ----------------------------------------------------------------------------
def init_params():
    keys = jax.random.split(jax.random.PRNGKey(0), 12)

    def nrm(k, shape, fan_in):
        return jax.random.normal(k, shape, jnp.float32) / jnp.sqrt(float(fan_in))

    p = {}
    p["ws"] = nrm(keys[0], (3, 3, 3, C0), 27)          # stem spatial (dh, dw, Cin, C0)
    p["wt"] = nrm(keys[1], (5, C0), 5)                 # stem temporal depthwise
    p["bn0_s"] = 1.0 + 0.1 * jax.random.normal(keys[2], (C0,), jnp.float32)
    p["bn0_b"] = 0.05 * jax.random.normal(keys[3], (C0,), jnp.float32)
    p["w1"] = nrm(keys[4], (C0, CMID), C0)             # block conv1 1x1x1
    p["bn1_s"] = jnp.ones((CMID,), jnp.float32)
    p["bn1_b"] = jnp.zeros((CMID,), jnp.float32)
    p["w2"] = nrm(keys[5], (3, 3, 3, CMID), 27)        # block depthwise 3x3x3
    p["bn2_s"] = 1.0 + 0.1 * jax.random.normal(keys[6], (CMID,), jnp.float32)
    p["bn2_b"] = jnp.zeros((CMID,), jnp.float32)
    p["se_w1"] = nrm(keys[7], (CMID, CR), CMID)
    p["se_b1"] = jnp.zeros((CR,), jnp.float32)
    p["se_w2"] = nrm(keys[8], (CR, CMID), CR)
    p["se_b2"] = jnp.zeros((CMID,), jnp.float32)
    p["w3"] = nrm(keys[9], (CMID, C0), CMID)           # block conv3 1x1x1
    p["bn3_s"] = jnp.ones((C0,), jnp.float32)
    p["bn3_b"] = jnp.zeros((C0,), jnp.float32)
    return p


def prepare_params(p, *, H_in, W_in, Cin):
    """Fold raw weights into lane-dense (W*C layout) banded / block-diagonal forms."""
    Wo = W_in // 2
    Wp_s = W_in + 2                 # padded stem width
    Wpad = Wo + 2                   # padded block width

    def tile_w(v, w):               # per-channel (C,) -> lane-dense (w*C,)
        return jnp.tile(v, (w,))

    dp = {}
    # stem spatial: one banded matrix per kernel row dh, folding stride-2 W taps
    ms_rows = []
    for dh in range(3):
        m = jnp.zeros((Wp_s * Cin, Wo * C0), jnp.float32)
        for dw in range(3):
            e = jnp.zeros((Wp_s, Wo), jnp.float32)
            e = e.at[2 * jnp.arange(Wo) + dw, jnp.arange(Wo)].set(1.0)
            m = m + jnp.kron(e, p["ws"][dh, dw])
        ms_rows.append(m)
    dp["ms"] = jnp.stack(ms_rows).astype(ACT_DTYPE)                    # (3, Wp_s*Cin, Wo*C0)
    dp["wt_t"] = jnp.tile(p["wt"], (1, Wo)).astype(jnp.float32)        # (5, Wo*C0)
    dp["bn0"] = jnp.stack([tile_w(p["bn0_s"], Wo), tile_w(p["bn0_b"], Wo)])

    # pointwise convs: block-diagonal weights in the W*C lane layout
    dp["w1_bd"] = jnp.kron(jnp.eye(Wo), p["w1"]).astype(ACT_DTYPE)     # (Wo*C0, Wo*CMID)
    dp["bn1"] = jnp.stack([tile_w(p["bn1_s"], Wo), tile_w(p["bn1_b"], Wo)])
    dp["w3_bd"] = jnp.kron(jnp.eye(Wo), p["w3"]).astype(ACT_DTYPE)     # (Wo*CMID, Wo*C0)
    dp["bn3"] = jnp.stack([tile_w(p["bn3_s"], Wo), tile_w(p["bn3_b"], Wo)])

    # depthwise 3x3x3: banded matrices folding W taps + per-channel weights
    mb = []
    for dt in range(3):
        for dh in range(3):
            m = jnp.zeros((Wpad * CMID, Wo * CMID), jnp.float32)
            for dw in range(3):
                e = jnp.eye(Wpad, Wo, k=-dw)
                m = m + jnp.kron(e, jnp.diag(p["w2"][dt, dh, dw]))
            mb.append(m)
    dp["mband"] = jnp.stack(mb).astype(ACT_DTYPE)                      # (9, Wpad*CMID, Wo*CMID)
    dp["bn2"] = jnp.stack([tile_w(p["bn2_s"], Wo), tile_w(p["bn2_b"], Wo)])

    # SE helpers: W-lane-group average / scatter matrices + FC params
    dp["pavg"] = (jnp.tile(jnp.eye(CMID), (Wo, 1)) / Wo).astype(jnp.float32)   # (Wo*CMID, CMID)
    dp["scat"] = jnp.tile(jnp.eye(CMID), (1, Wo)).astype(jnp.float32)          # (CMID, Wo*CMID)
    dp["se_w1"] = p["se_w1"]
    dp["se_b1"] = p["se_b1"].reshape(1, CR)
    dp["se_w2"] = p["se_w2"]
    dp["se_b2"] = p["se_b2"].reshape(1, CMID)
    return dp


# ----------------------------------------------------------------------------
# X3D forward (stem + one BlockX3D)
# ----------------------------------------------------------------------------
def x3d_forward(x_ncthw, dp):
    # PyTorch NCTHW -> channels-last, then lane-dense (rows, W*C) working layout
    x = jnp.transpose(x_ncthw, (0, 2, 3, 4, 1))                        # (N, T, H, W, Cin)
    N, T, H, W, Cin = x.shape
    Ho, Wo = H // 2, W // 2
    R = N * T * Ho

    # ---- stem: pad spatially, split even/odd padded rows (stride-2 phases),
    #      collapse (W, Cin) into lanes; one fused kernel per batch does the
    #      im2col-matmul + temporal depthwise + BN + ReLU.
    xp = jnp.pad(x, ((0, 0), (0, 0), (1, 1), (1, 1), (0, 0))).astype(ACT_DTYPE)
    Hp, Wp = H + 2, W + 2
    xe = xp[:, :, 0::2].reshape(N, T, (Hp + 1) // 2, Wp * Cin)
    xo = xp[:, :, 1::2].reshape(N, T, Hp // 2, Wp * Cin)
    y = stem_conv(xe, xo, dp["ms"], dp["wt_t"], dp["bn0"],
                  T=T, Ho=Ho, WoC=Wo * C0, kt=5)                       # (N, T, Ho, Wo*C0)

    # ---- BlockX3D (bottleneck, identity shortcut)
    identity2d = y.reshape(R, Wo * C0)
    h = pointwise_conv(identity2d, dp["w1_bd"], dp["bn1"], act="relu")  # (R, Wo*CMID)

    h5 = h.reshape(N, T, Ho, Wo, CMID)                                  # "same" pad for 3x3x3
    h5 = jnp.pad(h5, ((0, 0), (1, 1), (1, 1), (1, 1), (0, 0)))
    hpad = h5.reshape(N, T + 2, Ho + 2, (Wo + 2) * CMID)
    h = dw_se_block(hpad, dp["mband"], dp["bn2"], dp["pavg"],
                    dp["se_w1"], dp["se_b1"], dp["se_w2"], dp["se_b2"],
                    dp["scat"], T=T, H=Ho, WC=Wo * CMID, kt=3, kh=3)    # (N, T, Ho, Wo*CMID)

    out2d = pointwise_conv(h.reshape(R, Wo * CMID), dp["w3_bd"], dp["bn3"],
                           act="relu", residual=identity2d)             # (R, Wo*C0)

    out = out2d.reshape(N, T, Ho, Wo, C0)
    # back to PyTorch NCTHW feature-map convention
    return jnp.transpose(out, (0, 4, 1, 2, 3)).astype(jnp.float32)


if __name__ == "__main__":
    params = init_params()
    derived = prepare_params(params, H_in=16, W_in=16, Cin=3)
    key = jax.random.PRNGKey(0)
    # (N, C, T, H, W) video clip, small shapes
    x = jax.random.normal(key, (2, 3, 8, 16, 16), jnp.float32)
    fwd = jax.jit(x3d_forward)
    feat = fwd(x, derived)
    jax.block_until_ready(feat)
    assert feat.shape == (2, C0, 8, 8, 8), feat.shape
    print("KERNEL_OK")
</pallas_src>

<mosaic_0001>
module attributes {stable_mosaic.version = 11 : i64} {
  func.func @_pw_kernel(%arg0: i32, %arg1: memref<64x128xbf16, #tpu.memory_space<vmem>>, %arg2: memref<128x256xbf16, #tpu.memory_space<vmem>>, %arg3: memref<2x256xf32, #tpu.memory_space<vmem>>, %arg4: memref<64x256xbf16, #tpu.memory_space<vmem>>) attributes {dimension_semantics = [#tpu.dimension_semantics<parallel>], iteration_bounds = array<i64: 2>, scalar_prefetch = 0 : i64, scratch_operands = 0 : i64, tpu.core_type = #tpu.core_type<tc>, window_params = [{transform_indices = @transform_0, window_bounds = array<i64: 64, 128>}, {pipeline_mode = #tpu.pipeline_mode<synchronous>, transform_indices = @transform_1, window_bounds = array<i64: 128, 256>}, {pipeline_mode = #tpu.pipeline_mode<synchronous>, transform_indices = @transform_2, window_bounds = array<i64: 2, 256>}, {transform_indices = @transform_3, window_bounds = array<i64: 64, 256>}]} {
    %c0 = arith.constant 0 : index
    %c0_0 = arith.constant 0 : index
    %0 = vector.load %arg1[%c0, %c0_0] : memref<64x128xbf16, #tpu.memory_space<vmem>>, vector<64x128xbf16>
    %c0_1 = arith.constant 0 : index
    %c0_2 = arith.constant 0 : index
    %1 = vector.load %arg2[%c0_1, %c0_2] : memref<128x256xbf16, #tpu.memory_space<vmem>>, vector<128x256xbf16>
    %cst = arith.constant dense<0.000000e+00> : vector<64x256xf32>
    %2 = tpu.matmul %0, %1, %cst {dimension_numbers = #tpu.dot_dimension_numbers<[1], [0], [0], [1], [0, 0, 1, 1], [], []>} : vector<64x128xbf16>, vector<128x256xbf16>, vector<64x256xf32> -> vector<64x256xf32>
    %c0_3 = arith.constant 0 : index
    %c0_4 = arith.constant 0 : index
    %3 = vector.load %arg3[%c0_3, %c0_4] : memref<2x256xf32, #tpu.memory_space<vmem>>, vector<1x256xf32>
    %4 = vector.shape_cast %3 : vector<1x256xf32> to vector<256xf32>
    %5 = vector.shape_cast %4 : vector<256xf32> to vector<1x256xf32>
    %6 = vector.broadcast %5 : vector<1x256xf32> to vector<64x256xf32>
    %7 = arith.mulf %2, %6 : vector<64x256xf32>
    %c1 = arith.constant 1 : index
    %c0_5 = arith.constant 0 : index
    %8 = vector.load %arg3[%c1, %c0_5] : memref<2x256xf32, #tpu.memory_space<vmem>>, vector<1x256xf32>
    %9 = vector.shape_cast %8 : vector<1x256xf32> to vector<256xf32>
    %10 = vector.shape_cast %9 : vector<256xf32> to vector<1x256xf32>
    %11 = vector.broadcast %10 : vector<1x256xf32> to vector<64x256xf32>
    %12 = arith.addf %7, %11 : vector<64x256xf32>
    %cst_6 = arith.constant 0.000000e+00 : f32
    %13 = vector.broadcast %cst_6 : f32 to vector<64x256xf32>
    %14 = arith.maximumf %12, %13 : vector<64x256xf32>
    %15 = arith.truncf %14 : vector<64x256xf32> to vector<64x256xbf16>
    %c0_7 = arith.constant 0 : index
    %c0_8 = arith.constant 0 : index
    %16 = vector.load %arg4[%c0_7, %c0_8] : memref<64x256xbf16, #tpu.memory_space<vmem>>, vector<64x256xbf16>
    tpu.vector_store %arg4[%c0_7, %c0_8], %15 {strides = array<i32>} : memref<64x256xbf16, #tpu.memory_space<vmem>>, vector<64x256xbf16>,
    return
  }
  func.func @transform_0(%arg0: i32) -> (i32, i32) {
    %c0_i32 = arith.constant 0 : i32
    %c0_i32_0 = arith.constant 0 : i32
    return %arg0, %c0_i32 : i32, i32
  }
  func.func @transform_1(%arg0: i32) -> (i32, i32) {
    %c0_i32 = arith.constant 0 : i32
    %c0_i32_0 = arith.constant 0 : i32
    %c0_i32_1 = arith.constant 0 : i32
    return %c0_i32, %c0_i32_0 : i32, i32
  }
  func.func @transform_2(%arg0: i32) -> (i32, i32) {
    %c0_i32 = arith.constant 0 : i32
    %c0_i32_0 = arith.constant 0 : i32
    %c0_i32_1 = arith.constant 0 : i32
    return %c0_i32, %c0_i32_0 : i32, i32
  }
  func.func @transform_3(%arg0: i32) -> (i32, i32) {
    %c0_i32 = arith.constant 0 : i32
    %c0_i32_0 = arith.constant 0 : i32
    return %arg0, %c0_i32 : i32, i32
  }
}

module attributes {stable_mosaic.version = 11 : i64} {
  func.func @_stem_kernel(%arg0: i32, %arg1: memref<1x8x9x54xbf16, #tpu.memory_space<vmem>>, %arg2: memref<1x8x9x54xbf16, #tpu.memory_space<vmem>>, %arg3: memref<3x54x128xbf16, #tpu.memory_space<vmem>>, %arg4: memref<5x128xf32, #tpu.memory_space<vmem>>, %arg5: memref<2x128xf32, #tpu.memory_space<vmem>>, %arg6: memref<1x8x8x128xbf16, #tpu.memory_space<vmem>>) attributes {dimension_semantics = [#tpu.dimension_semantics<parallel>], iteration_bounds = array<i64: 2>, scalar_prefetch = 0 : i64, scratch_operands = 0 : i64, tpu.core_type = #tpu.core_type<tc>, window_params = [{transform_indices = @transform_0, window_bounds = array<i64: 1, 8, 9, 54>}, {transform_indices = @transform_1, window_bounds = array<i64: 1, 8, 9, 54>}, {pipeline_mode = #tpu.pipeline_mode<synchronous>, transform_indices = @transform_2, window_bounds = array<i64: 3, 54, 128>}, {pipeline_mode = #tpu.pipeline_mode<synchronous>, transform_indices = @transform_3, window_bounds = array<i64: 5, 128>}, {pipeline_mode = #tpu.pipeline_mode<synchronous>, transform_indices = @transform_4, window_bounds = array<i64: 2, 128>}, {transform_indices = @transform_5, window_bounds = array<i64: 1, 8, 8, 128>}]} {
    %c0 = arith.constant 0 : index
    %c0_0 = arith.constant 0 : index
    %c0_1 = arith.constant 0 : index
    %c0_2 = arith.constant 0 : index
    %0 = vector.load %arg1[%c0, %c0_0, %c0_1, %c0_2] : memref<1x8x9x54xbf16, #tpu.memory_space<vmem>>, vector<1x8x9x54xbf16>
    %1 = vector.shape_cast %0 : vector<1x8x9x54xbf16> to vector<8x9x54xbf16>
    %2 = arith.extf %1 : vector<8x9x54xbf16> to vector<8x9x54xf32>
    %c0_3 = arith.constant 0 : index
    %c0_4 = arith.constant 0 : index
    %c0_5 = arith.constant 0 : index
    %c0_6 = arith.constant 0 : index
    %3 = vector.load %arg2[%c0_3, %c0_4, %c0_5, %c0_6] : memref<1x8x9x54xbf16, #tpu.memory_space<vmem>>, vector<1x8x9x54xbf16>
    %4 = vector.shape_cast %3 : vector<1x8x9x54xbf16> to vector<8x9x54xbf16>
    %5 = arith.extf %4 : vector<8x9x54xbf16> to vector<8x9x54xf32>
    %6 = vector.extract_strided_slice %2 {offsets = [0, 0, 0], sizes = [8, 8, 54], strides = [1, 1, 1]} : vector<8x9x54xf32> to vector<8x8x54xf32>
    %7 = vector.shape_cast %6 : vector<8x8x54xf32> to vector<64x54xf32>
    %c0_7 = arith.constant 0 : index
    %c0_8 = arith.constant 0 : index
    %c0_9 = arith.constant 0 : index
    %8 = vector.load %arg3[%c0_7, %c0_8, %c0_9] : memref<3x54x128xbf16, #tpu.memory_space<vmem>>, vector<1x54x128xbf16>
    %9 = vector.shape_cast %8 : vector<1x54x128xbf16> to vector<54x128xbf16>
    %cst = arith.constant dense<0.000000e+00> : vector<64x128xf32>
    %10 = tpu.matmul %7, %9, %cst {dimension_numbers = #tpu.dot_dimension_numbers<[1], [0], [0], [1], [0, 0, 1, 1], [], []>} : vector<64x54xf32>, vector<54x128xbf16>, vector<64x128xf32> -> vector<64x128xf32>
    %11 = vector.extract_strided_slice %5 {offsets = [0, 0, 0], sizes = [8, 8, 54], strides = [1, 1, 1]} : vector<8x9x54xf32> to vector<8x8x54xf32>
    %12 = vector.shape_cast %11 : vector<8x8x54xf32> to vector<64x54xf32>
    %c1 = arith.constant 1 : index
    %c0_10 = arith.constant 0 : index
    %c0_11 = arith.constant 0 : index
    %13 = vector.load %arg3[%c1, %c0_10, %c0_11] : memref<3x54x128xbf16, #tpu.memory_space<vmem>>, vector<1x54x128xbf16>
    %14 = vector.shape_cast %13 : vector<1x54x128xbf16> to vector<54x128xbf16>
    %cst_12 = arith.constant dense<0.000000e+00> : vector<64x128xf32>
    %15 = tpu.matmul %12, %14, %cst_12 {dimension_numbers = #tpu.dot_dimension_numbers<[1], [0], [0], [1], [0, 0, 1, 1], [], []>} : vector<64x54xf32>, vector<54x128xbf16>, vector<64x128xf32> -> vector<64x128xf32>
    %16 = arith.addf %10, %15 : vector<64x128xf32>
    %17 = vector.extract_strided_slice %2 {offsets = [0, 1, 0], sizes = [8, 8, 54], strides = [1, 1, 1]} : vector<8x9x54xf32> to vector<8x8x54xf32>
    %18 = vector.shape_cast %17 : vector<8x8x54xf32> to vector<64x54xf32>
    %c2 = arith.constant 2 : index
    %c0_13 = arith.constant 0 : index
    %c0_14 = arith.constant 0 : index
    %19 = vector.load %arg3[%c2, %c0_13, %c0_14] : memref<3x54x128xbf16, #tpu.memory_space<vmem>>, vector<1x54x128xbf16>
    %20 = vector.shape_cast %19 : vector<1x54x128xbf16> to vector<54x128xbf16>
    %cst_15 = arith.constant dense<0.000000e+00> : vector<64x128xf32>
    %21 = tpu.matmul %18, %20, %cst_15 {dimension_numbers = #tpu.dot_dimension_numbers<[1], [0], [0], [1], [0, 0, 1, 1], [], []>} : vector<64x54xf32>, vector<54x128xbf16>, vector<64x128xf32> -> vector<64x128xf32>
    %22 = arith.addf %16, %21 : vector<64x128xf32>
    %cst_16 = arith.constant 0.000000e+00 : f32
    %23 = vector.broadcast %cst_16 : f32 to vector<16x128xf32>
    %24 = tpu.concatenate %23, %22, %23 in 0 : vector<16x128xf32>, vector<64x128xf32>, vector<16x128xf32> -> vector<96x128xf32>
    %cst_17 = arith.constant 0.000000e+00 : f32
    %25 = vector.broadcast %cst_17 : f32 to vector<64x128xf32>
    %26 = vector.extract_strided_slice %24 {offsets = [0, 0], sizes = [64, 128], strides = [1, 1]} : vector<96x128xf32> to vector<64x128xf32>
    %c0_18 = arith.constant 0 : index
    %c0_19 = arith.constant 0 : index
    %27 = vector.load %arg4[%c0_18, %c0_19] : memref<5x128xf32, #tpu.memory_space<vmem>>, vector<1x128xf32>
    %28 = vector.shape_cast %27 : vector<1x128xf32> to vector<128xf32>
    %29 = vector.shape_cast %28 : vector<128xf32> to vector<1x128xf32>
    %30 = vector.broadcast %29 : vector<1x128xf32> to vector<64x128xf32>
    %31 = arith.mulf %26, %30 : vector<64x128xf32>
    %32 = arith.addf %25, %31 : vector<64x128xf32>
    %33 = vector.extract_strided_slice %24 {offsets = [8, 0], sizes = [64, 128], strides = [1, 1]} : vector<96x128xf32> to vector<64x128xf32>
    %c1_20 = arith.constant 1 : index
    %c0_21 = arith.constant 0 : index
    %34 = vector.load %arg4[%c1_20, %c0_21] : memref<5x128xf32, #tpu.memory_space<vmem>>, vector<1x128xf32>
    %35 = vector.shape_cast %34 : vector<1x128xf32> to vector<128xf32>
    %36 = vector.shape_cast %35 : vector<128xf32> to vector<1x128xf32>
    %37 = vector.broadcast %36 : vector<1x128xf32> to vector<64x128xf32>
    %38 = arith.mulf %33, %37 : vector<64x128xf32>
    %39 = arith.addf %32, %38 : vector<64x128xf32>
    %40 = vector.extract_strided_slice %24 {offsets = [16, 0], sizes = [64, 128], strides = [1, 1]} : vector<96x128xf32> to vector<64x128xf32>
    %c2_22 = arith.constant 2 : index
    %c0_23 = arith.constant 0 : index
    %41 = vector.load %arg4[%c2_22, %c0_23] : memref<5x128xf32, #tpu.memory_space<vmem>>, vector<1x128xf32>
    %42 = vector.shape_cast %41 : vector<1x128xf32> to vector<128xf32>
    %43 = vector.shape_cast %42 : vector<128xf32> to vector<1x128xf32>
    %44 = vector.broadcast %43 : vector<1x128xf32> to vector<64x128xf32>
    %45 = arith.mulf %40, %44 : vector<64x128xf32>
    %46 = arith.addf %39, %45 : vector<64x128xf32>
    %47 = vector.extract_strided_slice %24 {offsets = [24, 0], sizes = [64, 128], strides = [1, 1]} : vector<96x128xf32> to vector<64x128xf32>
    %c3 = arith.constant 3 : index
    %c0_24 = arith.constant 0 : index
    %48 = vector.load %arg4[%c3, %c0_24] : memref<5x128xf32, #tpu.memory_space<vmem>>, vector<1x128xf32>
    %49 = vector.shape_cast %48 : vector<1x128xf32> to vector<128xf32>
    %50 = vector.shape_cast %49 : vector<128xf32> to vector<1x128xf32>
    %51 = vector.broadcast %50 : vector<1x128xf32> to vector<64x128xf32>
    %52 = arith.mulf %47, %51 : vector<64x128xf32>
    %53 = arith.addf %46, %52 : vector<64x128xf32>
    %54 = vector.extract_strided_slice %24 {offsets = [32, 0], sizes = [64, 128], strides = [1, 1]} : vector<96x128xf32> to vector<64x128xf32>
    %c4 = arith.constant 4 : index
    %c0_25 = arith.constant 0 : index
    %55 = vector.load %arg4[%c4, %c0_25] : memref<5x128xf32, #tpu.memory_space<vmem>>, vector<1x128xf32>
    %56 = vector.shape_cast %55 : vector<1x128xf32> to vector<128xf32>
    %57 = vector.shape_cast %56 : vector<128xf32> to vector<1x128xf32>
    %58 = vector.broadcast %57 : vector<1x128xf32> to vector<64x128xf32>
    %59 = arith.mulf %54, %58 : vector<64x128xf32>
    %60 = arith.addf %53, %59 : vector<64x128xf32>
    %c0_26 = arith.constant 0 : index
    %c0_27 = arith.constant 0 : index
    %61 = vector.load %arg5[%c0_26, %c0_27] : memref<2x128xf32, #tpu.memory_space<vmem>>, vector<1x128xf32>
    %62 = vector.shape_cast %61 : vector<1x128xf32> to vector<128xf32>
    %63 = vector.shape_cast %62 : vector<128xf32> to vector<1x128xf32>
    %64 = vector.broadcast %63 : vector<1x128xf32> to vector<64x128xf32>
    %65 = arith.mulf %60, %64 : vector<64x128xf32>
    %c1_28 = arith.constant 1 : index
    %c0_29 = arith.constant 0 : index
    %66 = vector.load %arg5[%c1_28, %c0_29] : memref<2x128xf32, #tpu.memory_space<vmem>>, vector<1x128xf32>
    %67 = vector.shape_cast %66 : vector<1x128xf32> to vector<128xf32>
    %68 = vector.shape_cast %67 : vector<128xf32> to vector<1x128xf32>
    %69 = vector.broadcast %68 : vector<1x128xf32> to vector<64x128xf32>
    %70 = arith.addf %65, %69 : vector<64x128xf32>
    %cst_30 = arith.constant 0.000000e+00 : f32
    %71 = vector.broadcast %cst_30 : f32 to vector<64x128xf32>
    %72 = arith.maximumf %70, %71 : vector<64x128xf32>
    %73 = vector.shape_cast %72 : vector<64x128xf32> to vector<1x8x8x128xf32>
    %74 = arith.truncf %73 : vector<1x8x8x128xf32> to vector<1x8x8x128xbf16>
    %c0_31 = arith.constant 0 : index
    %c0_32 = arith.constant 0 : index
    %c0_33 = arith.constant 0 : index
    %c0_34 = arith.constant 0 : index
    %75 = vector.load %arg6[%c0_31, %c0_32, %c0_33, %c0_34] : memref<1x8x8x128xbf16, #tpu.memory_space<vmem>>, vector<1x8x8x128xbf16>
    tpu.vector_store %arg6[%c0_31, %c0_32, %c0_33, %c0_34], %74 {strides = array<i32>} : memref<1x8x8x128xbf16, #tpu.memory_space<vmem>>, vector<1x8x8x128xbf16>,
    return
  }
  func.func @transform_0(%arg0: i32) -> (i32, i32, i32, i32) {
    %c0_i32 = arith.constant 0 : i32
    %c0_i32_0 = arith.constant 0 : i32
    %c0_i32_1 = arith.constant 0 : i32
    %c0_i32_2 = arith.constant 0 : i32
    return %arg0, %c0_i32, %c0_i32_0, %c0_i32_1 : i32, i32, i32, i32
  }
  func.func @transform_1(%arg0: i32) -> (i32, i32, i32, i32) {
    %c0_i32 = arith.constant 0 : i32
    %c0_i32_0 = arith.constant 0 : i32
    %c0_i32_1 = arith.constant 0 : i32
    %c0_i32_2 = arith.constant 0 : i32
    return %arg0, %c0_i32, %c0_i32_0, %c0_i32_1 : i32, i32, i32, i32
  }
  func.func @transform_2(%arg0: i32) -> (i32, i32, i32) {
    %c0_i32 = arith.constant 0 : i32
    %c0_i32_0 = arith.constant 0 : i32
    %c0_i32_1 = arith.constant 0 : i32
    %c0_i32_2 = arith.constant 0 : i32
    return %c0_i32, %c0_i32_0, %c0_i32_1 : i32, i32, i32
  }
  func.func @transform_3(%arg0: i32) -> (i32, i32) {
    %c0_i32 = arith.constant 0 : i32
    %c0_i32_0 = arith.constant 0 : i32
    %c0_i32_1 = arith.constant 0 : i32
    return %c0_i32, %c0_i32_0 : i32, i32
  }
  func.func @transform_4(%arg0: i32) -> (i32, i32) {
    %c0_i32 = arith.constant 0 : i32
    %c0_i32_0 = arith.constant 0 : i32
    %c0_i32_1 = arith.constant 0 : i32
    return %c0_i32, %c0_i32_0 : i32, i32
  }
  func.func @transform_5(%arg0: i32) -> (i32, i32, i32, i32) {
    %c0_i32 = arith.constant 0 : i32
    %c0_i32_0 = arith.constant 0 : i32
    %c0_i32_1 = arith.constant 0 : i32
    %c0_i32_2 = arith.constant 0 : i32
    return %arg0, %c0_i32, %c0_i32_0, %c0_i32_1 : i32, i32, i32, i32
  }
}

module attributes {stable_mosaic.version = 11 : i64} {
  func.func @_dw_se_kernel(%arg0: i32, %arg1: memref<1x10x10x320xbf16, #tpu.memory_space<vmem>>, %arg2: memref<9x320x256xbf16, #tpu.memory_space<vmem>>, %arg3: memref<2x256xf32, #tpu.memory_space<vmem>>, %arg4: memref<256x32xf32, #tpu.memory_space<vmem>>, %arg5: memref<32x8xf32, #tpu.memory_space<vmem>>, %arg6: memref<1x8xf32, #tpu.memory_space<vmem>>, %arg7: memref<8x32xf32, #tpu.memory_space<vmem>>, %arg8: memref<1x32xf32, #tpu.memory_space<vmem>>, %arg9: memref<32x256xf32, #tpu.memory_space<vmem>>, %arg10: memref<1x8x8x256xbf16, #tpu.memory_space<vmem>>) attributes {dimension_semantics = [#tpu.dimension_semantics<parallel>], iteration_bounds = array<i64: 2>, scalar_prefetch = 0 : i64, scratch_operands = 0 : i64, tpu.core_type = #tpu.core_type<tc>, window_params = [{transform_indices = @transform_0, window_bounds = array<i64: 1, 10, 10, 320>}, {pipeline_mode = #tpu.pipeline_mode<synchronous>, transform_indices = @transform_1, window_bounds = array<i64: 9, 320, 256>}, {pipeline_mode = #tpu.pipeline_mode<synchronous>, transform_indices = @transform_2, window_bounds = array<i64: 2, 256>}, {pipeline_mode = #tpu.pipeline_mode<synchronous>, transform_indices = @transform_3, window_bounds = array<i64: 256, 32>}, {pipeline_mode = #tpu.pipeline_mode<synchronous>, transform_indices = @transform_4, window_bounds = array<i64: 32, 8>}, {pipeline_mode = #tpu.pipeline_mode<synchronous>, transform_indices = @transform_5, window_bounds = array<i64: 1, 8>}, {pipeline_mode = #tpu.pipeline_mode<synchronous>, transform_indices = @transform_6, window_bounds = array<i64: 8, 32>}, {pipeline_mode = #tpu.pipeline_mode<synchronous>, transform_indices = @transform_7, window_bounds = array<i64: 1, 32>}, {pipeline_mode = #tpu.pipeline_mode<synchronous>, transform_indices = @transform_8, window_bounds = array<i64: 32, 256>}, {transform_indices = @transform_9, window_bounds = array<i64: 1, 8, 8, 256>}]} {
    %c0 = arith.constant 0 : index
    %c0_0 = arith.constant 0 : index
    %c0_1 = arith.constant 0 : index
    %c0_2 = arith.constant 0 : index
    %0 = vector.load %arg1[%c0, %c0_0, %c0_1, %c0_2] : memref<1x10x10x320xbf16, #tpu.memory_space<vmem>>, vector<1x10x10x320xbf16>
    %1 = vector.shape_cast %0 : vector<1x10x10x320xbf16> to vector<10x10x320xbf16>
    %2 = arith.extf %1 : vector<10x10x320xbf16> to vector<10x10x320xf32>
    %cst = arith.constant 0.000000e+00 : f32
    %3 = vector.broadcast %cst : f32 to vector<64x256xf32>
    %4 = vector.extract_strided_slice %2 {offsets = [0, 0, 0], sizes = [8, 8, 320], strides = [1, 1, 1]} : vector<10x10x320xf32> to vector<8x8x320xf32>
    %5 = vector.shape_cast %4 : vector<8x8x320xf32> to vector<64x320xf32>
    %c0_3 = arith.constant 0 : index
    %c0_4 = arith.constant 0 : index
    %c0_5 = arith.constant 0 : index
    %6 = vector.load %arg2[%c0_3, %c0_4, %c0_5] : memref<9x320x256xbf16, #tpu.memory_space<vmem>>, vector<1x320x256xbf16>
    %7 = vector.shape_cast %6 : vector<1x320x256xbf16> to vector<320x256xbf16>
    %cst_6 = arith.constant dense<0.000000e+00> : vector<64x256xf32>
    %8 = tpu.matmul %5, %7, %cst_6 {dimension_numbers = #tpu.dot_dimension_numbers<[1], [0], [0], [1], [0, 0, 1, 1], [], []>} : vector<64x320xf32>, vector<320x256xbf16>, vector<64x256xf32> -> vector<64x256xf32>
    %9 = arith.addf %3, %8 : vector<64x256xf32>
    %10 = vector.extract_strided_slice %2 {offsets = [0, 1, 0], sizes = [8, 8, 320], strides = [1, 1, 1]} : vector<10x10x320xf32> to vector<8x8x320xf32>
    %11 = vector.shape_cast %10 : vector<8x8x320xf32> to vector<64x320xf32>
    %c1 = arith.constant 1 : index
    %c0_7 = arith.constant 0 : index
    %c0_8 = arith.constant 0 : index
    %12 = vector.load %arg2[%c1, %c0_7, %c0_8] : memref<9x320x256xbf16, #tpu.memory_space<vmem>>, vector<1x320x256xbf16>
    %13 = vector.shape_cast %12 : vector<1x320x256xbf16> to vector<320x256xbf16>
    %cst_9 = arith.constant dense<0.000000e+00> : vector<64x256xf32>
    %14 = tpu.matmul %11, %13, %cst_9 {dimension_numbers = #tpu.dot_dimension_numbers<[1], [0], [0], [1], [0, 0, 1, 1], [], []>} : vector<64x320xf32>, vector<320x256xbf16>, vector<64x256xf32> -> vector<64x256xf32>
    %15 = arith.addf %9, %14 : vector<64x256xf32>
    %16 = vector.extract_strided_slice %2 {offsets = [0, 2, 0], sizes = [8, 8, 320], strides = [1, 1, 1]} : vector<10x10x320xf32> to vector<8x8x320xf32>
    %17 = vector.shape_cast %16 : vector<8x8x320xf32> to vector<64x320xf32>
    %c2 = arith.constant 2 : index
    %c0_10 = arith.constant 0 : index
    %c0_11 = arith.constant 0 : index
    %18 = vector.load %arg2[%c2, %c0_10, %c0_11] : memref<9x320x256xbf16, #tpu.memory_space<vmem>>, vector<1x320x256xbf16>
    %19 = vector.shape_cast %18 : vector<1x320x256xbf16> to vector<320x256xbf16>
    %cst_12 = arith.constant dense<0.000000e+00> : vector<64x256xf32>
    %20 = tpu.matmul %17, %19, %cst_12 {dimension_numbers = #tpu.dot_dimension_numbers<[1], [0], [0], [1], [0, 0, 1, 1], [], []>} : vector<64x320xf32>, vector<320x256xbf16>, vector<64x256xf32> -> vector<64x256xf32>
    %21 = arith.addf %15, %20 : vector<64x256xf32>
    %22 = vector.extract_strided_slice %2 {offsets = [1, 0, 0], sizes = [8, 8, 320], strides = [1, 1, 1]} : vector<10x10x320xf32> to vector<8x8x320xf32>
    %23 = vector.shape_cast %22 : vector<8x8x320xf32> to vector<64x320xf32>
    %c3 = arith.constant 3 : index
    %c0_13 = arith.constant 0 : index
    %c0_14 = arith.constant 0 : index
    %24 = vector.load %arg2[%c3, %c0_13, %c0_14] : memref<9x320x256xbf16, #tpu.memory_space<vmem>>, vector<1x320x256xbf16>
    %25 = vector.shape_cast %24 : vector<1x320x256xbf16> to vector<320x256xbf16>
    %cst_15 = arith.constant dense<0.000000e+00> : vector<64x256xf32>
    %26 = tpu.matmul %23, %25, %cst_15 {dimension_numbers = #tpu.dot_dimension_numbers<[1], [0], [0], [1], [0, 0, 1, 1], [], []>} : vector<64x320xf32>, vector<320x256xbf16>, vector<64x256xf32> -> vector<64x256xf32>
    %27 = arith.addf %21, %26 : vector<64x256xf32>
    %28 = vector.extract_strided_slice %2 {offsets = [1, 1, 0], sizes = [8, 8, 320], strides = [1, 1, 1]} : vector<10x10x320xf32> to vector<8x8x320xf32>
    %29 = vector.shape_cast %28 : vector<8x8x320xf32> to vector<64x320xf32>
    %c4 = arith.constant 4 : index
    %c0_16 = arith.constant 0 : index
    %c0_17 = arith.constant 0 : index
    %30 = vector.load %arg2[%c4, %c0_16, %c0_17] : memref<9x320x256xbf16, #tpu.memory_space<vmem>>, vector<1x320x256xbf16>
    %31 = vector.shape_cast %30 : vector<1x320x256xbf16> to vector<320x256xbf16>
    %cst_18 = arith.constant dense<0.000000e+00> : vector<64x256xf32>
    %32 = tpu.matmul %29, %31, %cst_18 {dimension_numbers = #tpu.dot_dimension_numbers<[1], [0], [0], [1], [0, 0, 1, 1], [], []>} : vector<64x320xf32>, vector<320x256xbf16>, vector<64x256xf32> -> vector<64x256xf32>
    %33 = arith.addf %27, %32 : vector<64x256xf32>
    %34 = vector.extract_strided_slice %2 {offsets = [1, 2, 0], sizes = [8, 8, 320], strides = [1, 1, 1]} : vector<10x10x320xf32> to vector<8x8x320xf32>
    %35 = vector.shape_cast %34 : vector<8x8x320xf32> to vector<64x320xf32>
    %c5 = arith.constant 5 : index
    %c0_19 = arith.constant 0 : index
    %c0_20 = arith.constant 0 : index
    %36 = vector.load %arg2[%c5, %c0_19, %c0_20] : memref<9x320x256xbf16, #tpu.memory_space<vmem>>, vector<1x320x256xbf16>
    %37 = vector.shape_cast %36 : vector<1x320x256xbf16> to vector<320x256xbf16>
    %cst_21 = arith.constant dense<0.000000e+00> : vector<64x256xf32>
    %38 = tpu.matmul %35, %37, %cst_21 {dimension_numbers = #tpu.dot_dimension_numbers<[1], [0], [0], [1], [0, 0, 1, 1], [], []>} : vector<64x320xf32>, vector<320x256xbf16>, vector<64x256xf32> -> vector<64x256xf32>
    %39 = arith.addf %33, %38 : vector<64x256xf32>
    %40 = vector.extract_strided_slice %2 {offsets = [2, 0, 0], sizes = [8, 8, 320], strides = [1, 1, 1]} : vector<10x10x320xf32> to vector<8x8x320xf32>
    %41 = vector.shape_cast %40 : vector<8x8x320xf32> to vector<64x320xf32>
    %c6 = arith.constant 6 : index
    %c0_22 = arith.constant 0 : index
    %c0_23 = arith.constant 0 : index
    %42 = vector.load %arg2[%c6, %c0_22, %c0_23] : memref<9x320x256xbf16, #tpu.memory_space<vmem>>, vector<1x320x256xbf16>
    %43 = vector.shape_cast %42 : vector<1x320x256xbf16> to vector<320x256xbf16>
    %cst_24 = arith.constant dense<0.000000e+00> : vector<64x256xf32>
    %44 = tpu.matmul %41, %43, %cst_24 {dimension_numbers = #tpu.dot_dimension_numbers<[1], [0], [0], [1], [0, 0, 1, 1], [], []>} : vector<64x320xf32>, vector<320x256xbf16>, vector<64x256xf32> -> vector<64x256xf32>
    %45 = arith.addf %39, %44 : vector<64x256xf32>
    %46 = vector.extract_strided_slice %2 {offsets = [2, 1, 0], sizes = [8, 8, 320], strides = [1, 1, 1]} : vector<10x10x320xf32> to vector<8x8x320xf32>
    %47 = vector.shape_cast %46 : vector<8x8x320xf32> to vector<64x320xf32>
    %c7 = arith.constant 7 : index
    %c0_25 = arith.constant 0 : index
    %c0_26 = arith.constant 0 : index
    %48 = vector.load %arg2[%c7, %c0_25, %c0_26] : memref<9x320x256xbf16, #tpu.memory_space<vmem>>, vector<1x320x256xbf16>
    %49 = vector.shape_cast %48 : vector<1x320x256xbf16> to vector<320x256xbf16>
    %cst_27 = arith.constant dense<0.000000e+00> : vector<64x256xf32>
    %50 = tpu.matmul %47, %49, %cst_27 {dimension_numbers = #tpu.dot_dimension_numbers<[1], [0], [0], [1], [0, 0, 1, 1], [], []>} : vector<64x320xf32>, vector<320x256xbf16>, vector<64x256xf32> -> vector<64x256xf32>
    %51 = arith.addf %45, %50 : vector<64x256xf32>
    %52 = vector.extract_strided_slice %2 {offsets = [2, 2, 0], sizes = [8, 8, 320], strides = [1, 1, 1]} : vector<10x10x320xf32> to vector<8x8x320xf32>
    %53 = vector.shape_cast %52 : vector<8x8x320xf32> to vector<64x320xf32>
    %c8 = arith.constant 8 : index
    %c0_28 = arith.constant 0 : index
    %c0_29 = arith.constant 0 : index
    %54 = vector.load %arg2[%c8, %c0_28, %c0_29] : memref<9x320x256xbf16, #tpu.memory_space<vmem>>, vector<1x320x256xbf16>
    %55 = vector.shape_cast %54 : vector<1x320x256xbf16> to vector<320x256xbf16>
    %cst_30 = arith.constant dense<0.000000e+00> : vector<64x256xf32>
    %56 = tpu.matmul %53, %55, %cst_30 {dimension_numbers = #tpu.dot_dimension_numbers<[1], [0], [0], [1], [0, 0, 1, 1], [], []>} : vector<64x320xf32>, vector<320x256xbf16>, vector<64x256xf32> -> vector<64x256xf32>
    %57 = arith.addf %51, %56 : vector<64x256xf32>
    %c0_31 = arith.constant 0 : index
    %c0_32 = arith.constant 0 : index
    %58 = vector.load %arg3[%c0_31, %c0_32] : memref<2x256xf32, #tpu.memory_space<vmem>>, vector<1x256xf32>
    %59 = vector.shape_cast %58 : vector<1x256xf32> to vector<256xf32>
    %60 = vector.shape_cast %59 : vector<256xf32> to vector<1x256xf32>
    %61 = vector.broadcast %60 : vector<1x256xf32> to vector<64x256xf32>
    %62 = arith.mulf %57, %61 : vector<64x256xf32>
    %c1_33 = arith.constant 1 : index
    %c0_34 = arith.constant 0 : index
    %63 = vector.load %arg3[%c1_33, %c0_34] : memref<2x256xf32, #tpu.memory_space<vmem>>, vector<1x256xf32>
    %64 = vector.shape_cast %63 : vector<1x256xf32> to vector<256xf32>
    %65 = vector.shape_cast %64 : vector<256xf32> to vector<1x256xf32>
    %66 = vector.broadcast %65 : vector<1x256xf32> to vector<64x256xf32>
    %67 = arith.addf %62, %66 : vector<64x256xf32>
    %cst_35 = arith.constant dense<0.000000e+00> : vector<256xf32>
    %68 = vector.multi_reduction <add>, %67, %cst_35 [0] : vector<64x256xf32> to vector<256xf32>
    %69 = vector.shape_cast %68 : vector<256xf32> to vector<1x256xf32>
    %cst_36 = arith.constant 6.400000e+01 : f32
    %70 = vector.broadcast %cst_36 : f32 to vector<1x256xf32>
    %71 = arith.divf %69, %70 : vector<1x256xf32>
    %c0_37 = arith.constant 0 : index
    %c0_38 = arith.constant 0 : index
    %72 = vector.load %arg4[%c0_37, %c0_38] : memref<256x32xf32, #tpu.memory_space<vmem>>, vector<256x32xf32>
    %cst_39 = arith.constant dense<0.000000e+00> : vector<1x32xf32>
    %73 = tpu.matmul %71, %72, %cst_39 {dimension_numbers = #tpu.dot_dimension_numbers<[1], [0], [0], [1], [0, 0, 1, 1], [], []>} : vector<1x256xf32>, vector<256x32xf32>, vector<1x32xf32> -> vector<1x32xf32>
    %c0_40 = arith.constant 0 : index
    %c0_41 = arith.constant 0 : index
    %74 = vector.load %arg5[%c0_40, %c0_41] : memref<32x8xf32, #tpu.memory_space<vmem>>, vector<32x8xf32>
    %cst_42 = arith.constant dense<0.000000e+00> : vector<1x8xf32>
    %75 = tpu.matmul %73, %74, %cst_42 {dimension_numbers = #tpu.dot_dimension_numbers<[1], [0], [0], [1], [0, 0, 1, 1], [], []>} : vector<1x32xf32>, vector<32x8xf32>, vector<1x8xf32> -> vector<1x8xf32>
    %c0_43 = arith.constant 0 : index
    %c0_44 = arith.constant 0 : index
    %76 = vector.load %arg6[%c0_43, %c0_44] : memref<1x8xf32, #tpu.memory_space<vmem>>, vector<1x8xf32>
    %77 = arith.addf %75, %76 : vector<1x8xf32>
    %cst_45 = arith.constant 0.000000e+00 : f32
    %78 = vector.broadcast %cst_45 : f32 to vector<1x8xf32>
    %79 = arith.maximumf %77, %78 : vector<1x8xf32>
    %c0_46 = arith.constant 0 : index
    %c0_47 = arith.constant 0 : index
    %80 = vector.load %arg7[%c0_46, %c0_47] : memref<8x32xf32, #tpu.memory_space<vmem>>, vector<8x32xf32>
    %cst_48 = arith.constant dense<0.000000e+00> : vector<1x32xf32>
    %81 = tpu.matmul %79, %80, %cst_48 {dimension_numbers = #tpu.dot_dimension_numbers<[1], [0], [0], [1], [0, 0, 1, 1], [], []>} : vector<1x8xf32>, vector<8x32xf32>, vector<1x32xf32> -> vector<1x32xf32>
    %c0_49 = arith.constant 0 : index
    %c0_50 = arith.constant 0 : index
    %82 = vector.load %arg8[%c0_49, %c0_50] : memref<1x32xf32, #tpu.memory_space<vmem>>, vector<1x32xf32>
    %83 = arith.addf %81, %82 : vector<1x32xf32>
    %84 = arith.negf %83 : vector<1x32xf32>
    %85 = math.exp %84 : vector<1x32xf32>
    %cst_51 = arith.constant 1.000000e+00 : f32
    %86 = vector.broadcast %cst_51 : f32 to vector<1x32xf32>
    %87 = arith.addf %86, %85 : vector<1x32xf32>
    %88 = arith.divf %86, %87 : vector<1x32xf32>
    %c0_52 = arith.constant 0 : index
    %c0_53 = arith.constant 0 : index
    %89 = vector.load %arg9[%c0_52, %c0_53] : memref<32x256xf32, #tpu.memory_space<vmem>>, vector<32x256xf32>
    %cst_54 = arith.constant dense<0.000000e+00> : vector<1x256xf32>
    %90 = tpu.matmul %88, %89, %cst_54 {dimension_numbers = #tpu.dot_dimension_numbers<[1], [0], [0], [1], [0, 0, 1, 1], [], []>} : vector<1x32xf32>, vector<32x256xf32>, vector<1x256xf32> -> vector<1x256xf32>
    %91 = vector.broadcast %90 : vector<1x256xf32> to vector<64x256xf32>
    %92 = arith.mulf %67, %91 : vector<64x256xf32>
    %93 = arith.negf %92 : vector<64x256xf32>
    %94 = math.exp %93 : vector<64x256xf32>
    %cst_55 = arith.constant 1.000000e+00 : f32
    %95 = vector.broadcast %cst_55 : f32 to vector<64x256xf32>
    %96 = arith.addf %95, %94 : vector<64x256xf32>
    %97 = arith.divf %95, %96 : vector<64x256xf32>
    %98 = arith.mulf %92, %97 : vector<64x256xf32>
    %99 = vector.shape_cast %98 : vector<64x256xf32> to vector<1x8x8x256xf32>
    %100 = arith.truncf %99 : vector<1x8x8x256xf32> to vector<1x8x8x256xbf16>
    %c0_56 = arith.constant 0 : index
    %c0_57 = arith.constant 0 : index
    %c0_58 = arith.constant 0 : index
    %c0_59 = arith.constant 0 : index
    %101 = vector.load %arg10[%c0_56, %c0_57, %c0_58, %c0_59] : memref<1x8x8x256xbf16, #tpu.memory_space<vmem>>, vector<1x8x8x256xbf16>
    tpu.vector_store %arg10[%c0_56, %c0_57, %c0_58, %c0_59], %100 {strides = array<i32>} : memref<1x8x8x256xbf16, #tpu.memory_space<vmem>>, vector<1x8x8x256xbf16>,
    return
  }
  func.func @transform_0(%arg0: i32) -> (i32, i32, i32, i32) {
    %c0_i32 = arith.constant 0 : i32
    %c0_i32_0 = arith.constant 0 : i32
    %c0_i32_1 = arith.constant 0 : i32
    %c0_i32_2 = arith.constant 0 : i32
    return %arg0, %c0_i32, %c0_i32_0, %c0_i32_1 : i32, i32, i32, i32
  }
  func.func @transform_1(%arg0: i32) -> (i32, i32, i32) {
    %c0_i32 = arith.constant 0 : i32
    %c0_i32_0 = arith.constant 0 : i32
    %c0_i32_1 = arith.constant 0 : i32
    %c0_i32_2 = arith.constant 0 : i32
    return %c0_i32, %c0_i32_0, %c0_i32_1 : i32, i32, i32
  }
  func.func @transform_2(%arg0: i32) -> (i32, i32) {
    %c0_i32 = arith.constant 0 : i32
    %c0_i32_0 = arith.constant 0 : i32
    %c0_i32_1 = arith.constant 0 : i32
    return %c0_i32, %c0_i32_0 : i32, i32
  }
  func.func @transform_3(%arg0: i32) -> (i32, i32) {
    %c0_i32 = arith.constant 0 : i32
    %c0_i32_0 = arith.constant 0 : i32
    %c0_i32_1 = arith.constant 0 : i32
    return %c0_i32, %c0_i32_0 : i32, i32
  }
  func.func @transform_4(%arg0: i32) -> (i32, i32) {
    %c0_i32 = arith.constant 0 : i32
    %c0_i32_0 = arith.constant 0 : i32
    %c0_i32_1 = arith.constant 0 : i32
    return %c0_i32, %c0_i32_0 : i32, i32
  }
  func.func @transform_5(%arg0: i32) -> (i32, i32) {
    %c0_i32 = arith.constant 0 : i32
    %c0_i32_0 = arith.constant 0 : i32
    %c0_i32_1 = arith.constant 0 : i32
    return %c0_i32, %c0_i32_0 : i32, i32
  }
  func.func @transform_6(%arg0: i32) -> (i32, i32) {
    %c0_i32 = arith.constant 0 : i32
    %c0_i32_0 = arith.constant 0 : i32
    %c0_i32_1 = arith.constant 0 : i32
    return %c0_i32, %c0_i32_0 : i32, i32
  }
  func.func @transform_7(%arg0: i32) -> (i32, i32) {
    %c0_i32 = arith.constant 0 : i32
    %c0_i32_0 = arith.constant 0 : i32
    %c0_i32_1 = arith.constant 0 : i32
    return %c0_i32, %c0_i32_0 : i32, i32
  }
  func.func @transform_8(%arg0: i32) -> (i32, i32) {
    %c0_i32 = arith.constant 0 : i32
    %c0_i32_0 = arith.constant 0 : i32
    %c0_i32_1 = arith.constant 0 : i32
    return %c0_i32, %c0_i32_0 : i32, i32
  }
  func.func @transform_9(%arg0: i32) -> (i32, i32, i32, i32) {
    %c0_i32 = arith.constant 0 : i32
    %c0_i32_0 = arith.constant 0 : i32
    %c0_i32_1 = arith.constant 0 : i32
    %c0_i32_2 = arith.constant 0 : i32
    return %arg0, %c0_i32, %c0_i32_0, %c0_i32_1 : i32, i32, i32, i32
  }
}

module attributes {stable_mosaic.version = 11 : i64} {
  func.func @_pw_res_kernel(%arg0: i32, %arg1: memref<64x256xbf16, #tpu.memory_space<vmem>>, %arg2: memref<256x128xbf16, #tpu.memory_space<vmem>>, %arg3: memref<2x128xf32, #tpu.memory_space<vmem>>, %arg4: memref<64x128xbf16, #tpu.memory_space<vmem>>, %arg5: memref<64x128xbf16, #tpu.memory_space<vmem>>) attributes {dimension_semantics = [#tpu.dimension_semantics<parallel>], iteration_bounds = array<i64: 2>, scalar_prefetch = 0 : i64, scratch_operands = 0 : i64, tpu.core_type = #tpu.core_type<tc>, window_params = [{transform_indices = @transform_0, window_bounds = array<i64: 64, 256>}, {pipeline_mode = #tpu.pipeline_mode<synchronous>, transform_indices = @transform_1, window_bounds = array<i64: 256, 128>}, {pipeline_mode = #tpu.pipeline_mode<synchronous>, transform_indices = @transform_2, window_bounds = array<i64: 2, 128>}, {transform_indices = @transform_3, window_bounds = array<i64: 64, 128>}, {transform_indices = @transform_4, window_bounds = array<i64: 64, 128>}]} {
    %c0 = arith.constant 0 : index
    %c0_0 = arith.constant 0 : index
    %0 = vector.load %arg1[%c0, %c0_0] : memref<64x256xbf16, #tpu.memory_space<vmem>>, vector<64x256xbf16>
    %c0_1 = arith.constant 0 : index
    %c0_2 = arith.constant 0 : index
    %1 = vector.load %arg2[%c0_1, %c0_2] : memref<256x128xbf16, #tpu.memory_space<vmem>>, vector<256x128xbf16>
    %cst = arith.constant dense<0.000000e+00> : vector<64x128xf32>
    %2 = tpu.matmul %0, %1, %cst {dimension_numbers = #tpu.dot_dimension_numbers<[1], [0], [0], [1], [0, 0, 1, 1], [], []>} : vector<64x256xbf16>, vector<256x128xbf16>, vector<64x128xf32> -> vector<64x128xf32>
    %c0_3 = arith.constant 0 : index
    %c0_4 = arith.constant 0 : index
    %3 = vector.load %arg3[%c0_3, %c0_4] : memref<2x128xf32, #tpu.memory_space<vmem>>, vector<1x128xf32>
    %4 = vector.shape_cast %3 : vector<1x128xf32> to vector<128xf32>
    %5 = vector.shape_cast %4 : vector<128xf32> to vector<1x128xf32>
    %6 = vector.broadcast %5 : vector<1x128xf32> to vector<64x128xf32>
    %7 = arith.mulf %2, %6 : vector<64x128xf32>
    %c1 = arith.constant 1 : index
    %c0_5 = arith.constant 0 : index
    %8 = vector.load %arg3[%c1, %c0_5] : memref<2x128xf32, #tpu.memory_space<vmem>>, vector<1x128xf32>
    %9 = vector.shape_cast %8 : vector<1x128xf32> to vector<128xf32>
    %10 = vector.shape_cast %9 : vector<128xf32> to vector<1x128xf32>
    %11 = vector.broadcast %10 : vector<1x128xf32> to vector<64x128xf32>
    %12 = arith.addf %7, %11 : vector<64x128xf32>
    %c0_6 = arith.constant 0 : index
    %c0_7 = arith.constant 0 : index
    %13 = vector.load %arg4[%c0_6, %c0_7] : memref<64x128xbf16, #tpu.memory_space<vmem>>, vector<64x128xbf16>
    %14 = arith.extf %13 : vector<64x128xbf16> to vector<64x128xf32>
    %15 = arith.addf %12, %14 : vector<64x128xf32>
    %cst_8 = arith.constant 0.000000e+00 : f32
    %16 = vector.broadcast %cst_8 : f32 to vector<64x128xf32>
    %17 = arith.maximumf %15, %16 : vector<64x128xf32>
    %18 = arith.truncf %17 : vector<64x128xf32> to vector<64x128xbf16>
    %c0_9 = arith.constant 0 : index
    %c0_10 = arith.constant 0 : index
    %19 = vector.load %arg5[%c0_9, %c0_10] : memref<64x128xbf16, #tpu.memory_space<vmem>>, vector<64x128xbf16>
    tpu.vector_store %arg5[%c0_9, %c0_10], %18 {strides = array<i32>} : memref<64x128xbf16, #tpu.memory_space<vmem>>, vector<64x128xbf16>,
    return
  }
  func.func @transform_0(%arg0: i32) -> (i32, i32) {
    %c0_i32 = arith.constant 0 : i32
    %c0_i32_0 = arith.constant 0 : i32
    return %arg0, %c0_i32 : i32, i32
  }
  func.func @transform_1(%arg0: i32) -> (i32, i32) {
    %c0_i32 = arith.constant 0 : i32
    %c0_i32_0 = arith.constant 0 : i32
    %c0_i32_1 = arith.constant 0 : i32
    return %c0_i32, %c0_i32_0 : i32, i32
  }
  func.func @transform_2(%arg0: i32) -> (i32, i32) {
    %c0_i32 = arith.constant 0 : i32
    %c0_i32_0 = arith.constant 0 : i32
    %c0_i32_1 = arith.constant 0 : i32
    return %c0_i32, %c0_i32_0 : i32, i32
  }
  func.func @transform_3(%arg0: i32) -> (i32, i32) {
    %c0_i32 = arith.constant 0 : i32
    %c0_i32_0 = arith.constant 0 : i32
    return %arg0, %c0_i32 : i32, i32
  }
  func.func @transform_4(%arg0: i32) -> (i32, i32) {
    %c0_i32 = arith.constant 0 : i32
    %c0_i32_0 = arith.constant 0 : i32
    return %arg0, %c0_i32 : i32, i32
  }
}

</mosaic_0001>

<bundles_post_ra>
// kernel: x3d_forward.5
= control target key start
LH: loop header
LB: loop body
LE: loop exit
PB: predicated region body
PF: predicated region fallthrough
CT: control target
= control target key end

     0   :  { %s697_s12 = smov 0   ;;  %s818_s0 = inlined_call_operand.vmem [shape: bf16[128,128], index: 0, kind: input, shape index: {}]   ;;  %s819_s1 = inlined_call_operand.vmem [shape: bf16[128,256], index: 1, kind: input, shape index: {}]   ;;  %s820_s2 = inlined_call_operand.vmem [shape: f32[2,256], index: 2, kind: input, shape index: {}]   ;;  %s821_s3 = inlined_call_operand.vmem [shape: bf16[128,256], index: 3, kind: output, shape index: {}]  }
   0x1 LB: > { %s565_s13 = sadd.s32 4294967295, %s674_s12   ;;  %p569_p0 = scmp.ge.s32.totalorder %s674_s12, 1  ;;  %s674_s12 = sphi %s697_s12, %s13_s12  }
   0x2   : > { %p138_p1 = scmp.lt.s32.totalorder %s674_s12, 3 }
   0x4   : > { %p139_p2 = pnand %p569_p0, %p138_p1 }
   0x5   : > { %s570_s16 = sshll.u32 (!%p139_p2), %s565_s13, 3 }
   0x6   : > { %142 = sbr.rel (%p139_p2) target bundleno = 261 (0x105), region = 32  ;;  %p164_p3 = scmp.lt.s32.totalorder (!%p139_p2), %s570_s16, 15 }
   0xb   : > { %v640_v0 = vld [vmem:[%s819_s1 + $0x74] ss:$8 sps:$4 sm:$0xff]   ;;  %v642_v1 = vld [vmem:[%s819_s1 + $0x70] ss:$8 sps:$4 sm:$0xff]   ;;  %v676_v2 = vmov 0   ;;  %s823_s16 = smov (!%p164_p3, %s570_s16), 15  ;;  %v380_v21 = vlaneseq }
   0xc   : > { %337 = vmatprep.mubr.bf16.mxu0 %v676_v2  ;;  %357 = vmatprep.mubr.bf16.mxu1 %v676_v2  ;;  %v643_v3 = vld [vmem:[%s819_s1 + $0x64] ss:$8 sps:$4 sm:$0xff]   ;;  %v645_v4 = vld [vmem:[%s819_s1 + $0x60] ss:$8 sps:$4 sm:$0xff]   ;;  %v646_v5 = vld [vmem:[%s819_s1 + $0x54] ss:$8 sps:$4 sm:$0xff]  }
   0xd   : > { %305 = vmatprep.subr.bf16.mxu0 %v640_v0  ;;  %615 = vmatprep.subr.bf16.mxu1 %v640_v0  ;;  %s571_s25 = sshll.u32 %s823_s16, 2  ;;  %v648_v6 = vld [vmem:[%s819_s1 + $0x50] ss:$8 sps:$4 sm:$0xff]   ;;  %v649_v7 = vld [vmem:[%s819_s1 + $0x44] ss:$8 sps:$4 sm:$0xff]   ;;  %v381_v22 = vshrl.u32 %v380_v21, 7 }
   0xe   : > { %306 = vmatpush1.bf16.msra.mxu0 %v642_v1  ;;  %623 = vmatpush1.bf16.msra.mxu1 %v642_v1  ;;  %s732_s5 = scalar_lea.vmem %s818_s0, %s571_s25  ;;  %v651_v8 = vld [vmem:[%s819_s1 + $0x40] ss:$8 sps:$4 sm:$0xff]   ;;  %v652_v9 = vld [vmem:[%s819_s1 + $0x34] ss:$8 sps:$4 sm:$0xff]   ;;  %v654_v10 = vld [vmem:[%s819_s1 + $0x30] ss:$8 sps:$4 sm:$0xff]  }
   0xf   : > { %307 = vmatprep.subr.bf16.mxu0 %v643_v3  ;;  %616 = vmatprep.subr.bf16.mxu1 %v643_v3  ;;  %v655_v11 = vld [vmem:[%s819_s1 + $0x24] ss:$8 sps:$4 sm:$0xff]   ;;  %v657_v12 = vld [vmem:[%s819_s1 + $0x20] ss:$8 sps:$4 sm:$0xff]   ;;  %v658_v13 = vld [vmem:[%s819_s1 + $0x14] ss:$8 sps:$4 sm:$0xff]  }
  0x10   : > { %v660_v14 = vld [vmem:[%s819_s1 + $0x10] ss:$8 sps:$4 sm:$0xff]   ;;  %v661_v15 = vld [vmem:[%s819_s1 + $0x4] ss:$8 sps:$4 sm:$0xff]   ;;  %v663_v16 = vld [vmem:[%s819_s1] ss:$8 sps:$4 sm:$0xff]  }
  0x11   : > { %v664_v17 = vld [vmem:[%s732_s5] sm:$0xff]   ;;  %v665_v18 = vld [vmem:[%s732_s5 + $0x10] sm:$0xff]   ;;  %v666_v19 = vld [vmem:[%s732_s5 + $0x8] sm:$0xff]   ;;  %v382_v23 = vsub.s32 0, %v381_v22  ;;  %v386_v25 = vsub.s32 1, %v381_v22  ;;  %s606_s30 = sshll.u32 %s823_s16, 3 }
  0x12   : > { %308 = vmatpush1.bf16.msra.mxu0 %v645_v4  ;;  %624 = vmatpush1.bf16.msra.mxu1 %v645_v4  ;;  %v667_v20 = vld [vmem:[%s732_s5 + $0x18] sm:$0xff]   ;;  %v378_v24 = vld [vmem:[%s820_s2] ss:$2 sm:$0x3]  ;;  %s789_s16 = scalar_lea.vmem %s821_s3, %s606_s30 }
  0x13   : > { %309 = vmatprep.subr.bf16.mxu0 %v646_v5  ;;  %617 = vmatprep.subr.bf16.mxu1 %v646_v5  ;;  %v595_v26 = vld [vmem:[%s820_s2 + $0x1] ss:$2 sm:$0x3]  ;;  %v383_v27 = vrot.slane %v378_v24, %v382_v23  ;;  %v773_v29 = vrot.slane %v378_v24, %v386_v25 }
  0x14   : > { %v771_v28 = vrot.slane %v595_v26, %v382_v23  ;;  %v775_v34 = vrot.slane %v595_v26, %v386_v25 }
  0x16   : > { %310 = vmatpush1.bf16.msra.mxu0 %v648_v6  ;;  %625 = vmatpush1.bf16.msra.mxu1 %v648_v6 }
  0x17   : > { %311 = vmatprep.subr.bf16.mxu0 %v649_v7  ;;  %618 = vmatprep.subr.bf16.mxu1 %v649_v7 }
  0x1a   : > { %312 = vmatpush1.bf16.msra.mxu0 %v651_v8  ;;  %626 = vmatpush1.bf16.msra.mxu1 %v651_v8 }
  0x1b   : > { %313 = vmatprep.subr.bf16.mxu0 %v652_v9  ;;  %619 = vmatprep.subr.bf16.mxu1 %v652_v9 }
  0x1e   : > { %314 = vmatpush1.bf16.msra.mxu0 %v654_v10  ;;  %627 = vmatpush1.bf16.msra.mxu1 %v654_v10 }
  0x1f   : > { %315 = vmatprep.subr.bf16.mxu0 %v655_v11  ;;  %620 = vmatprep.subr.bf16.mxu1 %v655_v11 }
  0x22   : > { %316 = vmatpush1.bf16.msra.mxu0 %v657_v12  ;;  %628 = vmatpush1.bf16.msra.mxu1 %v657_v12 }
  0x23   : > { %317 = vmatprep.subr.bf16.mxu0 %v658_v13  ;;  %621 = vmatprep.subr.bf16.mxu1 %v658_v13 }
  0x26   : > { %318 = vmatpush1.bf16.msra.mxu0 %v660_v14  ;;  %629 = vmatpush1.bf16.msra.mxu1 %v660_v14 }
  0x27   : > { %319 = vmatprep.subr.bf16.mxu0 %v661_v15  ;;  %622 = vmatprep.subr.bf16.mxu1 %v661_v15 }
  0x2a   : > { %320 = vmatpush1.bf16.msra.mxu0 %v663_v16  ;;  %630 = vmatpush1.bf16.msra.mxu1 %v663_v16 }
  0x2d   : > { %338 = vmatmul.mubr.bf16.vlgmr.msra.gmra.mxu0 %v664_v17  ;;  %358 = vmatmul.mubr.bf16.vlgmr.msra.gmra.mxu1 %v665_v18 }
  0x2e   : > { %347 = vmatprep.mubr.bf16.mxu0 %v676_v2  ;;  %367 = vmatprep.mubr.bf16.mxu1 %v676_v2 }
  0x35   : > { %348 = vmatmul.mubr.bf16.gmra.mxu0 %v666_v19  ;;  %368 = vmatmul.mubr.bf16.gmra.mxu1 %v667_v20 }
  0xed   : > { %v339_v30 = vpop.f32.mrf.mxu0  ;;  %v359_v31 = vpop.f32.mrf.mxu1 }
  0xee   : > { %v390_v32 = vmul.f32 %v383_v27, %v339_v30  ;;  %v398_v33 = vmul.f32 %v383_v27, %v359_v31 }
  0xef   : > { %v341_v35 = vpop.f32.mrf.mxu0  ;;  %v361_v36 = vpop.f32.mrf.mxu1 }
  0xf0   : > { %v419_v37 = vadd.f32 %v771_v28, %v390_v32  ;;  %v427_v38 = vadd.f32 %v771_v28, %v398_v33  ;;  %v391_v39 = vmul.f32 %v773_v29, %v341_v35  ;;  %v399_v40 = vmul.f32 %v773_v29, %v361_v36 }
  0xf1   : > { %v343_v41 = vpop.f32.mrf.mxu0  ;;  %v363_v42 = vpop.f32.mrf.mxu1 }
  0xf2   : > { %v420_v43 = vadd.f32 %v775_v34, %v391_v39  ;;  %v428_v44 = vadd.f32 %v775_v34, %v399_v40  ;;  %v435_v45 = vmax.f32 %v419_v37, 0.0  ;;  %v443_v46 = vmax.f32 %v427_v38, 0.0 }
  0xf3   : > { %v392_v47 = vmul.f32 %v383_v27, %v343_v41  ;;  %v400_v48 = vmul.f32 %v383_v27, %v363_v42  ;;  %v345_v49 = vpop.f32.mrf.mxu0  ;;  %v365_v50 = vpop.f32.mrf.mxu1 }
  0xf4   : > { %v436_v51 = vmax.f32 %v420_v43, 0.0  ;;  %v444_v52 = vmax.f32 %v428_v44, 0.0  ;;  %v393_v53 = vmul.f32 %v773_v29, %v345_v49  ;;  %v401_v54 = vmul.f32 %v773_v29, %v365_v50 }
  0xf5   : > { %v421_v55 = vadd.f32 %v771_v28, %v392_v47  ;;  %v429_v56 = vadd.f32 %v771_v28, %v400_v48  ;;  %v349_v57 = vpop.f32.mrf.mxu0  ;;  %v369_v58 = vpop.f32.mrf.mxu1 }
  0xf6   : > { %v607_v59 = vpack.c.bf16 %v436_v51, %v435_v45  ;;  %v611_v60 = vpack.c.bf16 %v444_v52, %v443_v46  ;;  %v422_v61 = vadd.f32 %v775_v34, %v393_v53  ;;  %v430_v62 = vadd.f32 %v775_v34, %v401_v54 }
  0xf7   : > { %v437_v63 = vmax.f32 %v421_v55, 0.0  ;;  %v445_v0 = vmax.f32 %v429_v56, 0.0  ;;  %v394_v1 = vmul.f32 %v383_v27, %v349_v57  ;;  %v402_v2 = vmul.f32 %v383_v27, %v369_v58  ;;  %v351_v3 = vpop.f32.mrf.mxu0  ;;  %v371_v4 = vpop.f32.mrf.mxu1 }
  0xf8   : > { %499 = vst [vmem:[%s789_s16] sm:$0xff] %v607_v59  ;;  %503 = vst [vmem:[%s789_s16 + $0x20] sm:$0xff] %v611_v60  ;;  %v438_v5 = vmax.f32 %v422_v61, 0.0  ;;  %v446_v6 = vmax.f32 %v430_v62, 0.0  ;;  %v395_v7 = vmul.f32 %v773_v29, %v351_v3  ;;  %v403_v8 = vmul.f32 %v773_v29, %v371_v4 }
  0xf9   : > { %v423_v9 = vadd.f32 %v771_v28, %v394_v1  ;;  %v431_v10 = vadd.f32 %v771_v28, %v402_v2  ;;  %v353_v11 = vpop.f32.mrf.mxu0  ;;  %v373_v12 = vpop.f32.mrf.mxu1 }
  0xfa   : > { %v608_v13 = vpack.c.bf16 %v438_v5, %v437_v63  ;;  %v612_v14 = vpack.c.bf16 %v446_v6, %v445_v0  ;;  %v424_v15 = vadd.f32 %v775_v34, %v395_v7  ;;  %v432_v16 = vadd.f32 %v775_v34, %v403_v8 }
  0xfb   : > { %v439_v17 = vmax.f32 %v423_v9, 0.0  ;;  %v447_v18 = vmax.f32 %v431_v10, 0.0  ;;  %v396_v19 = vmul.f32 %v383_v27, %v353_v11  ;;  %v404_v20 = vmul.f32 %v383_v27, %v373_v12  ;;  %v355_v21 = vpop.f32.mrf.mxu0  ;;  %v375_v22 = vpop.f32.mrf.mxu1 }
  0xfc   : > { %500 = vst [vmem:[%s789_s16 + $0x8] sm:$0xff] %v608_v13  ;;  %504 = vst [vmem:[%s789_s16 + $0x28] sm:$0xff] %v612_v14  ;;  %v440_v23 = vmax.f32 %v424_v15, 0.0  ;;  %v448_v24 = vmax.f32 %v432_v16, 0.0  ;;  %v397_v25 = vmul.f32 %v773_v29, %v355_v21  ;;  %v405_v26 = vmul.f32 %v773_v29, %v375_v22 }
  0xfd   : > { %v425_v30 = vadd.f32 %v771_v28, %v396_v19  ;;  %v433_v31 = vadd.f32 %v771_v28, %v404_v20 }
  0xfe   : > { %v609_v32 = vpack.c.bf16 %v440_v23, %v439_v17  ;;  %v613_v33 = vpack.c.bf16 %v448_v24, %v447_v18  ;;  %v426_v27 = vadd.f32 %v775_v34, %v397_v25  ;;  %v434_v35 = vadd.f32 %v775_v34, %v405_v26 }
  0xff   : > { %v441_v36 = vmax.f32 %v425_v30, 0.0  ;;  %v449_v37 = vmax.f32 %v433_v31, 0.0 }
 0x100   : > { %501 = vst [vmem:[%s789_s16 + $0x10] sm:$0xff] %v609_v32  ;;  %505 = vst [vmem:[%s789_s16 + $0x30] sm:$0xff] %v613_v33  ;;  %v442_v38 = vmax.f32 %v426_v27, 0.0  ;;  %v450_v39 = vmax.f32 %v434_v35, 0.0 }
 0x102   : > { %v610_v40 = vpack.c.bf16 %v442_v38, %v441_v36  ;;  %v614_v41 = vpack.c.bf16 %v450_v39, %v449_v37 }
 0x104   : > { %502 = vst [vmem:[%s789_s16 + $0x18] sm:$0xff] %v610_v40  ;;  %506 = vst [vmem:[%s789_s16 + $0x38] sm:$0xff] %v614_v41 }
 0x105 PF: > { %s13_s12 = sadd.s32 1, %s674_s12  }
 0x106   : > { %p10_p4 = scmp.ge.s32.totalorder %s13_s12, 4  }
 0x108   :  { %12 = sbr.rel (!%p10_p4) target bundleno = 1 (0x1), region = 63 }

// kernel: x3d_forward.4
= control target key start
LH: loop header
LB: loop body
LE: loop exit
PB: predicated region body
PF: predicated region fallthrough
CT: control target
= control target key end

     0   :  { %s1196_s18 = smov 0   ;;  %s1392_s0 = inlined_call_operand.vmem [shape: bf16[2,8,9,54], index: 0, kind: input, shape index: {}]   ;;  %s1393_s1 = inlined_call_operand.vmem [shape: bf16[2,8,9,54], index: 1, kind: input, shape index: {}]   ;;  %s1394_s2 = inlined_call_operand.vmem [shape: bf16[3,54,128], index: 2, kind: input, shape index: {}]   ;;  %s1395_s3 = inlined_call_operand.vmem [shape: f32[5,128], index: 3, kind: input, shape index: {}]   ;;  %s1396_s4 = inlined_call_operand.vmem [shape: f32[2,128], index: 4, kind: input, shape index: {}]   ;;  %s1397_s5 = inlined_call_operand.vmem [shape: bf16[2,8,8,128], index: 5, kind: output, shape index: {}]  }
   0x1 LB: > { %s934_s19 = sadd.s32 4294967295, %s1164_s18   ;;  %p938_p0 = scmp.ge.s32.totalorder %s1164_s18, 1  ;;  %s1164_s18 = sphi %s1196_s18, %s15_s18  }
   0x2   : > { %p197_p1 = scmp.lt.s32.totalorder %s1164_s18, 3 }
   0x4   : > { %p198_p2 = pnand %p938_p0, %p197_p1 }
   0x5   : > { %p230_p3 = scmp.lt.s32.totalorder (!%p198_p2), %s934_s19, 1 }
   0x6   : > { %201 = sbr.rel (%p198_p2) target bundleno = 269 (0x10d), region = 40 }
   0xb   : > { %v1146_v0 = vld [vmem:[%s1394_s2 + $0x34] ss:$0 sps:$4 sm:$0x77]   ;;  %vm355_vm0 = vcmask 1042432   ;;  %v1148_v2 = vld [vmem:[%s1394_s2 + $0x2c] sm:$0xff]   ;;  %v1150_v6 = vld [vmem:[%s1394_s2 + $0x24] sm:$0xff]  }
   0xc   : > { %v1147_v1 = vld [vmem:[%s1394_s2 + $0x18] ss:$0 sps:$4 sm:$0x77]   ;;  %1134 = vmatprep.subr.msk.bf16.mxu0 %vm355_vm0, %v1146_v0  ;;  %v357_v3 = vsel %vm355_vm0, %v1146_v0, 0  ;;  %v1149_v4 = vld [vmem:[%s1394_s2 + $0x10] sm:$0xff]   ;;  %v1151_v7 = vld [vmem:[%s1394_s2 + $0x8] sm:$0xff]  }
   0xd   : > { %1135 = vmatprep.subr.msk.bf16.mxu1 %vm355_vm0, %v1147_v1  ;;  %1067 = vmatpush3.bf16.msra.mxu0 %v357_v3  ;;  %v478_v5 = vsel %vm355_vm0, %v1147_v1, 0  ;;  %s1399_s19 = smov (!%p230_p3, %s934_s19), 1  ;;  %v1152_v8 = vld [vmem:[%s1394_s2 + $0x1c] sm:$0xff]   ;;  %vm330_vm1 = vcmask 441344   ;;  %v1155_v22 = vld [vmem:[%s1394_s2 + $0x48] sm:$0xff]   ;;  %vm561_vm2 = vcmask 1046528  }
   0xe   : > { %1087 = vmatpush3.bf16.msra.mxu1 %v478_v5  ;;  %1068 = vmatprep.subr.bf16.mxu0 %v1148_v2  ;;  %v1153_v9 = vld [vmem:[%s1394_s2] sm:$0xff]   ;;  %s1004_s11 = sshll.u32 %s1399_s19, 6  ;;  %v1154_v14 = vld [vmem:[%s1394_s2 + $0x50] ss:$0 sps:$4 sm:$0x77]   ;;  %v1157_v50 = vld [vmem:[%s1394_s2 + $0x38] sm:$0xff]  }
   0xf   : > { %1088 = vmatprep.subr.bf16.mxu1 %v1149_v4  ;;  %s1238_s14 = scalar_lea.vmem %s1392_s0, %s1004_s11  ;;  %s1243_s17 = scalar_lea.vmem %s1393_s1, %s1004_s11  ;;  %v632_v19 = vsel %vm355_vm0, %v1154_v14, 0  ;;  %v1156_v30 = vld [vmem:[%s1394_s2 + $0x40] sm:$0xff]  }
  0x10   : > { %v278_v10 = vld [vmem:[%s1243_s17] ss:$8 sps:$4 sm:$0xff]   ;;  %v280_v15 = vld [vmem:[%s1243_s17 + $0x10] ss:$8 sps:$4 sm:$0xff]   ;;  %v247_v26 = vld [vmem:[%s1238_s14 + $0x4] sm:$0x1] }
  0x11   : > { %1069 = vmatpush3.bf16.msra.mxu0 %v1148_v2  ;;  %v246_v11 = vld [vmem:[%s1238_s14] ss:$8 sps:$4 sm:$0xff]   ;;  %v286_v12 = vunpack.c.l.bf16 %v278_v10  ;;  %v287_v16 = vunpack.c.h.bf16 %v278_v10  ;;  %v1254_v17 = vld [vmem:[%s1238_s14 + $0x10] ss:$8 sps:$4 sm:$0xff]   ;;  %v288_v20 = vunpack.c.l.bf16 %v280_v15  ;;  %v289_v24 = vunpack.c.h.bf16 %v280_v15  ;;  %v255_v28 = vld [vmem:[%s1238_s14 + $0x24] sm:$0x1] }
  0x12   : > { %1089 = vmatpush3.bf16.msra.mxu1 %v1149_v4  ;;  %1070 = vmatprep.subr.bf16.mxu0 %v1150_v6  ;;  %v262_v13 = vunpack.c.l.bf16 %v246_v11  ;;  %v264_v18 = vunpack.c.h.bf16 %v246_v11  ;;  %v266_v21 = vunpack.c.l.bf16 %v1254_v17  ;;  %v282_v23 = vld [vmem:[%s1243_s17 + $0x20] ss:$8 sps:$4 sm:$0xff]   ;;  %v268_v27 = vunpack.c.h.bf16 %v1254_v17  ;;  %v249_v31 = vld [vmem:[%s1238_s14 + $0xc] sm:$0x1]  ;;  %v284_v33 = vld [vmem:[%s1243_s17 + $0x30] ss:$8 sps:$4 sm:$0xff]  }
  0x13   : > { %1090 = vmatprep.subr.bf16.mxu1 %v1151_v7  ;;  %1074 = vmatprep.mubr.msk.f32.mxu0 %vm330_vm1, %v286_v12  ;;  %v254_v25 = vld [vmem:[%s1238_s14 + $0x20] ss:$8 sps:$4 sm:$0xff]   ;;  %v290_v29 = vunpack.c.l.bf16 %v282_v23  ;;  %v263_v34 = vunpack.c.l.bf16 %v247_v26  ;;  %v257_v35 = vld [vmem:[%s1238_s14 + $0x2c] sm:$0x1]  ;;  %v251_v36 = vld [vmem:[%s1238_s14 + $0x14] sm:$0x1]  ;;  %v291_v37 = vunpack.c.h.bf16 %v282_v23  ;;  %v271_v39 = vunpack.c.l.bf16 %v255_v28 }
  0x14   : > { %1094 = vmatprep.mubr.msk.f32.mxu1 %vm330_vm1, %v262_v13  ;;  %v270_v32 = vunpack.c.l.bf16 %v254_v25  ;;  %v258_v38 = vld [vmem:[%s1238_s14 + $0x30] ss:$8 sps:$4 sm:$0xff]   ;;  %v259_v40 = vld [vmem:[%s1238_s14 + $0x34] sm:$0x1]  ;;  %v272_v41 = vunpack.c.h.bf16 %v254_v25  ;;  %v265_v42 = vunpack.c.l.bf16 %v249_v31  ;;  %v562_v43 = vrot.slane %v262_v13, 1  ;;  %s1006_s17 = sshll.u32 %s1399_s19, 5 }
  0x15   : > { %1071 = vmatpush3.bf16.msra.mxu0 %v1150_v6  ;;  %v292_v44 = vunpack.c.l.bf16 %v284_v33  ;;  %v273_v45 = vunpack.c.l.bf16 %v257_v35  ;;  %v267_v46 = vunpack.c.l.bf16 %v251_v36  ;;  %v253_v47 = vld [vmem:[%s1238_s14 + $0x1c] sm:$0x1]  ;;  %v565_v48 = vrot.slane %v264_v18, 1  ;;  %v1324_v28 = vld [vmem:[%s1395_s3 + $0x1] ss:$0 sm:$0xff]  ;;  %s244_s22 = scalar_lea.vmem %s1397_s5, %s1006_s17 }
  0x16   : > { %1091 = vmatpush3.bf16.msra.mxu1 %v1151_v7  ;;  %1072 = vmatprep.subr.bf16.mxu0 %v1152_v8  ;;  %v274_v49 = vunpack.c.l.bf16 %v258_v38  ;;  %v563_v51 = vrot.slane %v263_v34, 1  ;;  %v275_v52 = vunpack.c.l.bf16 %v259_v40  ;;  %v261_v53 = vld [vmem:[%s1238_s14 + $0x3c] sm:$0x1]  ;;  %v293_v54 = vunpack.c.h.bf16 %v284_v33 }
  0x17   : > { %1092 = vmatprep.subr.bf16.mxu1 %v1153_v9  ;;  %v574_v55 = vrot.slane %v270_v32, 1  ;;  %v575_v56 = vrot.slane %v271_v39, 1  ;;  %v577_v57 = vrot.slane %v272_v41, 1  ;;  %v276_v58 = vunpack.c.h.bf16 %v258_v38  ;;  %v1331_v39 = vld [vmem:[%s1395_s3 + $0x3] ss:$0 sm:$0xff] }
  0x18   : > { %v566_v59 = vrot.slane %v265_v42, 1  ;;  %v269_v60 = vunpack.c.l.bf16 %v253_v47  ;;  %v578_v61 = vrot.slane %v273_v45, 1  ;;  %v568_v62 = vrot.slane %v266_v21, 1  ;;  %v997_v42 = vld [vmem:[%s1395_s3 + $0x2] ss:$0 sm:$0xff] }
  0x19   : > { %1073 = vmatpush3.bf16.msra.mxu0 %v1152_v8  ;;  %v569_v63 = vrot.slane %v267_v46, 1  ;;  %v277_v0 = vunpack.c.l.bf16 %v261_v53  ;;  %v564_v1 = vsel %vm561_vm2, %v562_v43, %v563_v51  ;;  %v580_v2 = vrot.slane %v274_v49, 1 }
  0x1a   : > { %1093 = vmatpush3.bf16.msra.mxu1 %v1153_v9  ;;  %1136 = vmatprep.subr.msk.bf16.mxu0 %vm355_vm0, %v1154_v14  ;;  %v581_v3 = vrot.slane %v275_v52, 1  ;;  %v576_v4 = vsel %vm561_vm2, %v574_v55, %v575_v56  ;;  %v567_v5 = vsel %vm561_vm2, %v565_v48, %v566_v59  ;;  %v571_v6 = vrot.slane %v268_v27, 1 }
  0x1b   : > { %1137 = vmatprep.subr.msk.bf16.mxu1 %vm355_vm0, %v1154_v14  ;;  %v572_v7 = vrot.slane %v269_v60, 1  ;;  %v579_v8 = vsel %vm561_vm2, %v577_v57, %v578_v61  ;;  %v570_v9 = vsel %vm561_vm2, %v568_v62, %v569_v63  ;;  %v583_v10 = vrot.slane %v276_v58, 1 }
  0x1c   : > { %1075 = vmatmul.mubr.msk.f32.vlgmr.msra.gmra.mxu0 %vm330_vm1, %v287_v16  ;;  %v584_v11 = vrot.slane %v277_v0, 1  ;;  %v582_v12 = vsel %vm561_vm2, %v580_v2, %v581_v3  ;;  %v739_v33 = vmul.f32 0.0, %v1324_v28  ;;  %v1342_v46 = vmul.f32 0.0, %v1331_v39 }
  0x1d   : > { %1095 = vmatmul.mubr.msk.f32.vlgmr.msra.gmra.mxu1 %vm330_vm1, %v264_v18  ;;  %1107 = vmatpush3.bf16.msra.mxu0 %v632_v19  ;;  %v573_v13 = vsel %vm561_vm2, %v571_v6, %v572_v7 }
  0x1e   : > { %1130 = vmatpush3.bf16.msra.mxu1 %v632_v19  ;;  %1077 = vmatprep.mubr.msk.f32.mxu0 %vm330_vm1, %v288_v20  ;;  %v585_v14 = vsel %vm561_vm2, %v583_v10, %v584_v11 }
  0x1f   : > { %1097 = vmatprep.mubr.msk.f32.mxu1 %vm330_vm1, %v266_v21  ;;  %1108 = vmatprep.subr.bf16.mxu0 %v1155_v22 }
  0x20   : > { %1078 = vmatmul.mubr.msk.f32.gmra.mxu0 %vm330_vm1, %v289_v24  ;;  %1127 = vmatprep.subr.bf16.mxu1 %v1155_v22 }
  0x21   : > { %1098 = vmatmul.mubr.msk.f32.gmra.mxu1 %vm330_vm1, %v268_v27  ;;  %1109 = vmatpush3.bf16.msra.mxu0 %v1155_v22  ;;  %v1319_v27 = vld [vmem:[%s1395_s3] ss:$0 sm:$0xff] }
  0x22   : > { %1131 = vmatpush3.bf16.msra.mxu1 %v1155_v22  ;;  %1080 = vmatprep.mubr.msk.f32.mxu0 %vm330_vm1, %v290_v29 }
  0x23   : > { %1100 = vmatprep.mubr.msk.f32.mxu1 %vm330_vm1, %v270_v32  ;;  %1110 = vmatprep.subr.bf16.mxu0 %v1156_v30  ;;  %v720_v32 = vmul.f32 0.0, %v1319_v27 }
  0x24   : > { %1081 = vmatmul.mubr.msk.f32.gmra.mxu0 %vm330_vm1, %v291_v37  ;;  %1128 = vmatprep.subr.bf16.mxu1 %v1156_v30 }
  0x25   : > { %1101 = vmatmul.mubr.msk.f32.gmra.mxu1 %vm330_vm1, %v272_v41  ;;  %1111 = vmatpush3.bf16.msra.mxu0 %v1156_v30  ;;  %v1336_v41 = vld [vmem:[%s1395_s3 + $0x4] ss:$0 sm:$0xff]  ;;  %v747_v45 = vadd.f32 %v739_v33, %v720_v32 }
  0x26   : > { %1132 = vmatpush3.bf16.msra.mxu1 %v1156_v30  ;;  %1083 = vmatprep.mubr.msk.f32.mxu0 %vm330_vm1, %v292_v44  ;;  %v1345_v47 = vmul.f32 0.0, %v1336_v41 }
  0x27   : > { %1103 = vmatprep.mubr.msk.f32.mxu1 %vm330_vm1, %v274_v49  ;;  %1112 = vmatprep.subr.bf16.mxu0 %v1157_v50 }
  0x28   : > { %1084 = vmatmul.mubr.msk.f32.gmra.mxu0 %vm330_vm1, %v293_v54  ;;  %1129 = vmatprep.subr.bf16.mxu1 %v1157_v50 }
  0x29   : > { %1104 = vmatmul.mubr.msk.f32.gmra.mxu1 %vm330_vm1, %v276_v58  ;;  %1113 = vmatpush3.bf16.msra.mxu0 %v1157_v50 }
  0x2a   : > { %1133 = vmatpush3.bf16.msra.mxu1 %v1157_v50  ;;  %1114 = vmatprep.mubr.msk.f32.mxu0 %vm330_vm1, %v564_v1 }
  0x2b   : > { %1120 = vmatprep.mubr.msk.f32.mxu1 %vm330_vm1, %v576_v4 }
  0x2c   : > { %1115 = vmatmul.mubr.msk.f32.vlgmr.msra.gmra.mxu0 %vm330_vm1, %v567_v5 }
  0x2d   : > { %1121 = vmatmul.mubr.msk.f32.vlgmr.msra.gmra.mxu1 %vm330_vm1, %v579_v8  ;;  %1117 = vmatprep.mubr.msk.f32.mxu0 %vm330_vm1, %v570_v9 }
  0x2e   : > { %1123 = vmatprep.mubr.msk.f32.mxu1 %vm330_vm1, %v582_v12 }
  0x30   : > { %1118 = vmatmul.mubr.msk.f32.gmra.mxu0 %vm330_vm1, %v573_v13 }
  0x31   : > { %1124 = vmatmul.mubr.msk.f32.gmra.mxu1 %vm330_vm1, %v585_v14 }
  0xdc   : > { %v1076_v15 = vpop.f32.mrf.mxu0 }
  0xdd   : > { %v1096_v16 = vpop.f32.mrf.mxu1 }
  0xde   : > { %v393_v17 = vpop.f32.mrf.mxu0  ;;  %v520_v34 = vadd.f32 %v1096_v16, %v1076_v15 }
  0xdf   : > { %v514_v18 = vpop.f32.mrf.mxu1 }
  0xe0   : > { %v1079_v19 = vpop.f32.mrf.mxu0  ;;  %v515_v48 = vadd.f32 %v514_v18, %v393_v17 }
  0xe1   : > { %v1099_v20 = vpop.f32.mrf.mxu1 }
  0xe2   : > { %v403_v21 = vpop.f32.mrf.mxu0  ;;  %v530_v49 = vadd.f32 %v1099_v20, %v1079_v19 }
  0xe3   : > { %v524_v22 = vpop.f32.mrf.mxu1 }
  0xe4   : > { %v1082_v23 = vpop.f32.mrf.mxu0  ;;  %v525_v50 = vadd.f32 %v524_v22, %v403_v21 }
  0xe5   : > { %v1102_v24 = vpop.f32.mrf.mxu1 }
  0xe6   : > { %v413_v25 = vpop.f32.mrf.mxu0  ;;  %v540_v36 = vadd.f32 %v1102_v24, %v1082_v23 }
  0xe7   : > { %v534_v26 = vpop.f32.mrf.mxu1 }
  0xe8   : > { %v1085_v29 = vpop.f32.mrf.mxu0  ;;  %v535_v51 = vadd.f32 %v534_v26, %v413_v25 }
  0xe9   : > { %v1105_v30 = vpop.f32.mrf.mxu1 }
  0xea   : > { %v423_v31 = vpop.f32.mrf.mxu0  ;;  %v550_v53 = vadd.f32 %v1105_v30, %v1085_v29 }
  0xeb   : > { %v544_v35 = vpop.f32.mrf.mxu1 }
  0xec   : > { %v1116_v37 = vpop.f32.mrf.mxu0  ;;  %v545_v54 = vadd.f32 %v544_v35, %v423_v31 }
  0xed   : > { %v708_v38 = vadd.f32 %v1116_v37, %v520_v34  ;;  %v1122_v40 = vpop.f32.mrf.mxu1 }
  0xee   : > { %v712_v43 = vadd.f32 %v1122_v40, %v540_v36  ;;  %v668_v44 = vpop.f32.mrf.mxu0 }
  0xef   : > { %v688_v52 = vpop.f32.mrf.mxu1  ;;  %v722_v55 = vmul.f32 %v1319_v27, %v708_v38  ;;  %v741_v56 = vmul.f32 %v1324_v28, %v708_v38  ;;  %v761_v58 = vmul.f32 %v997_v42, %v708_v38  ;;  %v707_v59 = vadd.f32 %v668_v44, %v515_v48 }
  0xf0   : > { %v1119_v57 = vpop.f32.mrf.mxu0  ;;  %v711_v60 = vadd.f32 %v688_v52, %v535_v51  ;;  %v781_v63 = vmul.f32 %v1331_v39, %v708_v38  ;;  %v745_v0 = vmul.f32 %v1324_v28, %v712_v43  ;;  %v765_v1 = vmul.f32 %v997_v42, %v712_v43  ;;  %v1000_v52 = vld [vmem:[%s1396_s4] ss:$0 sm:$0xff] }
  0xf1   : > { %v710_v61 = vadd.f32 %v1119_v57, %v530_v49  ;;  %v1125_v62 = vpop.f32.mrf.mxu1  ;;  %v785_v2 = vmul.f32 %v1331_v39, %v712_v43  ;;  %v1353_v3 = vmul.f32 %v1336_v41, %v712_v43  ;;  %v721_v4 = vmul.f32 %v1319_v27, %v707_v59 }
  0xf2   : > { %v740_v5 = vmul.f32 %v1324_v28, %v707_v59  ;;  %v760_v6 = vmul.f32 %v997_v42, %v707_v59  ;;  %v725_v7 = vmul.f32 %v1319_v27, %v711_v60  ;;  %v744_v8 = vmul.f32 %v1324_v28, %v711_v60  ;;  %v678_v15 = vpop.f32.mrf.mxu0 }
  0xf3   : > { %v714_v9 = vadd.f32 %v1125_v62, %v550_v53  ;;  %v726_v10 = vmul.f32 %v1319_v27, %v712_v43  ;;  %v764_v13 = vmul.f32 %v997_v42, %v711_v60  ;;  %v724_v14 = vmul.f32 %v1319_v27, %v710_v61  ;;  %v698_v16 = vpop.f32.mrf.mxu1 }
  0xf4   : > { %v748_v11 = vadd.f32 %v740_v5, %v720_v32  ;;  %v768_v12 = vadd.f32 %v760_v6, %v747_v45  ;;  %v749_v17 = vadd.f32 %v741_v56, %v721_v4  ;;  %v784_v18 = vmul.f32 %v1331_v39, %v711_v60 }
  0xf5   : > { %v804_v19 = vmul.f32 %v1336_v41, %v711_v60  ;;  %v743_v20 = vmul.f32 %v1324_v28, %v710_v61  ;;  %v763_v22 = vmul.f32 %v997_v42, %v710_v61  ;;  %v783_v23 = vmul.f32 %v1331_v39, %v710_v61 }
  0xf6   : > { %v769_v21 = vadd.f32 %v761_v58, %v748_v11  ;;  %v803_v24 = vmul.f32 %v1336_v41, %v710_v61  ;;  %v789_v25 = vadd.f32 %v781_v63, %v768_v12  ;;  %v709_v26 = vadd.f32 %v678_v15, %v525_v50 }
  0xf7   : > { %v713_v29 = vadd.f32 %v698_v16, %v545_v54  ;;  %v752_v30 = vadd.f32 %v744_v8, %v724_v14  ;;  %v767_v31 = vmul.f32 %v997_v42, %v714_v9  ;;  %v787_v32 = vmul.f32 %v1331_v39, %v714_v9 }
  0xf8   : > { %v807_v33 = vmul.f32 %v1336_v41, %v714_v9  ;;  %v753_v34 = vadd.f32 %v745_v0, %v725_v7  ;;  %v723_v35 = vmul.f32 %v1319_v27, %v709_v26  ;;  %v742_v36 = vmul.f32 %v1324_v28, %v709_v26 }
  0xf9   : > { %v762_v37 = vmul.f32 %v997_v42, %v709_v26  ;;  %v782_v38 = vmul.f32 %v1331_v39, %v709_v26  ;;  %v802_v40 = vmul.f32 %v1336_v41, %v709_v26  ;;  %v746_v43 = vmul.f32 %v1324_v28, %v713_v29  ;;  %v1001_v28 = vld [vmem:[%s1396_s4 + $0x1] ss:$0 sm:$0xff] }
  0xfa   : > { %v766_v44 = vmul.f32 %v997_v42, %v713_v29  ;;  %v773_v45 = vadd.f32 %v765_v1, %v752_v30  ;;  %v750_v48 = vadd.f32 %v742_v36, %v722_v55  ;;  %v751_v49 = vadd.f32 %v743_v20, %v723_v35 }
  0xfb   : > { %v770_v50 = vadd.f32 %v762_v37, %v749_v17  ;;  %v790_v51 = vadd.f32 %v782_v38, %v769_v21  ;;  %v809_v27 = vadd.f32 %v802_v40, %v789_v25  ;;  %v754_v53 = vadd.f32 %v746_v43, %v726_v10 }
  0xfc   : > { %v774_v54 = vadd.f32 %v766_v44, %v753_v34  ;;  %v786_v56 = vmul.f32 %v1331_v39, %v713_v29  ;;  %v771_v57 = vadd.f32 %v763_v22, %v750_v48  ;;  %v772_v42 = vadd.f32 %v764_v13, %v751_v49 }
  0xfd   : > { %v791_v58 = vadd.f32 %v783_v23, %v770_v50  ;;  %v810_v59 = vadd.f32 %v803_v24, %v790_v51  ;;  %v822_v55 = vmul.f32 %v1000_v52, %v809_v27  ;;  %v775_v60 = vadd.f32 %v767_v31, %v754_v53 }
  0xfe   : > { %v794_v61 = vadd.f32 %v786_v56, %v773_v45  ;;  %v795_v62 = vadd.f32 %v787_v32, %v774_v54  ;;  %v792_v63 = vadd.f32 %v784_v18, %v771_v57  ;;  %v793_v4 = vadd.f32 %v785_v2, %v772_v42 }
  0xff   : > { %v811_v0 = vadd.f32 %v804_v19, %v791_v58  ;;  %v823_v1 = vmul.f32 %v1000_v52, %v810_v59  ;;  %v835_v5 = vadd.f32 %v1001_v28, %v822_v55  ;;  %v796_v39 = vadd.f32 %v1342_v46, %v775_v60 }
 0x100   : > { %v806_v6 = vmul.f32 %v1336_v41, %v713_v29  ;;  %v814_v7 = vadd.f32 %v807_v33, %v794_v61  ;;  %v812_v8 = vadd.f32 %v1353_v3, %v792_v63  ;;  %v815_v11 = vadd.f32 %v1345_v47, %v795_v62 }
 0x101   : > { %v824_v9 = vmul.f32 %v1000_v52, %v811_v0  ;;  %v836_v10 = vadd.f32 %v1001_v28, %v823_v1  ;;  %v843_v12 = vmax.f32 %v835_v5, 0.0  ;;  %v816_v14 = vadd.f32 %v1345_v47, %v796_v39 }
 0x102   : > { %v813_v13 = vadd.f32 %v806_v6, %v793_v4  ;;  %v827_v15 = vmul.f32 %v1000_v52, %v814_v7  ;;  %v825_v16 = vmul.f32 %v1000_v52, %v812_v8  ;;  %v828_v18 = vmul.f32 %v1000_v52, %v815_v11 }
 0x103   : > { %v837_v2 = vadd.f32 %v1001_v28, %v824_v9  ;;  %v844_v17 = vmax.f32 %v836_v10, 0.0  ;;  %v829_v46 = vmul.f32 %v1000_v52, %v816_v14 }
 0x104   : > { %v826_v41 = vmul.f32 %v1000_v52, %v813_v13  ;;  %v840_v3 = vadd.f32 %v1001_v28, %v827_v15  ;;  %v838_v19 = vadd.f32 %v1001_v28, %v825_v16  ;;  %v841_v21 = vadd.f32 %v1001_v28, %v828_v18 }
 0x105   : > { %v1010_v20 = vpack.c.bf16 %v844_v17, %v843_v12  ;;  %v842_v23 = vadd.f32 %v1001_v28, %v829_v46  ;;  %v845_v24 = vmax.f32 %v837_v2, 0.0 }
 0x106   : > { %v839_v22 = vadd.f32 %v1001_v28, %v826_v41  ;;  %v846_v25 = vmax.f32 %v838_v19, 0.0  ;;  %v848_v26 = vmax.f32 %v840_v3, 0.0  ;;  %v849_v29 = vmax.f32 %v841_v21, 0.0 }
 0x107   : > { %1011 = vst [vmem:[%s244_s22] sm:$0xff] %v1010_v20   ;;  %v850_v30 = vmax.f32 %v842_v23, 0.0 }
 0x108   : > { %v847_v47 = vmax.f32 %v839_v22, 0.0  ;;  %v1015_v31 = vpack.c.bf16 %v846_v25, %v845_v24 }
 0x109   : > { %v1025_v33 = vpack.c.bf16 %v850_v30, %v849_v29 }
 0x10a   : > { %v1020_v32 = vpack.c.bf16 %v848_v26, %v847_v47  ;;  %1027 = vst [vmem:[%s244_s22 + $0x8] sm:$0xff] %v1015_v31  }
 0x10b   : > { %1029 = vst [vmem:[%s244_s22 + $0x18] sm:$0xff] %v1025_v33  }
 0x10c   : > { %1028 = vst [vmem:[%s244_s22 + $0x10] sm:$0xff] %v1020_v32  }
 0x10d PF: > { %s15_s18 = sadd.s32 1, %s1164_s18  }
 0x10e   : > { %p12_p4 = scmp.ge.s32.totalorder %s15_s18, 4  }
 0x110   :  { %14 = sbr.rel (!%p12_p4) target bundleno = 1 (0x1), region = 75 }

// kernel: x3d_forward.7
= control target key start
LH: loop header
LB: loop body
LE: loop exit
PB: predicated region body
PF: predicated region fallthrough
CT: control target
= control target key end

     0   :  { %s858_s15 = smov 0   ;;  %s956_s0 = inlined_call_operand.vmem [shape: bf16[128,256], index: 0, kind: input, shape index: {}]   ;;  %s957_s1 = inlined_call_operand.vmem [shape: bf16[256,128], index: 1, kind: input, shape index: {}]   ;;  %s958_s2 = inlined_call_operand.vmem [shape: f32[2,128], index: 2, kind: input, shape index: {}]   ;;  %s959_s3 = inlined_call_operand.vmem [shape: bf16[128,128], index: 3, kind: input, shape index: {}]   ;;  %s960_s4 = inlined_call_operand.vmem [shape: bf16[128,128], index: 4, kind: output, shape index: {}]  }
   0x1 LB: > { %s634_s16 = sadd.s32 4294967295, %s831_s15   ;;  %p638_p0 = scmp.ge.s32.totalorder %s831_s15, 1  ;;  %s831_s15 = sphi %s858_s15, %s14_s15  }
   0x2   : > { %p175_p1 = scmp.lt.s32.totalorder %s831_s15, 3 }
   0x4   : > { %p176_p2 = pnand %p638_p0, %p175_p1 }
   0x5   : > { %s639_s19 = sshll.u32 (!%p176_p2), %s634_s16, 3 }
   0x6   : > { %179 = sbr.rel (%p176_p2) target bundleno = 264 (0x108), region = 36  ;;  %p208_p3 = scmp.lt.s32.totalorder (!%p176_p2), %s639_s19, 15 }
   0xb   : > { %v797_v0 = vld [vmem:[%s957_s1 + $0x78] sm:$0xff]   ;;  %v799_v2 = vld [vmem:[%s957_s1 + $0x70] sm:$0xff]   ;;  %v801_v4 = vld [vmem:[%s957_s1 + $0x68] sm:$0xff]   ;;  %s962_s19 = smov (!%p208_p3, %s639_s19), 15 }
   0xc   : > { %v798_v1 = vld [vmem:[%s957_s1 + $0x38] sm:$0xff]   ;;  %733 = vmatprep.subr.bf16.mxu0 %v797_v0  ;;  %773 = vmatprep.subr.bf16.mxu1 %v797_v0  ;;  %v800_v3 = vld [vmem:[%s957_s1 + $0x30] sm:$0xff]   ;;  %v802_v5 = vld [vmem:[%s957_s1 + $0x28] sm:$0xff]   ;;  %s682_s8 = sshll.u32 %s962_s19, 3  ;;  %s643_s30 = sshll.u32 %s962_s19, 2 }
   0xd   : > { %734 = vmatpush3.bf16.msra.mxu0 %v798_v1  ;;  %781 = vmatpush3.bf16.msra.mxu1 %v798_v1  ;;  %v803_v6 = vld [vmem:[%s957_s1 + $0x60] sm:$0xff]   ;;  %v805_v8 = vld [vmem:[%s957_s1 + $0x58] sm:$0xff]   ;;  %s899_s13 = scalar_lea.vmem %s956_s0, %s682_s8  ;;  %v807_v10 = vld [vmem:[%s957_s1 + $0x50] sm:$0xff]   ;;  %s936_s7 = scalar_lea.vmem %s959_s3, %s643_s30 }
   0xe   : > { %735 = vmatprep.subr.bf16.mxu0 %v799_v2  ;;  %774 = vmatprep.subr.bf16.mxu1 %v799_v2  ;;  %v804_v7 = vld [vmem:[%s957_s1 + $0x20] sm:$0xff]   ;;  %v806_v9 = vld [vmem:[%s957_s1 + $0x18] sm:$0xff]   ;;  %v808_v13 = vld [vmem:[%s957_s1 + $0x10] sm:$0xff]   ;;  %s224_s14 = scalar_lea.vmem %s960_s4, %s643_s30 }
   0xf   : > { %v815_v11 = vld [vmem:[%s899_s13 + $0x4] ss:$8 sps:$4 sm:$0xff]   ;;  %v813_v18 = vld [vmem:[%s899_s13] ss:$8 sps:$4 sm:$0xff]   ;;  %v819_v20 = vld [vmem:[%s899_s13 + $0x14] ss:$8 sps:$4 sm:$0xff]  }
  0x10   : > { %v818_v12 = vld [vmem:[%s899_s13 + $0x24] ss:$8 sps:$4 sm:$0xff]   ;;  %435 = vmatprep.mubr.bf16.mxu0 %v815_v11  ;;  %v816_v19 = vld [vmem:[%s899_s13 + $0x20] ss:$8 sps:$4 sm:$0xff]   ;;  %v821_v21 = vld [vmem:[%s899_s13 + $0x34] ss:$8 sps:$4 sm:$0xff]  }
  0x11   : > { %736 = vmatpush3.bf16.msra.mxu0 %v800_v3  ;;  %782 = vmatpush3.bf16.msra.mxu1 %v800_v3  ;;  %v809_v14 = vld [vmem:[%s957_s1 + $0x48] sm:$0xff]   ;;  %v811_v16 = vld [vmem:[%s957_s1 + $0x40] sm:$0xff]   ;;  %v823_v22 = vld [vmem:[%s899_s13 + $0x10] ss:$8 sps:$4 sm:$0xff]  }
  0x12   : > { %737 = vmatprep.subr.bf16.mxu0 %v801_v4  ;;  %775 = vmatprep.subr.bf16.mxu1 %v801_v4  ;;  %v810_v15 = vld [vmem:[%s957_s1 + $0x8] sm:$0xff]   ;;  %v812_v17 = vld [vmem:[%s957_s1] sm:$0xff]   ;;  %v824_v23 = vld [vmem:[%s899_s13 + $0x30] ss:$8 sps:$4 sm:$0xff]  }
  0x13   : > { %451 = vmatprep.mubr.bf16.mxu1 %v818_v12  ;;  %v670_v27 = vld [vmem:[%s958_s2] ss:$0 sm:$0xff]  ;;  %v728_v32 = vld [vmem:[%s936_s7 + $0x10] sm:$0xff]   ;;  %v671_v33 = vld [vmem:[%s958_s2 + $0x1] ss:$0 sm:$0xff] }
  0x14   : > { %v692_v30 = vld [vmem:[%s936_s7] sm:$0xff]   ;;  %v701_v39 = vunpack.c.l.bf16 %v728_v32  ;;  %v702_v51 = vunpack.c.h.bf16 %v728_v32  ;;  %v727_v55 = vld [vmem:[%s936_s7 + $0x8] sm:$0xff]   ;;  %v729_v57 = vld [vmem:[%s936_s7 + $0x18] sm:$0xff]  }
  0x15   : > { %738 = vmatpush3.bf16.msra.mxu0 %v802_v5  ;;  %783 = vmatpush3.bf16.msra.mxu1 %v802_v5  ;;  %v693_v38 = vunpack.c.l.bf16 %v692_v30  ;;  %v694_v49 = vunpack.c.h.bf16 %v692_v30  ;;  %v697_v2 = vunpack.c.l.bf16 %v727_v55  ;;  %v705_v3 = vunpack.c.l.bf16 %v729_v57 }
  0x16   : > { %739 = vmatprep.subr.bf16.mxu0 %v803_v6  ;;  %776 = vmatprep.subr.bf16.mxu1 %v803_v6 }
  0x19   : > { %740 = vmatpush3.bf16.msra.mxu0 %v804_v7  ;;  %784 = vmatpush3.bf16.msra.mxu1 %v804_v7 }
  0x1a   : > { %741 = vmatprep.subr.bf16.mxu0 %v805_v8  ;;  %777 = vmatprep.subr.bf16.mxu1 %v805_v8 }
  0x1d   : > { %742 = vmatpush3.bf16.msra.mxu0 %v806_v9  ;;  %785 = vmatpush3.bf16.msra.mxu1 %v806_v9 }
  0x1e   : > { %743 = vmatprep.subr.bf16.mxu0 %v807_v10  ;;  %778 = vmatprep.subr.bf16.mxu1 %v807_v10 }
  0x21   : > { %744 = vmatpush3.bf16.msra.mxu0 %v808_v13  ;;  %786 = vmatpush3.bf16.msra.mxu1 %v808_v13 }
  0x22   : > { %745 = vmatprep.subr.bf16.mxu0 %v809_v14  ;;  %779 = vmatprep.subr.bf16.mxu1 %v809_v14 }
  0x25   : > { %746 = vmatpush3.bf16.msra.mxu0 %v810_v15  ;;  %787 = vmatpush3.bf16.msra.mxu1 %v810_v15 }
  0x26   : > { %747 = vmatprep.subr.bf16.mxu0 %v811_v16  ;;  %780 = vmatprep.subr.bf16.mxu1 %v811_v16  ;;  %v698_v16 = vunpack.c.h.bf16 %v727_v55 }
  0x29   : > { %748 = vmatpush3.bf16.msra.mxu0 %v812_v17  ;;  %788 = vmatpush3.bf16.msra.mxu1 %v812_v17  ;;  %v706_v17 = vunpack.c.h.bf16 %v729_v57 }
  0x2c   : > { %436 = vmatmul.mubr.bf16.vlgmr.msra.gmra.mxu0 %v813_v18  ;;  %452 = vmatmul.mubr.bf16.vlgmr.msra.gmra.mxu1 %v816_v19 }
  0x2d   : > { %443 = vmatprep.mubr.bf16.mxu0 %v819_v20  ;;  %459 = vmatprep.mubr.bf16.mxu1 %v821_v21 }
  0x34   : > { %444 = vmatmul.mubr.bf16.gmra.mxu0 %v823_v22  ;;  %460 = vmatmul.mubr.bf16.gmra.mxu1 %v824_v23 }
  0xec   : > { %v749_v24 = vpop.f32.mrf.mxu0  ;;  %v761_v25 = vpop.f32.mrf.mxu1 }
  0xee   : > { %v750_v26 = vpop.f32.mrf.mxu0  ;;  %v762_v28 = vpop.f32.mrf.mxu1 }
  0xef   : > { %v751_v29 = vadd.f32 %v750_v26, %v749_v24  ;;  %v763_v31 = vadd.f32 %v762_v28, %v761_v25 }
  0xf0   : > { %v752_v34 = vpop.f32.mrf.mxu0  ;;  %v764_v35 = vpop.f32.mrf.mxu1 }
  0xf1   : > { %v473_v36 = vmul.f32 %v751_v29, %v670_v27  ;;  %v477_v37 = vmul.f32 %v763_v31, %v670_v27 }
  0xf2   : > { %v753_v40 = vpop.f32.mrf.mxu0  ;;  %v765_v41 = vpop.f32.mrf.mxu1 }
  0xf3   : > { %v486_v42 = vadd.f32 %v671_v33, %v473_v36  ;;  %v490_v43 = vadd.f32 %v671_v33, %v477_v37  ;;  %v754_v44 = vadd.f32 %v753_v40, %v752_v34  ;;  %v766_v45 = vadd.f32 %v765_v41, %v764_v35 }
  0xf4   : > { %v755_v46 = vpop.f32.mrf.mxu0  ;;  %v767_v47 = vpop.f32.mrf.mxu1 }
  0xf5   : > { %v474_v48 = vmul.f32 %v754_v44, %v670_v27  ;;  %v478_v50 = vmul.f32 %v766_v45, %v670_v27  ;;  %v510_v52 = vadd.f32 %v693_v38, %v486_v42  ;;  %v514_v53 = vadd.f32 %v701_v39, %v490_v43 }
  0xf6   : > { %v756_v54 = vpop.f32.mrf.mxu0  ;;  %v768_v56 = vpop.f32.mrf.mxu1 }
  0xf7   : > { %v487_v58 = vadd.f32 %v671_v33, %v474_v48  ;;  %v491_v59 = vadd.f32 %v671_v33, %v478_v50  ;;  %v757_v60 = vadd.f32 %v756_v54, %v755_v46  ;;  %v769_v61 = vadd.f32 %v768_v56, %v767_v47 }
  0xf8   : > { %v758_v62 = vpop.f32.mrf.mxu0  ;;  %v770_v63 = vpop.f32.mrf.mxu1  ;;  %v518_v4 = vmax.f32 %v510_v52, 0.0  ;;  %v522_v5 = vmax.f32 %v514_v53, 0.0 }
  0xf9   : > { %v511_v0 = vadd.f32 %v694_v49, %v487_v58  ;;  %v515_v1 = vadd.f32 %v702_v51, %v491_v59  ;;  %v475_v6 = vmul.f32 %v757_v60, %v670_v27  ;;  %v479_v7 = vmul.f32 %v769_v61, %v670_v27 }
  0xfa   : > { %v759_v8 = vpop.f32.mrf.mxu0  ;;  %v771_v9 = vpop.f32.mrf.mxu1 }
  0xfb   : > { %v519_v10 = vmax.f32 %v511_v0, 0.0  ;;  %v523_v11 = vmax.f32 %v515_v1, 0.0  ;;  %v760_v12 = vadd.f32 %v759_v8, %v758_v62  ;;  %v772_v13 = vadd.f32 %v771_v9, %v770_v63 }
  0xfc   : > { %v488_v14 = vadd.f32 %v671_v33, %v475_v6  ;;  %v492_v15 = vadd.f32 %v671_v33, %v479_v7 }
  0xfd   : > { %v710_v18 = vpack.c.bf16 %v519_v10, %v518_v4  ;;  %v720_v19 = vpack.c.bf16 %v523_v11, %v522_v5  ;;  %v476_v20 = vmul.f32 %v760_v12, %v670_v27  ;;  %v480_v21 = vmul.f32 %v772_v13, %v670_v27 }
  0xfe   : > { %v512_v22 = vadd.f32 %v697_v2, %v488_v14  ;;  %v516_v23 = vadd.f32 %v705_v3, %v492_v15 }
  0xff   : > { %711 = vst [vmem:[%s224_s14] sm:$0xff] %v710_v18   ;;  %731 = vst [vmem:[%s224_s14 + $0x10] sm:$0xff] %v720_v19   ;;  %v489_v24 = vadd.f32 %v671_v33, %v476_v20  ;;  %v493_v25 = vadd.f32 %v671_v33, %v480_v21 }
 0x100   : > { %v520_v29 = vmax.f32 %v512_v22, 0.0  ;;  %v524_v30 = vmax.f32 %v516_v23, 0.0 }
 0x101   : > { %v513_v26 = vadd.f32 %v698_v16, %v489_v24  ;;  %v517_v28 = vadd.f32 %v706_v17, %v493_v25 }
 0x103   : > { %v521_v31 = vmax.f32 %v513_v26, 0.0  ;;  %v525_v32 = vmax.f32 %v517_v28, 0.0 }
 0x105   : > { %v715_v34 = vpack.c.bf16 %v521_v31, %v520_v29  ;;  %v725_v35 = vpack.c.bf16 %v525_v32, %v524_v30 }
 0x107   : > { %730 = vst [vmem:[%s224_s14 + $0x8] sm:$0xff] %v715_v34   ;;  %732 = vst [vmem:[%s224_s14 + $0x18] sm:$0xff] %v725_v35  }
 0x108 PF: > { %s14_s15 = sadd.s32 1, %s831_s15  }
 0x109   : > { %p11_p4 = scmp.ge.s32.totalorder %s14_s15, 4  }
 0x10b   :  { %13 = sbr.rel (!%p11_p4) target bundleno = 1 (0x1), region = 69 }

// kernel: x3d_forward.6
= control target key start
LH: loop header
LB: loop body
LE: loop exit
PB: predicated region body
PF: predicated region fallthrough
CT: control target
= control target key end

     0   :  { %s6747_s30 = smov 0   ;;  %s9569_s0 = inlined_call_operand.vmem [shape: bf16[2,10,10,320], index: 0, kind: input, shape index: {}]   ;;  %s9570_s1 = inlined_call_operand.vmem [shape: bf16[9,320,256], index: 1, kind: input, shape index: {}]   ;;  %s9571_s2 = inlined_call_operand.vmem [shape: f32[2,256], index: 2, kind: input, shape index: {}]   ;;  %s9572_s3 = inlined_call_operand.vmem [shape: f32[256,32], index: 3, kind: input, shape index: {}]   ;;  %s9573_s4 = inlined_call_operand.vmem [shape: f32[32,8], index: 4, kind: input, shape index: {}]   ;;  %s9574_s5 = inlined_call_operand.vmem [shape: f32[1,8], index: 5, kind: input, shape index: {}]   ;;  %s9575_s6 = inlined_call_operand.vmem [shape: f32[8,32], index: 6, kind: input, shape index: {}]   ;;  %s9576_s7 = inlined_call_operand.vmem [shape: f32[1,32], index: 7, kind: input, shape index: {}]   ;;  %s9577_s8 = inlined_call_operand.vmem [shape: f32[32,256], index: 8, kind: input, shape index: {}]   ;;  %s9578_s9 = inlined_call_operand.vmem [shape: bf16[2,8,8,256], index: 9, kind: output, shape index: {}]  }
   0x1 LB: > { %s5210_s10 = sadd.s32 4294967295, %s6693_s30   ;;  %p5214_p0 = scmp.ge.s32.totalorder %s6693_s30, 1  ;;  %s6693_s30 = sphi %s6747_s30, %s19_s30  }
   0x2   : > { %p287_p1 = scmp.lt.s32.totalorder %s6693_s30, 3 }
   0x4   : > { %p288_p2 = pnand %p5214_p0, %p287_p1 }
   0x6   : > { %291 = sbr.rel (%p288_p2) target bundleno = 1563 (0x61b), region = 56 }
   0xb   : > { %v6079_v0 = vld [vmem:[%s9570_s1 + $0x1b4] ss:$8 sps:$4 sm:$0xff]   ;;  %p323_p3 = scmp.lt.s32.totalorder %s5210_s10, 1  ;;  %v9593_v2 = vmov 0.0   ;;  %v6083_v3 = vld [vmem:[%s9570_s1 + $0x1b0] ss:$8 sps:$4 sm:$0xff]  }
   0xc   : > { %v6081_v1 = vld [vmem:[%s9570_s1 + $0x274] ss:$8 sps:$4 sm:$0xff]   ;;  %982 = vmatprep.mubr.f32.mxu1 %v9593_v2  ;;  %869 = vmatprep.subr.bf16.mxu0 %v6079_v0  ;;  %v6084_v4 = vld [vmem:[%s9570_s1 + $0x270] ss:$8 sps:$4 sm:$0xff]   ;;  %v6085_v5 = vld [vmem:[%s9570_s1 + $0x1a4] ss:$8 sps:$4 sm:$0xff]  }
   0xd   : > { %s9858_s10 = smov (!%p323_p3, %s5210_s10), 1  ;;  %958 = vmatprep.subr.bf16.mxu1 %v6081_v1  ;;  %870 = vmatpush1.bf16.msra.mxu0 %v6083_v3  ;;  %v6087_v6 = vld [vmem:[%s9570_s1 + $0x264] ss:$8 sps:$4 sm:$0xff]   ;;  %v6089_v7 = vld [vmem:[%s9570_s1 + $0x1a0] ss:$8 sps:$4 sm:$0xff]   ;;  %vm522_vm0 = vcmask 1046528  }
   0xe   : > { %959 = vmatpush1.bf16.msra.mxu1 %v6084_v4  ;;  %s6068_s25 = smul.u32 240, %s9858_s10  ;;  %871 = vmatprep.subr.bf16.mxu0 %v6085_v5  ;;  %v6090_v8 = vld [vmem:[%s9570_s1 + $0x260] ss:$8 sps:$4 sm:$0xff]   ;;  %v6091_v9 = vld [vmem:[%s9570_s1 + $0x194] ss:$8 sps:$4 sm:$0xff]   ;;  %vm852_vm1 = vcmask 523264  }
   0xf   : > { %960 = vmatprep.subr.bf16.mxu1 %v6087_v6  ;;  %v6093_v10 = vld [vmem:[%s9570_s1 + $0x254] ss:$8 sps:$4 sm:$0xff]   ;;  %v6095_v11 = vld [vmem:[%s9570_s1 + $0x190] ss:$8 sps:$4 sm:$0xff]   ;;  %v6097_v13 = vld [vmem:[%s9570_s1 + $0x184] ss:$8 sps:$4 sm:$0xff]  }
  0x10   : > { %v6096_v12 = vld [vmem:[%s9570_s1 + $0x250] ss:$8 sps:$4 sm:$0xff]   ;;  %s6801_s21 = scalar_lea.vmem %s9569_s0, %s6068_s25  ;;  %v6099_v14 = vld [vmem:[%s9570_s1 + $0x244] ss:$8 sps:$4 sm:$0xff]   ;;  %v6101_v15 = vld [vmem:[%s9570_s1 + $0x180] ss:$8 sps:$4 sm:$0xff]  }
  0x11   : > { %872 = vmatpush1.bf16.msra.mxu0 %v6089_v7  ;;  %v6102_v16 = vld [vmem:[%s9570_s1 + $0x240] ss:$8 sps:$4 sm:$0xff]   ;;  %v6814_v18 = vld [vmem:[%s6801_s21 + $0x14] sm:$0x1]  ;;  %v6105_v25 = vld [vmem:[%s9570_s1 + $0x70] ss:$8 sps:$4 sm:$0xff]  }
  0x12   : > { %961 = vmatpush1.bf16.msra.mxu1 %v6090_v8  ;;  %873 = vmatprep.subr.bf16.mxu0 %v6091_v9  ;;  %v335_v17 = vld [vmem:[%s6801_s21 + $0x8] ss:$24 sps:$4 sm:$0xff]   ;;  %v6103_v20 = vld [vmem:[%s9570_s1 + $0x174] ss:$8 sps:$4 sm:$0xff]   ;;  %v9591_v21 = vunpack.c.l.bf16 %v6814_v18  ;;  %v6108_v26 = vld [vmem:[%s9570_s1 + $0x170] ss:$8 sps:$4 sm:$0xff]  }
  0x13   : > { %962 = vmatprep.subr.bf16.mxu1 %v6093_v10  ;;  %v6816_v19 = vunpack.c.l.bf16 %v335_v17  ;;  %v6107_v22 = vld [vmem:[%s9570_s1 + $0x74] ss:$8 sps:$4 sm:$0xff]   ;;  %v6109_v27 = vld [vmem:[%s9570_s1 + $0x164] ss:$8 sps:$4 sm:$0xff]   ;;  %v6111_v30 = vld [vmem:[%s9570_s1 + $0x60] ss:$8 sps:$4 sm:$0xff]   ;;  %v6888_v45 = vunpack.c.h.bf16 %v335_v17 }
  0x14   : > { %v530_v24 = vrot.slane %v9591_v21, 1  ;;  %v6113_v29 = vld [vmem:[%s9570_s1 + $0x64] ss:$8 sps:$4 sm:$0xff]   ;;  %v6114_v31 = vld [vmem:[%s9570_s1 + $0x160] ss:$8 sps:$4 sm:$0xff]   ;;  %vm1409_vm2 = vcmask 1045504  }
  0x15   : > { %874 = vmatpush1.bf16.msra.mxu0 %v6095_v11  ;;  %v529_v23 = vrot.slane %v6816_v19, 1  ;;  %v6115_v32 = vld [vmem:[%s9570_s1 + $0x154] ss:$8 sps:$4 sm:$0xff]   ;;  %v6117_v34 = vld [vmem:[%s9570_s1 + $0x50] ss:$8 sps:$4 sm:$0xff]   ;;  %v538_v51 = vrot.slane %v6888_v45, 1 }
  0x16   : > { %963 = vmatpush1.bf16.msra.mxu1 %v6096_v12  ;;  %875 = vmatprep.subr.bf16.mxu0 %v6097_v13  ;;  %v6119_v33 = vld [vmem:[%s9570_s1 + $0x54] ss:$8 sps:$4 sm:$0xff]   ;;  %v6120_v35 = vld [vmem:[%s9570_s1 + $0x150] ss:$8 sps:$4 sm:$0xff]   ;;  %v6121_v36 = vld [vmem:[%s9570_s1 + $0x144] ss:$8 sps:$4 sm:$0xff]  }
  0x17   : > { %964 = vmatprep.subr.bf16.mxu1 %v6099_v14  ;;  %v531_v28 = vsel %vm522_vm0, %v529_v23, %v530_v24  ;;  %v6125_v37 = vld [vmem:[%s9570_s1 + $0x44] ss:$8 sps:$4 sm:$0xff]   ;;  %v6123_v38 = vld [vmem:[%s9570_s1 + $0x40] ss:$8 sps:$4 sm:$0xff]   ;;  %v6127_v40 = vld [vmem:[%s9570_s1 + $0x234] ss:$8 sps:$4 sm:$0xff]  }
  0x18   : > { %v6126_v39 = vld [vmem:[%s9570_s1 + $0x140] ss:$8 sps:$4 sm:$0xff]   ;;  %v6131_v41 = vld [vmem:[%s9570_s1 + $0x34] ss:$8 sps:$4 sm:$0xff]   ;;  %v6129_v42 = vld [vmem:[%s9570_s1 + $0x30] ss:$8 sps:$4 sm:$0xff]  }
  0x19   : > { %876 = vmatpush1.bf16.msra.mxu0 %v6101_v15  ;;  %v6132_v43 = vld [vmem:[%s9570_s1 + $0x230] ss:$8 sps:$4 sm:$0xff]   ;;  %v6133_v44 = vld [vmem:[%s9570_s1 + $0x224] ss:$8 sps:$4 sm:$0xff]   ;;  %v6135_v47 = vld [vmem:[%s9570_s1 + $0x20] ss:$8 sps:$4 sm:$0xff]  }
  0x1a   : > { %965 = vmatpush1.bf16.msra.mxu1 %v6102_v16  ;;  %877 = vmatprep.subr.bf16.mxu0 %v6103_v20  ;;  %v6137_v46 = vld [vmem:[%s9570_s1 + $0x24] ss:$8 sps:$4 sm:$0xff]   ;;  %v6138_v49 = vld [vmem:[%s9570_s1 + $0x220] ss:$8 sps:$4 sm:$0xff]   ;;  %v6139_v52 = vld [vmem:[%s9570_s1 + $0x214] ss:$8 sps:$4 sm:$0xff]  }
  0x1b   : > { %1247 = vmatprep.subr.bf16.mxu1 %v6107_v22  ;;  %v6897_v48 = vld [vmem:[%s6801_s21 + $0x2c] sm:$0x1]  ;;  %v6143_v53 = vld [vmem:[%s9570_s1 + $0x14] ss:$8 sps:$4 sm:$0xff]   ;;  %v343_v55 = vld [vmem:[%s6801_s21 + $0x38] ss:$24 sps:$4 sm:$0xff]  }
  0x1c   : > { %v9590_v50 = vunpack.c.l.bf16 %v6897_v48  ;;  %v6141_v56 = vld [vmem:[%s9570_s1 + $0x10] ss:$8 sps:$4 sm:$0xff]   ;;  %v6917_v57 = vld [vmem:[%s6801_s21 + $0x44] sm:$0x1]  ;;  %v6919_v58 = vunpack.c.l.bf16 %v343_v55  ;;  %v6921_v59 = vunpack.c.h.bf16 %v343_v55  ;;  %v6942_v4 = vld [vmem:[%s6801_s21 + $0x5c] sm:$0x1] }
  0x1d   : > { %5298 = vmatmul.mubr.msk.f32.vlgmr.msra.gmra.mxu1 %vm852_vm1, %v531_v28  ;;  %878 = vmatpush1.bf16.msra.mxu0 %v6108_v26  ;;  %v6144_v60 = vld [vmem:[%s9570_s1 + $0x210] ss:$8 sps:$4 sm:$0xff]   ;;  %v9588_v62 = vunpack.c.l.bf16 %v6917_v57  ;;  %v6145_v63 = vld [vmem:[%s9570_s1 + $0x204] ss:$8 sps:$4 sm:$0xff]   ;;  %v6147_v5 = vld [vmem:[%s9570_s1] ss:$8 sps:$4 sm:$0xff]   ;;  %v9587_v6 = vunpack.c.l.bf16 %v6942_v4 }
  0x1e   : > { %1248 = vmatpush1.bf16.msra.mxu1 %v6105_v25  ;;  %879 = vmatprep.subr.bf16.mxu0 %v6109_v27  ;;  %v539_v54 = vrot.slane %v9590_v50, 1  ;;  %v6149_v0 = vld [vmem:[%s9570_s1 + $0x4] ss:$8 sps:$4 sm:$0xff]   ;;  %v547_v1 = vrot.slane %v6919_v58, 1  ;;  %v556_v7 = vrot.slane %v6921_v59, 1  ;;  %vm6696_vm3 = vmmov 0  }
  0x1f   : > { %1249 = vmatprep.subr.bf16.mxu1 %v6113_v29  ;;  %988 = vmatprep.mubr.f32.mxu1 %v9593_v2  ;;  %v548_v3 = vrot.slane %v9588_v62, 1  ;;  %v6150_v8 = vld [vmem:[%s9570_s1 + $0x200] ss:$8 sps:$4 sm:$0xff]   ;;  %v6151_v9 = vld [vmem:[%s9570_s1 + $0x1f4] ss:$8 sps:$4 sm:$0xff]   ;;  %v557_v12 = vrot.slane %v9587_v6, 1 }
  0x20   : > { %v6927_v61 = vsel %vm522_vm0, %v538_v51, %v539_v54  ;;  %v6155_v10 = vld [vmem:[%s9570_s1 + $0xf4] ss:$8 sps:$4 sm:$0xff]   ;;  %v334_v13 = vld [vmem:[%s6801_s21] sm:$0xff]  ;;  %v6966_v14 = vld [vmem:[%s6801_s21 + $0xc] sm:$0x11]  ;;  %vm4708_vm4 = vcmask 261120  }
  0x21   : > { %880 = vmatpush1.bf16.msra.mxu0 %v6114_v31  ;;  %5299 = vmatmul.mubr.msk.f32.gmra.mxu1 %vm852_vm1, %v6927_v61  ;;  %v6960_v11 = vsel %vm522_vm0, %v547_v1, %v548_v3  ;;  %v351_v15 = vld [vmem:[%s6801_s21 + $0x68] ss:$24 sps:$4 sm:$0xff]   ;;  %v6971_v16 = vunpack.c.h.bf16 %v334_v13  ;;  %v378_v17 = vunpack.c.h.bf16 %v6966_v14  ;;  %v6975_v20 = vld [vmem:[%s6801_s21 + $0x74] sm:$0x1]  ;;  %v6153_v23 = vld [vmem:[%s9570_s1 + $0xf0] ss:$8 sps:$4 sm:$0xff]   ;;  %v6990_v26 = vsel %vm522_vm0, %v556_v7, %v557_v12 }
  0x22   : > { %1250 = vmatpush1.bf16.msra.mxu1 %v6111_v30  ;;  %881 = vmatprep.subr.bf16.mxu0 %v6115_v32  ;;  %9657 = vst [vmem:[#allocation2_spill] sm:$0xff] %v6960_v11  ;;  %v6977_v22 = vunpack.c.l.bf16 %v351_v15  ;;  %v6156_v24 = vld [vmem:[%s9570_s1 + $0x1f0] ss:$8 sps:$4 sm:$0xff]   ;;  %v6157_v25 = vld [vmem:[%s9570_s1 + $0x1e4] ss:$8 sps:$4 sm:$0xff]   ;;  %9658 = vst [vmem:[#allocation3_spill] sm:$0xff] %v6990_v26  ;;  %v9586_v27 = vunpack.c.l.bf16 %v6975_v20  ;;  %v6993_v28 = vunpack.c.h.bf16 %v351_v15  ;;  %v9595_v55 = vunpack.c.l.bf16 %v6966_v14 }
  0x23   : > { %1251 = vmatprep.subr.bf16.mxu1 %v6119_v33  ;;  %994 = vmatprep.mubr.f32.mxu1 %v9593_v2  ;;  %v6161_v29 = vld [vmem:[%s9570_s1 + $0xe4] ss:$8 sps:$4 sm:$0xff]   ;;  %v526_v30 = vrot.slane %v6971_v16, 1  ;;  %v527_v31 = vrot.slane %v378_v17, 1  ;;  %v6165_v51 = vld [vmem:[%s9570_s1 + $0xd0] ss:$8 sps:$4 sm:$0xff]  }
  0x24   : > { %v565_v32 = vrot.slane %v6977_v22, 1  ;;  %v566_v33 = vrot.slane %v9586_v27, 1  ;;  %v7046_v54 = vld [vmem:[%s6801_s21 + $0x24] sm:$0x11]  ;;  %v6168_v1 = vld [vmem:[%s9570_s1 + $0x1d0] ss:$8 sps:$4 sm:$0xff]  }
  0x25   : > { %882 = vmatpush1.bf16.msra.mxu0 %v6120_v35  ;;  %5300 = vmatmul.mubr.msk.f32.gmra.mxu1 %vm852_vm1, %v6960_v11  ;;  %v6159_v35 = vld [vmem:[%s9570_s1 + $0xe0] ss:$8 sps:$4 sm:$0xff]   ;;  %v6169_v3 = vld [vmem:[%s9570_s1 + $0x1c4] ss:$8 sps:$4 sm:$0xff]   ;;  %vm4785_vm5 = vcmask 64512   ;;  %s6001_s14 = sshll.u32 %s9858_s10, 6 }
  0x26   : > { %1252 = vmatpush1.bf16.msra.mxu1 %v6117_v34  ;;  %883 = vmatprep.subr.bf16.mxu0 %v6121_v36  ;;  %v7005_v34 = vld [vmem:[%s6801_s21 + $0x8c] sm:$0x1]  ;;  %v528_v36 = vsel %vm522_vm0, %v526_v30, %v527_v31  ;;  %v6171_v12 = vld [vmem:[%s9570_s1 + $0xc0] ss:$8 sps:$4 sm:$0xff]   ;;  %v6177_v31 = vld [vmem:[%s9570_s1 + $0xb4] ss:$8 sps:$4 sm:$0xff]  }
  0x27   : > { %1253 = vmatprep.subr.bf16.mxu1 %v6125_v37  ;;  %1000 = vmatprep.mubr.f32.mxu1 %v9593_v2  ;;  %v9581_v37 = vunpack.c.l.bf16 %v7005_v34  ;;  %v7177_v27 = vld [vmem:[%s6801_s21 + $0x84] sm:$0x11] }
  0x28   : > { %901 = vmatprep.mubr.f32.mxu0 %v528_v36 }
  0x29   : > { %884 = vmatpush1.bf16.msra.mxu0 %v6126_v39  ;;  %5301 = vmatmul.mubr.msk.f32.gmra.mxu1 %vm852_vm1, %v6990_v26  ;;  %v7019_v39 = vsel %vm522_vm0, %v565_v32, %v566_v33  ;;  %v9583_v33 = vunpack.c.l.bf16 %v7046_v54 }
  0x2a   : > { %1254 = vmatpush1.bf16.msra.mxu1 %v6123_v38  ;;  %885 = vmatprep.subr.bf16.mxu0 %v6127_v40  ;;  %v6162_v38 = vld [vmem:[%s9570_s1 + $0x1e0] ss:$8 sps:$4 sm:$0xff]   ;;  %9659 = vst [vmem:[#allocation4_spill] sm:$0xff] %v7019_v39  ;;  %v574_v40 = vrot.slane %v6993_v28, 1 }
  0x2b   : > { %1255 = vmatprep.subr.bf16.mxu1 %v6131_v41  ;;  %1006 = vmatprep.mubr.f32.mxu1 %v9593_v2  ;;  %v359_v41 = vld [vmem:[%s6801_s21 + $0x98] ss:$24 sps:$4 sm:$0xff]  }
  0x2d   : > { %886 = vmatpush2.bf16.msra.mxu0 %v6132_v43  ;;  %v7026_v43 = vld [vmem:[%s6801_s21 + $0xa4] sm:$0x1]  ;;  %5302 = vmatmul.mubr.msk.f32.gmra.mxu1 %vm852_vm1, %v7019_v39 }
  0x2e   : > { %1256 = vmatpush1.bf16.msra.mxu1 %v6129_v42  ;;  %887 = vmatprep.subr.bf16.mxu0 %v6133_v44  ;;  %v575_v42 = vrot.slane %v9581_v37, 1  ;;  %v6163_v44 = vld [vmem:[%s9570_s1 + $0x1d4] ss:$8 sps:$4 sm:$0xff]  }
  0x2f   : > { %1257 = vmatprep.subr.bf16.mxu1 %v6137_v46  ;;  %v6167_v46 = vld [vmem:[%s9570_s1 + $0xd4] ss:$8 sps:$4 sm:$0xff]   ;;  %1012 = vmatprep.mubr.f32.mxu1 %v9593_v2 }
  0x31   : > { %888 = vmatpush2.bf16.msra.mxu0 %v6138_v49  ;;  %v9580_v49 = vunpack.c.l.bf16 %v7026_v43 }
  0x32   : > { %1258 = vmatpush1.bf16.msra.mxu1 %v6135_v47  ;;  %889 = vmatprep.subr.bf16.mxu0 %v6139_v52  ;;  %v7034_v47 = vunpack.c.l.bf16 %v359_v41  ;;  %v7042_v52 = vunpack.c.l.bf16 %v334_v13  ;;  %v7080_v13 = vld [vmem:[%s6801_s21 + $0x3c] sm:$0x11] }
  0x33   : > { %1259 = vmatprep.subr.bf16.mxu1 %v6143_v53  ;;  %v338_v53 = vld [vmem:[%s6801_s21 + $0x18] sm:$0xff] }
  0x34   : > { %v7068_v7 = vunpack.c.h.bf16 %v338_v53  ;;  %v7097_v32 = vunpack.c.l.bf16 %v338_v53  ;;  %v7118_v53 = vld [vmem:[%s6801_s21 + $0x54] sm:$0x11] }
  0x35   : > { %890 = vmatpush2.bf16.msra.mxu0 %v6144_v60  ;;  %v583_v60 = vrot.slane %v7034_v47, 1 }
  0x36   : > { %1260 = vmatpush1.bf16.msra.mxu1 %v6141_v56  ;;  %891 = vmatprep.subr.bf16.mxu0 %v6145_v63  ;;  %v7051_v56 = vsel %vm522_vm0, %v574_v40, %v575_v42  ;;  %v584_v63 = vrot.slane %v9580_v49, 1  ;;  %v346_v42 = vld [vmem:[%s6801_s21 + $0x48] sm:$0xff]  ;;  %v350_v49 = vld [vmem:[%s6801_s21 + $0x60] sm:$0xff] }
  0x37   : > { %1261 = vmatprep.subr.bf16.mxu1 %v6149_v0  ;;  %9660 = vst [vmem:[#allocation5_spill] sm:$0xff] %v7051_v56  ;;  %v7057_v0 = vld [vmem:[%s6801_s21 + $0xbc] sm:$0x1]  ;;  %5303 = vmatmul.mubr.msk.f32.gmra.mxu1 %vm852_vm1, %v7051_v56  ;;  %v7206_v50 = vunpack.c.l.bf16 %v350_v49  ;;  %v362_v56 = vld [vmem:[%s6801_s21 + $0xa8] sm:$0xff] }
  0x38   : > { %v9579_v15 = vunpack.c.l.bf16 %v7057_v0  ;;  %1018 = vmatprep.mubr.f32.mxu1 %v9593_v2 }
  0x39   : > { %892 = vmatpush2.bf16.msra.mxu0 %v6150_v8  ;;  %v9585_v8 = vunpack.c.h.bf16 %v7046_v54 }
  0x3a   : > { %1262 = vmatpush1.bf16.msra.mxu1 %v6147_v5  ;;  %893 = vmatprep.subr.bf16.mxu0 %v6151_v9  ;;  %v6173_v5 = vld [vmem:[%s9570_s1 + $0xc4] ss:$8 sps:$4 sm:$0xff]   ;;  %v342_v9 = vld [vmem:[%s6801_s21 + $0x30] sm:$0xff]  ;;  %v593_v36 = vrot.slane %v9579_v15, 1 }
  0x3b   : > { %1263 = vmatprep.subr.bf16.mxu1 %v6155_v10  ;;  %v7072_v10 = vunpack.c.h.bf16 %v359_v41  ;;  %v536_v40 = vrot.slane %v9585_v8, 1  ;;  %v9582_v41 = vunpack.c.h.bf16 %v7080_v13  ;;  %v354_v8 = vld [vmem:[%s6801_s21 + $0x78] sm:$0xff] }
  0x3c   : > { %v7212_v21 = vunpack.c.h.bf16 %v354_v8 }
  0x3d   : > { %894 = vmatpush2.bf16.msra.mxu0 %v6156_v24  ;;  %v523_v24 = vrot.slane %v7042_v52, 1  ;;  %v592_v30 = vrot.slane %v7072_v10, 1 }
  0x3e   : > { %1264 = vmatpush2.bf16.msra.mxu1 %v6153_v23  ;;  %895 = vmatprep.subr.bf16.mxu0 %v6157_v25  ;;  %v6174_v23 = vld [vmem:[%s9570_s1 + $0x1c0] ss:$8 sps:$4 sm:$0xff]   ;;  %v524_v25 = vrot.slane %v9595_v55, 1 }
  0x3f   : > { %1265 = vmatprep.subr.bf16.mxu1 %v6161_v29  ;;  %v7091_v29 = vsel %vm522_vm0, %v583_v60, %v584_v63  ;;  %v6175_v60 = vld [vmem:[%s9570_s1 + $0xb0] ss:$8 sps:$4 sm:$0xff]   ;;  %v6180_v63 = vld [vmem:[%s9570_s1 + $0xa4] ss:$8 sps:$4 sm:$0xff]   ;;  %v7217_v55 = vld [vmem:[%s6801_s21 + $0x9c] sm:$0x11] }
  0x40   : > { %9661 = vst [vmem:[#allocation6_spill] sm:$0xff] %v7091_v29  ;;  %5304 = vmatmul.mubr.msk.f32.gmra.mxu1 %vm852_vm1, %v7091_v29  ;;  %v6184_v29 = vld [vmem:[%s9570_s1 + $0x80] ss:$8 sps:$4 sm:$0xff]  }
  0x41   : > { %896 = vmatpush2.bf16.msra.mxu0 %v6162_v38  ;;  %v535_v38 = vrot.slane %v7068_v7, 1  ;;  %1024 = vmatprep.mubr.f32.mxu1 %v9593_v2  ;;  %v358_v2 = vld [vmem:[%s6801_s21 + $0x90] sm:$0xff] }
  0x42   : > { %1266 = vmatpush2.bf16.msra.mxu1 %v6159_v35  ;;  %897 = vmatprep.subr.bf16.mxu0 %v6163_v44  ;;  %v7100_v35 = vunpack.c.h.bf16 %v342_v9  ;;  %v6189_v44 = vld [vmem:[%s9570_s1 + $0x134] ss:$8 sps:$4 sm:$0xff]  }
  0x43   : > { %1267 = vmatprep.subr.bf16.mxu1 %v6167_v46  ;;  %v7114_v46 = vunpack.c.l.bf16 %v342_v9  ;;  %v533_v9 = vrot.slane %v9583_v33, 1  ;;  %v7137_v37 = vsel %vm522_vm0, %v535_v38, %v536_v40  ;;  %v7155_v38 = vunpack.c.l.bf16 %v346_v42  ;;  %v6195_v40 = vld [vmem:[%s9570_s1 + $0x124] ss:$8 sps:$4 sm:$0xff]  }
  0x44   : > { %v544_v15 = vrot.slane %v7100_v35, 1  ;;  %v7164_v33 = vunpack.c.h.bf16 %v350_v49 }
  0x45   : > { %898 = vmatpush2.bf16.msra.mxu0 %v6168_v1  ;;  %v7128_v1 = vsel %vm522_vm0, %v592_v30, %v593_v36  ;;  %v545_v30 = vrot.slane %v9582_v41, 1  ;;  %v7141_v36 = vunpack.c.h.bf16 %v346_v42  ;;  %v9592_v41 = vunpack.c.l.bf16 %v7118_v53 }
  0x46   : > { %1268 = vmatpush2.bf16.msra.mxu1 %v6165_v51  ;;  %899 = vmatprep.subr.bf16.mxu0 %v6169_v3  ;;  %v9584_v51 = vunpack.c.l.bf16 %v7080_v13  ;;  %9662 = vst [vmem:[#allocation7_spill] sm:$0xff] %v7128_v1  ;;  %v525_v3 = vsel %vm522_vm0, %v523_v24, %v524_v25  ;;  %v6187_v24 = vld [vmem:[%s9570_s1 + $0x130] ss:$8 sps:$4 sm:$0xff]   ;;  %v541_v25 = vrot.slane %v7114_v46, 1 }
  0x47   : > { %1269 = vmatprep.subr.bf16.mxu1 %v6173_v5  ;;  %v532_v5 = vrot.slane %v7097_v32, 1  ;;  %5305 = vmatmul.mubr.msk.f32.gmra.mxu1 %vm852_vm1, %v7128_v1  ;;  %v7180_v6 = vsel %vm522_vm0, %v544_v15, %v545_v30  ;;  %v550_v15 = vrot.slane %v7155_v38, 1  ;;  %v6201_v30 = vld [vmem:[%s9570_s1 + $0x114] ss:$8 sps:$4 sm:$0xff]   ;;  %v1414_v1 = vrot.slane %v378_v17, 2 }
  0x48   : > { %1279 = vmatprep.mubr.f32.mxu1 %v6971_v16  ;;  %9664 = vst [vmem:[#allocation9_spill] sm:$0xff] %v7180_v6  ;;  %v6207_v17 = vld [vmem:[%s9570_s1 + $0x104] ss:$8 sps:$4 sm:$0xff]  }
  0x49   : > { %900 = vmatpush2.bf16.msra.mxu0 %v6174_v23  ;;  %v7145_v23 = vld [vmem:[%s6801_s21 + $0x6c] sm:$0x11]  ;;  %v7169_v42 = vsel %vm522_vm0, %v532_v5, %v533_v9  ;;  %v6193_v9 = vld [vmem:[%s9570_s1 + $0x120] ss:$8 sps:$4 sm:$0xff]  }
  0x4a   : > { %1270 = vmatpush2.bf16.msra.mxu1 %v6171_v12  ;;  %v9589_v12 = vunpack.c.h.bf16 %v7118_v53  ;;  %1336 = vmatprep.subr.bf16.mxu0 %v6189_v44  ;;  %v6178_v44 = vld [vmem:[%s9570_s1 + $0xa0] ss:$8 sps:$4 sm:$0xff]   ;;  %9663 = vst [vmem:[#allocation8_spill] sm:$0xff] %v7169_v42 }
  0x4b   : > { %1271 = vmatprep.subr.bf16.mxu1 %v6177_v31  ;;  %v542_v31 = vrot.slane %v9584_v51, 1  ;;  %v9598_v51 = vunpack.c.h.bf16 %v7145_v23 }
  0x4c   : > { %902 = vmatmul.mubr.f32.vlgmr.msra.gmra.mxu0 %v525_v3  ;;  %v6183_v3 = vld [vmem:[%s9570_s1 + $0x94] ss:$8 sps:$4 sm:$0xff]   ;;  %v554_v5 = vrot.slane %v9589_v12, 1  ;;  %v562_v12 = vrot.slane %v7164_v33, 1 }
  0x4d   : > { %907 = vmatprep.mubr.f32.mxu0 %v7137_v37  ;;  %1337 = vmatpush1.bf16.msra.mxu0 %v6187_v24  ;;  %v7189_v62 = vsel %vm522_vm0, %v541_v25, %v542_v31  ;;  %v1413_v24 = vrot.slane %v6971_v16, 2  ;;  %v551_v25 = vrot.slane %v9592_v41, 1  ;;  %v6186_v31 = vld [vmem:[%s9570_s1 + $0x84] ss:$8 sps:$4 sm:$0xff]   ;;  %v563_v16 = vrot.slane %v9598_v51, 1 }
  0x4e   : > { %1272 = vmatpush2.bf16.msra.mxu1 %v6175_v60  ;;  %v553_v60 = vrot.slane %v7141_v36, 1  ;;  %9665 = vst [vmem:[#allocation10_spill] sm:$0xff] %v7189_v62  ;;  %1338 = vmatprep.subr.bf16.mxu0 %v6195_v40  ;;  %v1410_v51 = vrot.slane %v7042_v52, 2  ;;  %v9667_v40 = vunpack.c.l.bf16 %v6966_v14  ;;  %v9668_v14 = vunpack.c.l.bf16 %v7145_v23 }
  0x4f   : > { %1273 = vmatprep.subr.bf16.mxu1 %v6180_v63  ;;  %v6181_v63 = vld [vmem:[%s9570_s1 + $0x90] ss:$8 sps:$4 sm:$0xff]  }
  0x50   : > { %908 = vmatmul.mubr.f32.gmra.mxu0 %v7169_v42  ;;  %v7222_v49 = vsel %vm522_vm0, %v553_v60, %v554_v5  ;;  %v1411_v41 = vrot.slane %v9667_v40, 2  ;;  %v559_v60 = vrot.slane %v7206_v50, 1  ;;  %v560_v5 = vrot.slane %v9668_v14, 1  ;;  %v7261_v42 = vld [vmem:[%s6801_s21 + $0xb4] sm:$0x11] }
  0x51   : > { %913 = vmatprep.mubr.f32.mxu0 %v7180_v6  ;;  %9666 = vst [vmem:[#allocation11_spill] sm:$0xff] %v7222_v49  ;;  %1339 = vmatpush1.bf16.msra.mxu0 %v6193_v9  ;;  %v6192_v9 = vld [vmem:[%s9570_s1 + $0x2f4] ss:$8 sps:$4 sm:$0xff]   ;;  %v9614_v6 = vunpack.c.l.bf16 %v7177_v27 }
  0x52   : > { %1274 = vmatpush2.bf16.msra.mxu1 %v6178_v44  ;;  %v6199_v44 = vld [vmem:[%s9570_s1 + $0x110] ss:$8 sps:$4 sm:$0xff]   ;;  %1340 = vmatprep.subr.bf16.mxu0 %v6201_v30  ;;  %v7246_v30 = vunpack.c.l.bf16 %v354_v8  ;;  %v7249_v40 = vsel %vm1409_vm2, %v1410_v51, %v1411_v41  ;;  %v7264_v8 = vsel %vm522_vm0, %v562_v12, %v563_v16  ;;  %v7266_v41 = vunpack.c.h.bf16 %v358_v2 }
  0x53   : > { %1275 = vmatprep.subr.bf16.mxu1 %v6183_v3  ;;  %v7237_v3 = vsel %vm1409_vm2, %v1413_v24, %v1414_v1  ;;  %v7253_v1 = vsel %vm522_vm0, %v550_v15, %v551_v25  ;;  %v571_v24 = vrot.slane %v7212_v21, 1  ;;  %9671 = vst [vmem:[#allocation13_spill] sm:$0xff] %v7264_v8  ;;  %v9610_v51 = vunpack.c.h.bf16 %v7217_v55  ;;  %v6190_v25 = vld [vmem:[%s9570_s1 + $0x2f0] ss:$8 sps:$4 sm:$0xff]  }
  0x54   : > { %914 = vmatmul.mubr.f32.gmra.mxu0 %v7189_v62  ;;  %9669 = vst [vmem:[#allocation12_spill] sm:$0xff] %v7253_v1  ;;  %v9670_v62 = vunpack.c.h.bf16 %v7177_v27  ;;  %v7277_v15 = vsel %vm522_vm0, %v559_v60, %v560_v5  ;;  %v568_v12 = vrot.slane %v7246_v30, 1  ;;  %v569_v16 = vrot.slane %v9614_v6, 1 }
  0x55   : > { %919 = vmatprep.mubr.f32.mxu0 %v7222_v49  ;;  %1341 = vmatpush1.bf16.msra.mxu0 %v6199_v44  ;;  %9672 = vst [vmem:[#allocation14_spill] sm:$0xff] %v7277_v15  ;;  %v7289_v44 = vunpack.c.l.bf16 %v358_v2  ;;  %v580_v60 = vrot.slane %v7266_v41, 1  ;;  %v581_v5 = vrot.slane %v9610_v51, 1  ;;  %v7303_v2 = vunpack.c.l.bf16 %v362_v56 }
  0x56   : > { %1276 = vmatpush2.bf16.msra.mxu1 %v6181_v63  ;;  %v572_v14 = vrot.slane %v9670_v62, 1  ;;  %v6205_v63 = vld [vmem:[%s9570_s1 + $0x100] ss:$8 sps:$4 sm:$0xff]   ;;  %1342 = vmatprep.subr.bf16.mxu0 %v6207_v17  ;;  %v6225_v62 = vld [vmem:[%s9570_s1 + $0x3b4] ss:$8 sps:$4 sm:$0xff]   ;;  %v9613_v17 = vunpack.c.l.bf16 %v7217_v55 }
  0x57   : > { %1277 = vmatprep.subr.bf16.mxu1 %v6186_v31  ;;  %v577_v51 = vrot.slane %v7289_v44, 1 }
  0x58   : > { %920 = vmatmul.mubr.f32.gmra.mxu0 %v7253_v1  ;;  %v7285_v31 = vsel %vm522_vm0, %v571_v24, %v572_v14  ;;  %v9611_v24 = vunpack.c.h.bf16 %v7261_v42  ;;  %v6196_v14 = vld [vmem:[%s9570_s1 + $0x2e0] ss:$8 sps:$4 sm:$0xff]  }
  0x59   : > { %925 = vmatprep.mubr.f32.mxu0 %v7264_v8  ;;  %9673 = vst [vmem:[#allocation15_spill] sm:$0xff] %v7285_v31  ;;  %v7298_v8 = vunpack.c.h.bf16 %v362_v56  ;;  %1343 = vmatpush1.bf16.msra.mxu0 %v6205_v63  ;;  %v578_v63 = vrot.slane %v9613_v17, 1  ;;  %v6204_v56 = vld [vmem:[%s9570_s1 + $0x2d4] ss:$8 sps:$4 sm:$0xff]   ;;  %v6253_v17 = vld [vmem:[%s9570_s1 + $0x420] ss:$8 sps:$4 sm:$0xff]  }
  0x5a   : > { %1278 = vmatpush2.bf16.msra.mxu1 %v6184_v29  ;;  %v6198_v29 = vld [vmem:[%s9570_s1 + $0x2e4] ss:$8 sps:$4 sm:$0xff]   ;;  %1844 = vmatprep.subr.bf16.mxu0 %v6225_v62  ;;  %v9612_v62 = vunpack.c.l.bf16 %v7261_v42 }
  0x5b   : > { %1755 = vmatprep.subr.bf16.mxu1 %v6192_v9  ;;  %v7307_v9 = vsel %vm522_vm0, %v568_v12, %v569_v16  ;;  %v589_v12 = vrot.slane %v7298_v8, 1  ;;  %v7330_v16 = vsel %vm522_vm0, %v577_v51, %v578_v63  ;;  %v6210_v51 = vld [vmem:[%s9570_s1 + $0x2c4] ss:$8 sps:$4 sm:$0xff]   ;;  %v6208_v63 = vld [vmem:[%s9570_s1 + $0x2c0] ss:$8 sps:$4 sm:$0xff]  }
  0x5c   : > { %926 = vmatmul.mubr.f32.gmra.mxu0 %v7277_v15  ;;  %9674 = vst [vmem:[#allocation16_spill] sm:$0xff] %v7307_v9  ;;  %9676 = vst [vmem:[#allocation18_spill] sm:$0xff] %v7330_v16 }
  0x5d   : > { %1280 = vmatmul.mubr.f32.vlgmr.msra.gmra.mxu1 %v7042_v52  ;;  %931 = vmatprep.mubr.f32.mxu0 %v7285_v31  ;;  %v7318_v52 = vsel %vm522_vm0, %v580_v60, %v581_v5  ;;  %v586_v60 = vrot.slane %v7303_v2, 1  ;;  %v587_v5 = vrot.slane %v9612_v62, 1  ;;  %v6241_v62 = vld [vmem:[%s9570_s1 + $0x380] ss:$8 sps:$4 sm:$0xff]  }
  0x5e   : > { %1756 = vmatpush1.bf16.msra.mxu1 %v6190_v25  ;;  %1285 = vmatprep.mubr.f32.mxu1 %v7068_v7  ;;  %9675 = vst [vmem:[#allocation17_spill] sm:$0xff] %v7318_v52  ;;  %v590_v25 = vrot.slane %v9611_v24, 1 }
  0x5f   : > { %1757 = vmatprep.subr.bf16.mxu1 %v6198_v29  ;;  %v6202_v29 = vld [vmem:[%s9570_s1 + $0x2d0] ss:$8 sps:$4 sm:$0xff]  }
  0x60   : > { %932 = vmatmul.mubr.f32.gmra.mxu0 %v7307_v9  ;;  %v7340_v24 = vsel %vm522_vm0, %v589_v12, %v590_v25  ;;  %v6211_v12 = vld [vmem:[%s9570_s1 + $0x2b0] ss:$8 sps:$4 sm:$0xff]   ;;  %v9679_v25 = vmov 0.0  }
  0x61   : > { %1286 = vmatmul.mubr.f32.gmra.mxu1 %v7097_v32  ;;  %937 = vmatprep.mubr.f32.mxu0 %v7318_v52  ;;  %9677 = vst [vmem:[#allocation19_spill] sm:$0xff] %v7340_v24 }
  0x62   : > { %1758 = vmatpush1.bf16.msra.mxu1 %v6196_v14  ;;  %1291 = vmatprep.mubr.f32.mxu1 %v7100_v35  ;;  %v7349_v14 = vsel %vm522_vm0, %v586_v60, %v587_v5  ;;  %v6223_v60 = vld [vmem:[%s9570_s1 + $0x3b0] ss:$8 sps:$4 sm:$0xff]   ;;  %v6214_v5 = vld [vmem:[%s9570_s1 + $0x2a0] ss:$8 sps:$4 sm:$0xff]  }
  0x63   : > { %1759 = vmatprep.subr.bf16.mxu1 %v6204_v56  ;;  %9678 = vst [vmem:[#allocation20_spill] sm:$0xff] %v7349_v14  ;;  %v6213_v56 = vld [vmem:[%s9570_s1 + $0x2b4] ss:$8 sps:$4 sm:$0xff]  }
  0x64   : > { %938 = vmatmul.mubr.f32.gmra.mxu0 %v7330_v16 }
  0x65   : > { %1292 = vmatmul.mubr.f32.gmra.mxu1 %v7114_v46  ;;  %943 = vmatprep.mubr.f32.mxu0 %v7340_v24 }
  0x66   : > { %1760 = vmatpush1.bf16.msra.mxu1 %v6202_v29  ;;  %1297 = vmatprep.mubr.f32.mxu1 %v7141_v36  ;;  %v6216_v29 = vld [vmem:[%s9570_s1 + $0x2a4] ss:$8 sps:$4 sm:$0xff]  }
  0x67   : > { %1761 = vmatprep.subr.bf16.mxu1 %v6210_v51  ;;  %v6219_v51 = vld [vmem:[%s9570_s1 + $0x294] ss:$8 sps:$4 sm:$0xff]  }
  0x68   : > { %944 = vmatmul.mubr.f32.gmra.mxu0 %v7349_v14 }
  0x69   : > { %1298 = vmatmul.mubr.f32.gmra.mxu1 %v7155_v38  ;;  %1360 = vmatprep.mubr.f32.mxu0 %v9679_v25 }
  0x6a   : > { %1762 = vmatpush1.bf16.msra.mxu1 %v6208_v63  ;;  %1303 = vmatprep.mubr.f32.mxu1 %v7164_v33  ;;  %v6231_v63 = vld [vmem:[%s9570_s1 + $0x3a4] ss:$8 sps:$4 sm:$0xff]  }
  0x6b   : > { %1763 = vmatprep.subr.bf16.mxu1 %v6213_v56  ;;  %v6217_v56 = vld [vmem:[%s9570_s1 + $0x290] ss:$8 sps:$4 sm:$0xff]  }
  0x6c   : > { %5346 = vmatmul.mubr.msk.f32.vlgmr.msra.gmra.mxu0 %vm852_vm1, %v6816_v19 }
  0x6d   : > { %1304 = vmatmul.mubr.f32.gmra.mxu1 %v7206_v50  ;;  %1366 = vmatprep.mubr.f32.mxu0 %v9679_v25 }
  0x6e   : > { %1764 = vmatpush1.bf16.msra.mxu1 %v6211_v12  ;;  %1309 = vmatprep.mubr.f32.mxu1 %v7212_v21  ;;  %v6222_v12 = vld [vmem:[%s9570_s1 + $0x284] ss:$8 sps:$4 sm:$0xff]  }
  0x6f   : > { %1765 = vmatprep.subr.bf16.mxu1 %v6216_v29  ;;  %1845 = vmatpush1.bf16.msra.mxu0 %v6223_v60  ;;  %v6229_v29 = vld [vmem:[%s9570_s1 + $0x3a0] ss:$8 sps:$4 sm:$0xff]  }
  0x70   : > { %5347 = vmatmul.mubr.msk.f32.gmra.mxu0 %vm852_vm1, %v6888_v45  ;;  %1846 = vmatprep.subr.bf16.mxu0 %v6231_v63  ;;  %v6220_v60 = vld [vmem:[%s9570_s1 + $0x280] ss:$8 sps:$4 sm:$0xff]   ;;  %v6235_v63 = vld [vmem:[%s9570_s1 + $0x390] ss:$8 sps:$4 sm:$0xff]  }
  0x71   : > { %1310 = vmatmul.mubr.f32.gmra.mxu1 %v7246_v30  ;;  %1372 = vmatprep.mubr.f32.mxu0 %v9679_v25 }
  0x72   : > { %1766 = vmatpush1.bf16.msra.mxu1 %v6214_v5  ;;  %1315 = vmatprep.mubr.f32.mxu1 %v7266_v41  ;;  %v6228_v5 = vld [vmem:[%s9570_s1 + $0x374] ss:$8 sps:$4 sm:$0xff]  }
  0x73   : > { %1767 = vmatprep.subr.bf16.mxu1 %v6219_v51  ;;  %v6237_v51 = vld [vmem:[%s9570_s1 + $0x394] ss:$8 sps:$4 sm:$0xff]   ;;  %1847 = vmatpush1.bf16.msra.mxu0 %v6229_v29  ;;  %v6234_v29 = vld [vmem:[%s9570_s1 + $0x364] ss:$8 sps:$4 sm:$0xff]  }
  0x74   : > { %5348 = vmatmul.mubr.msk.f32.gmra.mxu0 %vm852_vm1, %v6919_v58  ;;  %1848 = vmatprep.subr.bf16.mxu0 %v6237_v51  ;;  %v6238_v51 = vld [vmem:[%s9570_s1 + $0x350] ss:$8 sps:$4 sm:$0xff]  }
  0x75   : > { %1316 = vmatmul.mubr.f32.gmra.mxu1 %v7289_v44  ;;  %1378 = vmatprep.mubr.f32.mxu0 %v9679_v25 }
  0x76   : > { %1768 = vmatpush1.bf16.msra.mxu1 %v6217_v56  ;;  %1321 = vmatprep.mubr.f32.mxu1 %v7298_v8  ;;  %v6243_v56 = vld [vmem:[%s9570_s1 + $0x384] ss:$8 sps:$4 sm:$0xff]  }
  0x77   : > { %1769 = vmatprep.subr.bf16.mxu1 %v6222_v12  ;;  %v6226_v12 = vld [vmem:[%s9570_s1 + $0x370] ss:$8 sps:$4 sm:$0xff]   ;;  %1849 = vmatpush1.bf16.msra.mxu0 %v6235_v63  ;;  %v6246_v63 = vld [vmem:[%s9570_s1 + $0x344] ss:$8 sps:$4 sm:$0xff]  }
  0x78   : > { %5349 = vmatmul.mubr.msk.f32.gmra.mxu0 %vm852_vm1, %v6921_v59  ;;  %1850 = vmatprep.subr.bf16.mxu0 %v6243_v56 }
  0x79   : > { %1322 = vmatmul.mubr.f32.gmra.mxu1 %v7303_v2  ;;  %1384 = vmatprep.mubr.f32.mxu0 %v9679_v25 }
  0x7a   : > { %1770 = vmatpush1.bf16.msra.mxu1 %v6220_v60  ;;  %1787 = vmatprep.mubr.f32.mxu1 %v7237_v3  ;;  %v6249_v60 = vld [vmem:[%s9570_s1 + $0x434] ss:$8 sps:$4 sm:$0xff]  }
  0x7b   : > { %1771 = vmatprep.subr.bf16.mxu1 %v6228_v5  ;;  %v6232_v5 = vld [vmem:[%s9570_s1 + $0x360] ss:$8 sps:$4 sm:$0xff]   ;;  %v6240_v3 = vld [vmem:[%s9570_s1 + $0x354] ss:$8 sps:$4 sm:$0xff]   ;;  %1851 = vmatpush1.bf16.msra.mxu0 %v6241_v62  ;;  %v9680_v62 = vunpack.c.l.bf16 %v6814_v18  ;;  %v6247_v18 = vld [vmem:[%s9570_s1 + $0x430] ss:$8 sps:$4 sm:$0xff]  }
  0x7c   : > { %5350 = vmatmul.mubr.msk.f32.gmra.mxu0 %vm852_vm1, %v6977_v22  ;;  %2177 = vmatprep.subr.bf16.mxu0 %v6249_v60  ;;  %v6252_v60 = vld [vmem:[%s9570_s1 + $0x334] ss:$8 sps:$4 sm:$0xff]  }
  0x7d   : > { %1390 = vmatprep.mubr.f32.mxu0 %v9679_v25  ;;  %v1417_v56 = vrot.slane %v9680_v62, 2 }
  0x7e   : > { %1772 = vmatpush2.bf16.msra.mxu1 %v6226_v12  ;;  %v6244_v12 = vld [vmem:[%s9570_s1 + $0x340] ss:$8 sps:$4 sm:$0xff]  }
  0x7f   : > { %1773 = vmatprep.subr.bf16.mxu1 %v6234_v29  ;;  %v1416_v29 = vrot.slane %v6816_v19, 2  ;;  %v6250_v19 = vld [vmem:[%s9570_s1 + $0x330] ss:$8 sps:$4 sm:$0xff]  }
  0x80   : > { %5351 = vmatmul.mubr.msk.f32.gmra.mxu0 %vm852_vm1, %v6993_v28 }
  0x81   : > { %1396 = vmatprep.mubr.f32.mxu0 %v9679_v25 }
  0x82   : > { %1774 = vmatpush2.bf16.msra.mxu1 %v6232_v5  ;;  %v1425_v5 = vrot.slane %v6888_v45, 2 }
  0x83   : > { %1775 = vmatprep.subr.bf16.mxu1 %v6240_v3  ;;  %v1418_v3 = vsel %vm1409_vm2, %v1416_v29, %v1417_v56  ;;  %v1434_v56 = vrot.slane %v6919_v58, 2  ;;  %v6261_v29 = vld [vmem:[%s9570_s1 + $0x414] ss:$8 sps:$4 sm:$0xff]  }
  0x84   : > { %5352 = vmatmul.mubr.msk.f32.gmra.mxu0 %vm852_vm1, %v7034_v47 }
  0x85   : > { %1402 = vmatprep.mubr.f32.mxu0 %v9679_v25 }
  0x86   : > { %1776 = vmatpush2.bf16.msra.mxu1 %v6238_v51  ;;  %v6255_v51 = vld [vmem:[%s9570_s1 + $0x424] ss:$8 sps:$4 sm:$0xff]  }
  0x87   : > { %1777 = vmatprep.subr.bf16.mxu1 %v6246_v63  ;;  %v9681_v63 = vunpack.c.l.bf16 %v6897_v48  ;;  %v6256_v48 = vld [vmem:[%s9570_s1 + $0x320] ss:$8 sps:$4 sm:$0xff]  }
  0x88   : > { %5353 = vmatmul.mubr.msk.f32.gmra.mxu0 %vm852_vm1, %v7072_v10 }
  0x89   : > { %1868 = vmatprep.mubr.f32.mxu0 %v9679_v25  ;;  %v1426_v62 = vrot.slane %v9681_v63, 2 }
  0x8a   : > { %1778 = vmatpush2.bf16.msra.mxu1 %v6244_v12  ;;  %v6258_v12 = vld [vmem:[%s9570_s1 + $0x324] ss:$8 sps:$4 sm:$0xff]  }
  0x8b   : > { %1779 = vmatprep.subr.bf16.mxu1 %v6252_v60  ;;  %v7497_v60 = vsel %vm1409_vm2, %v1425_v5, %v1426_v62  ;;  %v1443_v5 = vrot.slane %v6921_v59, 2 }
  0x8c   : > { %5434 = vmatmul.mubr.msk.f32.vlgmr.msra.gmra.mxu0 %vm852_vm1, %v1418_v3  ;;  %9682 = vst [vmem:[#allocation21_spill] sm:$0xff] %v7497_v60  ;;  %v9683_v3 = vunpack.c.l.bf16 %v6917_v57  ;;  %v6262_v57 = vld [vmem:[%s9570_s1 + $0x310] ss:$8 sps:$4 sm:$0xff]  }
  0x8d   : > { %2178 = vmatpush1.bf16.msra.mxu0 %v6247_v18  ;;  %v6264_v18 = vld [vmem:[%s9570_s1 + $0x314] ss:$8 sps:$4 sm:$0xff]   ;;  %1874 = vmatprep.mubr.f32.mxu0 %v9679_v25 }
  0x8e   : > { %1780 = vmatpush2.bf16.msra.mxu1 %v6250_v19  ;;  %v1435_v63 = vrot.slane %v9683_v3, 2  ;;  %2179 = vmatprep.subr.bf16.mxu0 %v6255_v51  ;;  %v6259_v19 = vld [vmem:[%s9570_s1 + $0x410] ss:$8 sps:$4 sm:$0xff]   ;;  %v6267_v51 = vld [vmem:[%s9570_s1 + $0x404] ss:$8 sps:$4 sm:$0xff]  }
  0x8f   : > { %1781 = vmatprep.subr.bf16.mxu1 %v6258_v12  ;;  %v9685_v12 = vunpack.c.l.bf16 %v6942_v4  ;;  %v6268_v4 = vld [vmem:[%s9570_s1 + $0x300] ss:$8 sps:$4 sm:$0xff]  }
  0x90   : > { %5435 = vmatmul.mubr.msk.f32.gmra.mxu0 %vm852_vm1, %v7497_v60  ;;  %v7518_v62 = vsel %vm1409_vm2, %v1434_v56, %v1435_v63  ;;  %v9687_v63 = vunpack.c.l.bf16 %v6975_v20  ;;  %v6271_v20 = vld [vmem:[%s9570_s1 + $0x3f0] ss:$8 sps:$4 sm:$0xff]   ;;  %v9691_v60 = vunpack.c.l.bf16 %v7005_v34  ;;  %v1428_v34 = vrot.slane %v7114_v46, 2 }
  0x91   : > { %2180 = vmatpush1.bf16.msra.mxu0 %v6253_v17  ;;  %9684 = vst [vmem:[#allocation22_spill] sm:$0xff] %v7518_v62  ;;  %v1444_v3 = vrot.slane %v9685_v12, 2  ;;  %v6270_v17 = vld [vmem:[%s9570_s1 + $0x304] ss:$8 sps:$4 sm:$0xff]   ;;  %1880 = vmatprep.mubr.f32.mxu0 %v9679_v25  ;;  %v6273_v12 = vld [vmem:[%s9570_s1 + $0x3f4] ss:$8 sps:$4 sm:$0xff]  }
  0x92   : > { %1782 = vmatpush2.bf16.msra.mxu1 %v6256_v48  ;;  %2181 = vmatprep.subr.bf16.mxu0 %v6261_v29  ;;  %v6265_v48 = vld [vmem:[%s9570_s1 + $0x400] ss:$8 sps:$4 sm:$0xff]   ;;  %v1452_v29 = vrot.slane %v6977_v22, 2  ;;  %v1462_v14 = vrot.slane %v9691_v60, 2  ;;  %v9693_v60 = vunpack.c.l.bf16 %v7080_v13 }
  0x93   : > { %1783 = vmatprep.subr.bf16.mxu1 %v6264_v18  ;;  %v7535_v56 = vsel %vm1409_vm2, %v1443_v5, %v1444_v3  ;;  %v1453_v18 = vrot.slane %v9687_v63, 2  ;;  %v9688_v5 = vunpack.c.h.bf16 %v7046_v54 }
  0x94   : > { %5436 = vmatmul.mubr.msk.f32.gmra.mxu0 %vm852_vm1, %v7518_v62  ;;  %9686 = vst [vmem:[#allocation23_spill] sm:$0xff] %v7535_v56  ;;  %v1461_v62 = vrot.slane %v6993_v28, 2 }
  0x95   : > { %2182 = vmatpush1.bf16.msra.mxu0 %v6259_v19  ;;  %v6276_v19 = vld [vmem:[%s9570_s1 + $0x4f4] ss:$8 sps:$4 sm:$0xff]   ;;  %v1423_v3 = vrot.slane %v9688_v5, 2  ;;  %1886 = vmatprep.mubr.f32.mxu0 %v9679_v25  ;;  %v6274_v5 = vld [vmem:[%s9570_s1 + $0x4f0] ss:$8 sps:$4 sm:$0xff]   ;;  %v7562_v6 = vsel %vm1409_vm2, %v1452_v29, %v1453_v18  ;;  %v1429_v18 = vrot.slane %v9693_v60, 2 }
  0x96   : > { %1784 = vmatpush2.bf16.msra.mxu1 %v6262_v57  ;;  %2183 = vmatprep.subr.bf16.mxu0 %v6267_v51  ;;  %v1422_v57 = vrot.slane %v7068_v7, 2  ;;  %v1419_v51 = vrot.slane %v7097_v32, 2  ;;  %9690 = vst [vmem:[#allocation24_spill] sm:$0xff] %v7562_v6  ;;  %v6285_v29 = vld [vmem:[%s9570_s1 + $0x4e4] ss:$8 sps:$4 sm:$0xff]  }
  0x97   : > { %1785 = vmatprep.subr.bf16.mxu1 %v6270_v17  ;;  %v9689_v17 = vunpack.c.l.bf16 %v7046_v54  ;;  %v6279_v54 = vld [vmem:[%s9570_s1 + $0x3e4] ss:$8 sps:$4 sm:$0xff]   ;;  %v7627_v60 = vsel %vm1409_vm2, %v1428_v34, %v1429_v18  ;;  %v9703_v34 = vunpack.c.h.bf16 %v7145_v23 }
  0x98   : > { %5437 = vmatmul.mubr.msk.f32.gmra.mxu0 %vm852_vm1, %v7535_v56  ;;  %v7574_v56 = vsel %vm1409_vm2, %v1422_v57, %v1423_v3  ;;  %v9695_v3 = vunpack.c.l.bf16 %v7026_v43  ;;  %v6294_v43 = vld [vmem:[%s9570_s1 + $0x4d4] ss:$8 sps:$4 sm:$0xff]   ;;  %9699 = vst [vmem:[#allocation27_spill] sm:$0xff] %v7627_v60 }
  0x99   : > { %v1420_v63 = vrot.slane %v9689_v17, 2  ;;  %2184 = vmatpush1.bf16.msra.mxu0 %v6265_v48  ;;  %v1431_v48 = vrot.slane %v7100_v35, 2  ;;  %1892 = vmatprep.mubr.f32.mxu0 %v9679_v25  ;;  %v1450_v18 = vrot.slane %v9703_v34, 2  ;;  %v6291_v34 = vld [vmem:[%s9570_s1 + $0x4b4] ss:$8 sps:$4 sm:$0xff]  }
  0x9a   : > { %1786 = vmatpush2.bf16.msra.mxu1 %v6268_v4  ;;  %2185 = vmatprep.subr.bf16.mxu0 %v6273_v12  ;;  %v9692_v4 = vunpack.c.h.bf16 %v7080_v13  ;;  %v1440_v12 = vrot.slane %v7141_v36, 2  ;;  %v1470_v13 = vrot.slane %v7034_v47, 2 }
  0x9b   : > { %2266 = vmatprep.subr.bf16.mxu1 %v6276_v19  ;;  %v6277_v19 = vld [vmem:[%s9570_s1 + $0x3e0] ss:$8 sps:$4 sm:$0xff]   ;;  %v7591_v57 = vsel %vm1409_vm2, %v1419_v51, %v1420_v63  ;;  %v1437_v63 = vrot.slane %v7155_v38, 2 }
  0x9c   : > { %v1432_v17 = vrot.slane %v9692_v4, 2  ;;  %5438 = vmatmul.mubr.msk.f32.gmra.mxu0 %vm852_vm1, %v7562_v6  ;;  %v1471_v4 = vrot.slane %v9695_v3, 2 }
  0x9d   : > { %1788 = vmatmul.mubr.f32.vlgmr.msra.gmra.mxu1 %v7249_v40  ;;  %2186 = vmatpush1.bf16.msra.mxu0 %v6271_v20  ;;  %v7594_v40 = vsel %vm1409_vm2, %v1461_v62, %v1462_v14  ;;  %v6283_v14 = vld [vmem:[%s9570_s1 + $0x4e0] ss:$8 sps:$4 sm:$0xff]   ;;  %v9697_v62 = vunpack.c.h.bf16 %v7118_v53 }
  0x9e   : > { %2267 = vmatpush1.bf16.msra.mxu1 %v6274_v5  ;;  %9694 = vst [vmem:[#allocation25_spill] sm:$0xff] %v7594_v40  ;;  %1793 = vmatprep.mubr.f32.mxu1 %v7574_v56  ;;  %v7601_v20 = vsel %vm1409_vm2, %v1431_v48, %v1432_v17  ;;  %v6282_v5 = vld [vmem:[%s9570_s1 + $0x3d4] ss:$8 sps:$4 sm:$0xff]   ;;  %v1449_v17 = vrot.slane %v7164_v33, 2  ;;  %v7630_v3 = vsel %vm1409_vm2, %v1470_v13, %v1471_v4  ;;  %v6292_v13 = vld [vmem:[%s9570_s1 + $0x4d0] ss:$8 sps:$4 sm:$0xff]  }
  0x9f   : > { %2187 = vmatprep.subr.bf16.mxu0 %v6279_v54  ;;  %9696 = vst [vmem:[#allocation26_spill] sm:$0xff] %v7601_v20  ;;  %v1441_v51 = vrot.slane %v9697_v62, 2  ;;  %2268 = vmatprep.subr.bf16.mxu1 %v6285_v29  ;;  %v9698_v54 = vunpack.c.l.bf16 %v7118_v53  ;;  %v6280_v29 = vld [vmem:[%s9570_s1 + $0x3d0] ss:$8 sps:$4 sm:$0xff]   ;;  %9700 = vst [vmem:[#allocation28_spill] sm:$0xff] %v7630_v3  ;;  %v1479_v53 = vrot.slane %v7072_v10, 2  ;;  %v9701_v62 = vunpack.c.l.bf16 %v7057_v0 }
  0xa0   : > { %1898 = vmatprep.mubr.f32.mxu0 %v9679_v25  ;;  %v6303_v0 = vld [vmem:[%s9570_s1 + $0x4c4] ss:$8 sps:$4 sm:$0xff]   ;;  %v6286_v4 = vld [vmem:[%s9570_s1 + $0x3c0] ss:$8 sps:$4 sm:$0xff]  }
  0xa1   : > { %1794 = vmatmul.mubr.f32.gmra.mxu1 %v7591_v57  ;;  %v1438_v48 = vrot.slane %v9698_v54, 2  ;;  %5439 = vmatmul.mubr.msk.f32.gmra.mxu0 %vm852_vm1, %v7594_v40  ;;  %v1480_v54 = vrot.slane %v9701_v62, 2 }
  0xa2   : > { %2188 = vmatpush1.bf16.msra.mxu0 %v6277_v19  ;;  %1799 = vmatprep.mubr.f32.mxu1 %v7601_v20  ;;  %v7636_v19 = vsel %vm1409_vm2, %v1440_v12, %v1441_v51  ;;  %v6288_v20 = vld [vmem:[%s9570_s1 + $0x3c4] ss:$8 sps:$4 sm:$0xff]   ;;  %v1446_v12 = vrot.slane %v7206_v50, 2 }
  0xa3   : > { %2189 = vmatprep.subr.bf16.mxu0 %v6282_v5  ;;  %2269 = vmatpush1.bf16.msra.mxu1 %v6283_v14  ;;  %9702 = vst [vmem:[#allocation29_spill] sm:$0xff] %v7636_v19  ;;  %v7659_v5 = vsel %vm1409_vm2, %v1437_v63, %v1438_v48  ;;  %v9705_v14 = vunpack.c.l.bf16 %v7145_v23  ;;  %v7665_v62 = vsel %vm1409_vm2, %v1479_v53, %v1480_v54  ;;  %v9707_v63 = vunpack.c.h.bf16 %v7177_v27  ;;  %v6301_v23 = vld [vmem:[%s9570_s1 + $0x4c0] ss:$8 sps:$4 sm:$0xff]  }
  0xa4   : > { %2270 = vmatprep.subr.bf16.mxu1 %v6294_v43  ;;  %1904 = vmatprep.mubr.f32.mxu0 %v9679_v25  ;;  %9704 = vst [vmem:[#allocation30_spill] sm:$0xff] %v7659_v5  ;;  %v1458_v43 = vrot.slane %v7212_v21, 2  ;;  %v1455_v54 = vrot.slane %v7246_v30, 2 }
  0xa5   : > { %1800 = vmatmul.mubr.f32.gmra.mxu1 %v7627_v60  ;;  %5440 = vmatmul.mubr.msk.f32.gmra.mxu0 %vm852_vm1, %v7630_v3  ;;  %v1447_v51 = vrot.slane %v9705_v14, 2  ;;  %v1459_v48 = vrot.slane %v9707_v63, 2  ;;  %v1467_v14 = vrot.slane %v7266_v41, 2  ;;  %v9711_v63 = vunpack.c.h.bf16 %v7217_v55 }
  0xa6   : > { %2190 = vmatpush1.bf16.msra.mxu0 %v6280_v29  ;;  %1805 = vmatprep.mubr.f32.mxu1 %v7636_v19  ;;  %v7668_v29 = vsel %vm1409_vm2, %v1449_v17, %v1450_v18  ;;  %v6289_v17 = vld [vmem:[%s9570_s1 + $0x4b0] ss:$8 sps:$4 sm:$0xff]   ;;  %v9709_v18 = vunpack.c.l.bf16 %v7177_v27  ;;  %v6295_v27 = vld [vmem:[%s9570_s1 + $0x4a0] ss:$8 sps:$4 sm:$0xff]  }
  0xa7   : > { %2191 = vmatprep.subr.bf16.mxu0 %v6288_v20  ;;  %9706 = vst [vmem:[#allocation31_spill] sm:$0xff] %v7668_v29  ;;  %2271 = vmatpush1.bf16.msra.mxu1 %v6292_v13  ;;  %v6312_v20 = vld [vmem:[%s9570_s1 + $0x574] ss:$8 sps:$4 sm:$0xff]   ;;  %v7690_v53 = vsel %vm1409_vm2, %v1446_v12, %v1447_v51  ;;  %v1464_v51 = vrot.slane %v7289_v44, 2 }
  0xa8   : > { %2272 = vmatprep.subr.bf16.mxu1 %v6303_v0  ;;  %1910 = vmatprep.mubr.f32.mxu0 %v9679_v25  ;;  %9708 = vst [vmem:[#allocation32_spill] sm:$0xff] %v7690_v53  ;;  %v1456_v13 = vrot.slane %v9709_v18, 2  ;;  %v7696_v0 = vsel %vm1409_vm2, %v1458_v43, %v1459_v48  ;;  %v9713_v43 = vunpack.c.l.bf16 %v7217_v55  ;;  %v6300_v48 = vld [vmem:[%s9570_s1 + $0x494] ss:$8 sps:$4 sm:$0xff]   ;;  %v6298_v55 = vld [vmem:[%s9570_s1 + $0x490] ss:$8 sps:$4 sm:$0xff]   ;;  %v9717_v18 = vunpack.c.l.bf16 %v7261_v42 }
  0xa9   : > { %1806 = vmatmul.mubr.f32.gmra.mxu1 %v7659_v5  ;;  %5441 = vmatmul.mubr.msk.f32.gmra.mxu0 %vm852_vm1, %v7665_v62  ;;  %9710 = vst [vmem:[#allocation33_spill] sm:$0xff] %v7696_v0 }
  0xaa   : > { %2192 = vmatpush1.bf16.msra.mxu0 %v6286_v4  ;;  %1811 = vmatprep.mubr.f32.mxu1 %v7668_v29  ;;  %v6297_v4 = vld [vmem:[%s9570_s1 + $0x4a4] ss:$8 sps:$4 sm:$0xff]   ;;  %v1468_v29 = vrot.slane %v9711_v63, 2  ;;  %v7711_v12 = vsel %vm1409_vm2, %v1455_v54, %v1456_v13  ;;  %v1473_v54 = vrot.slane %v7303_v2, 2  ;;  %v1474_v13 = vrot.slane %v9717_v18, 2 }
  0xab   : > { %2193 = vmatprep.subr.bf16.mxu0 %v6291_v34  ;;  %2273 = vmatpush1.bf16.msra.mxu1 %v6301_v23  ;;  %9712 = vst [vmem:[#allocation34_spill] sm:$0xff] %v7711_v12  ;;  %v1465_v34 = vrot.slane %v9713_v43, 2  ;;  %v1476_v23 = vrot.slane %v7298_v8, 2  ;;  %v6304_v63 = vld [vmem:[%s9570_s1 + $0x480] ss:$8 sps:$4 sm:$0xff]  }
  0xac   : > { %2614 = vmatprep.subr.bf16.mxu1 %v6312_v20  ;;  %2209 = vmatprep.mubr.f32.mxu0 %v7068_v7  ;;  %v7717_v7 = vsel %vm1409_vm2, %v1467_v14, %v1468_v29  ;;  %v9715_v20 = vunpack.c.h.bf16 %v7261_v42  ;;  %v6306_v14 = vld [vmem:[%s9570_s1 + $0x484] ss:$8 sps:$4 sm:$0xff]   ;;  %v7748_v42 = vsel %vm1409_vm2, %v1473_v54, %v1474_v13  ;;  %v6310_v43 = vld [vmem:[%s9570_s1 + $0x570] ss:$8 sps:$4 sm:$0xff]  }
  0xad   : > { %1812 = vmatmul.mubr.f32.gmra.mxu1 %v7690_v53  ;;  %9714 = vst [vmem:[#allocation35_spill] sm:$0xff] %v7717_v7  ;;  %v7731_v29 = vsel %vm1409_vm2, %v1464_v51, %v1465_v34  ;;  %9719 = vst [vmem:[#allocation38_spill] sm:$0xff] %v7748_v42  ;;  %v6307_v51 = vld [vmem:[%s9570_s1 + $0x470] ss:$8 sps:$4 sm:$0xff]   ;;  %v6315_v34 = vld [vmem:[%s9570_s1 + $0x464] ss:$8 sps:$4 sm:$0xff]  }
  0xae   : > { %2194 = vmatpush2.bf16.msra.mxu0 %v6289_v17  ;;  %1817 = vmatprep.mubr.f32.mxu1 %v7696_v0  ;;  %v1477_v17 = vrot.slane %v9715_v20, 2  ;;  %9716 = vst [vmem:[#allocation36_spill] sm:$0xff] %v7731_v29  ;;  %v6316_v20 = vld [vmem:[%s9570_s1 + $0x560] ss:$8 sps:$4 sm:$0xff]   ;;  %v6322_v54 = vld [vmem:[%s9570_s1 + $0x550] ss:$8 sps:$4 sm:$0xff]  }
  0xaf   : > { %2195 = vmatprep.subr.bf16.mxu0 %v6297_v4  ;;  %v6327_v18 = vld [vmem:[%s9570_s1 + $0x444] ss:$8 sps:$4 sm:$0xff]  }
  0xb0   : > { %v7737_v4 = vsel %vm1409_vm2, %v1476_v23, %v1477_v17  ;;  %v6313_v23 = vld [vmem:[%s9570_s1 + $0x460] ss:$8 sps:$4 sm:$0xff]   ;;  %v6321_v17 = vld [vmem:[%s9570_s1 + $0x454] ss:$8 sps:$4 sm:$0xff]   ;;  %v6330_v13 = vld [vmem:[%s9570_s1 + $0x544] ss:$8 sps:$4 sm:$0xff]  }
  0xb1   : > { %1818 = vmatmul.mubr.f32.gmra.mxu1 %v7711_v12  ;;  %9718 = vst [vmem:[#allocation37_spill] sm:$0xff] %v7737_v4 }
  0xb2   : > { %2196 = vmatpush2.bf16.msra.mxu0 %v6295_v27  ;;  %1823 = vmatprep.mubr.f32.mxu1 %v7717_v7  ;;  %v6309_v27 = vld [vmem:[%s9570_s1 + $0x474] ss:$8 sps:$4 sm:$0xff]  }
  0xb3   : > { %2197 = vmatprep.subr.bf16.mxu0 %v6300_v48  ;;  %v6318_v48 = vld [vmem:[%s9570_s1 + $0x564] ss:$8 sps:$4 sm:$0xff]  }
  0xb5   : > { %1824 = vmatmul.mubr.f32.gmra.mxu1 %v7731_v29 }
  0xb6   : > { %2198 = vmatpush2.bf16.msra.mxu0 %v6298_v55  ;;  %1829 = vmatprep.mubr.f32.mxu1 %v7737_v4  ;;  %v6319_v55 = vld [vmem:[%s9570_s1 + $0x450] ss:$8 sps:$4 sm:$0xff]  }
  0xb7   : > { %2199 = vmatprep.subr.bf16.mxu0 %v6306_v14  ;;  %v6325_v14 = vld [vmem:[%s9570_s1 + $0x440] ss:$8 sps:$4 sm:$0xff]  }
  0xb9   : > { %1830 = vmatmul.mubr.f32.gmra.mxu1 %v7748_v42 }
  0xba   : > { %2200 = vmatpush2.bf16.msra.mxu0 %v6304_v63  ;;  %2290 = vmatprep.mubr.f32.mxu1 %v9679_v25  ;;  %v6328_v63 = vld [vmem:[%s9570_s1 + $0x540] ss:$8 sps:$4 sm:$0xff]  }
  0xbb   : > { %2201 = vmatprep.subr.bf16.mxu0 %v6309_v27  ;;  %v6333_v27 = vld [vmem:[%s9570_s1 + $0x534] ss:$8 sps:$4 sm:$0xff]  }
  0xbd   : > { %5522 = vmatmul.mubr.msk.f32.vlgmr.msra.gmra.mxu1 %vm852_vm1, %v6888_v45  ;;  %v6324_v45 = vld [vmem:[%s9570_s1 + $0x554] ss:$8 sps:$4 sm:$0xff]  }
  0xbe   : > { %2202 = vmatpush2.bf16.msra.mxu0 %v6307_v51  ;;  %2615 = vmatpush1.bf16.msra.mxu1 %v6310_v43  ;;  %v6345_v51 = vld [vmem:[%s9570_s1 + $0x634] ss:$8 sps:$4 sm:$0xff]   ;;  %v6331_v43 = vld [vmem:[%s9570_s1 + $0x530] ss:$8 sps:$4 sm:$0xff]  }
  0xbf   : > { %2203 = vmatprep.subr.bf16.mxu0 %v6315_v34  ;;  %2616 = vmatprep.subr.bf16.mxu1 %v6318_v48  ;;  %v6336_v34 = vld [vmem:[%s9570_s1 + $0x524] ss:$8 sps:$4 sm:$0xff]   ;;  %v6343_v48 = vld [vmem:[%s9570_s1 + $0x630] ss:$8 sps:$4 sm:$0xff]  }
  0xc0   : > { %2296 = vmatprep.mubr.f32.mxu1 %v9679_v25 }
  0xc1   : > { %5523 = vmatmul.mubr.msk.f32.gmra.mxu1 %vm852_vm1, %v6919_v58 }
  0xc2   : > { %2204 = vmatpush2.bf16.msra.mxu0 %v6313_v23  ;;  %2617 = vmatpush1.bf16.msra.mxu1 %v6316_v20  ;;  %v6351_v23 = vld [vmem:[%s9570_s1 + $0x624] ss:$8 sps:$4 sm:$0xff]   ;;  %v6334_v20 = vld [vmem:[%s9570_s1 + $0x520] ss:$8 sps:$4 sm:$0xff]  }
  0xc3   : > { %2205 = vmatprep.subr.bf16.mxu0 %v6321_v17  ;;  %2618 = vmatprep.subr.bf16.mxu1 %v6324_v45  ;;  %v6339_v17 = vld [vmem:[%s9570_s1 + $0x514] ss:$8 sps:$4 sm:$0xff]  }
  0xc4   : > { %2302 = vmatprep.mubr.f32.mxu1 %v9679_v25  ;;  %v6357_v45 = vld [vmem:[%s9570_s1 + $0x614] ss:$8 sps:$4 sm:$0xff]  }
  0xc5   : > { %5524 = vmatmul.mubr.msk.f32.gmra.mxu1 %vm852_vm1, %v6921_v59 }
  0xc6   : > { %2206 = vmatpush2.bf16.msra.mxu0 %v6319_v55  ;;  %2619 = vmatpush1.bf16.msra.mxu1 %v6322_v54  ;;  %v6337_v55 = vld [vmem:[%s9570_s1 + $0x510] ss:$8 sps:$4 sm:$0xff]   ;;  %v6342_v54 = vld [vmem:[%s9570_s1 + $0x504] ss:$8 sps:$4 sm:$0xff]  }
  0xc7   : > { %2207 = vmatprep.subr.bf16.mxu0 %v6327_v18  ;;  %2620 = vmatprep.subr.bf16.mxu1 %v6330_v13  ;;  %v367_v18 = vld [vmem:[%s6801_s21 + $0xc8] sm:$0xf]  ;;  %v6355_v13 = vld [vmem:[%s9570_s1 + $0x610] ss:$8 sps:$4 sm:$0xff]  }
  0xc8   : > { %2308 = vmatprep.mubr.f32.mxu1 %v9679_v25 }
  0xc9   : > { %5525 = vmatmul.mubr.msk.f32.gmra.mxu1 %vm852_vm1, %v6977_v22 }
  0xca   : > { %2208 = vmatpush2.bf16.msra.mxu0 %v6325_v14  ;;  %2621 = vmatpush1.bf16.msra.mxu1 %v6328_v63  ;;  %v6363_v14 = vld [vmem:[%s9570_s1 + $0x604] ss:$8 sps:$4 sm:$0xff]   ;;  %v7865_v63 = vunpack.c.l.bf16 %v367_v18  ;;  %v6364_v18 = vld [vmem:[%s9570_s1 + $0x5c0] ss:$8 sps:$4 sm:$0xff]  }
  0xcb   : > { %2622 = vmatprep.subr.bf16.mxu1 %v6333_v27  ;;  %2314 = vmatprep.mubr.f32.mxu1 %v9679_v25  ;;  %v6340_v27 = vld [vmem:[%s9570_s1 + $0x500] ss:$8 sps:$4 sm:$0xff]  }
  0xcc   : > { %2703 = vmatprep.subr.bf16.mxu0 %v6345_v51  ;;  %v6348_v51 = vld [vmem:[%s9570_s1 + $0x5f4] ss:$8 sps:$4 sm:$0xff]  }
  0xcd   : > { %2210 = vmatmul.mubr.f32.vlgmr.msra.gmra.mxu0 %v7097_v32  ;;  %5526 = vmatmul.mubr.msk.f32.gmra.mxu1 %vm852_vm1, %v6993_v28  ;;  %v6349_v32 = vld [vmem:[%s9570_s1 + $0x620] ss:$8 sps:$4 sm:$0xff]  }
  0xce   : > { %2623 = vmatpush1.bf16.msra.mxu1 %v6331_v43  ;;  %2215 = vmatprep.mubr.f32.mxu0 %v7100_v35  ;;  %v6361_v43 = vld [vmem:[%s9570_s1 + $0x600] ss:$8 sps:$4 sm:$0xff]  }
  0xcf   : > { %2624 = vmatprep.subr.bf16.mxu1 %v6336_v34  ;;  %2704 = vmatpush1.bf16.msra.mxu0 %v6343_v48  ;;  %v6369_v34 = vld [vmem:[%s9570_s1 + $0x6b4] ss:$8 sps:$4 sm:$0xff]   ;;  %v6346_v48 = vld [vmem:[%s9570_s1 + $0x5f0] ss:$8 sps:$4 sm:$0xff]  }
  0xd0   : > { %2320 = vmatprep.mubr.f32.mxu1 %v9679_v25  ;;  %2705 = vmatprep.subr.bf16.mxu0 %v6351_v23  ;;  %v6354_v23 = vld [vmem:[%s9570_s1 + $0x5e4] ss:$8 sps:$4 sm:$0xff]  }
  0xd1   : > { %2216 = vmatmul.mubr.f32.gmra.mxu0 %v7114_v46  ;;  %5527 = vmatmul.mubr.msk.f32.gmra.mxu1 %vm852_vm1, %v7034_v47 }
  0xd2   : > { %2625 = vmatpush1.bf16.msra.mxu1 %v6334_v20  ;;  %2221 = vmatprep.mubr.f32.mxu0 %v7141_v36  ;;  %v6352_v20 = vld [vmem:[%s9570_s1 + $0x5e0] ss:$8 sps:$4 sm:$0xff]  }
  0xd3   : > { %2626 = vmatprep.subr.bf16.mxu1 %v6339_v17  ;;  %2706 = vmatpush1.bf16.msra.mxu0 %v6349_v32  ;;  %v6360_v17 = vld [vmem:[%s9570_s1 + $0x5d4] ss:$8 sps:$4 sm:$0xff]   ;;  %v366_v32 = vld [vmem:[%s6801_s21 + $0xc0] sm:$0xff] }
  0xd4   : > { %2326 = vmatprep.mubr.f32.mxu1 %v9679_v25  ;;  %2707 = vmatprep.subr.bf16.mxu0 %v6357_v45  ;;  %v6358_v45 = vld [vmem:[%s9570_s1 + $0x5d0] ss:$8 sps:$4 sm:$0xff]  }
  0xd5   : > { %2222 = vmatmul.mubr.f32.gmra.mxu0 %v7155_v38  ;;  %5528 = vmatmul.mubr.msk.f32.gmra.mxu1 %vm852_vm1, %v7072_v10 }
  0xd6   : > { %2627 = vmatpush1.bf16.msra.mxu1 %v6337_v55  ;;  %2227 = vmatprep.mubr.f32.mxu0 %v7164_v33  ;;  %v6366_v55 = vld [vmem:[%s9570_s1 + $0x5c4] ss:$8 sps:$4 sm:$0xff]  }
  0xd7   : > { %2628 = vmatprep.subr.bf16.mxu1 %v6342_v54  ;;  %2708 = vmatpush1.bf16.msra.mxu0 %v6355_v13  ;;  %v7912_v54 = vunpack.c.l.bf16 %v366_v32  ;;  %v6372_v13 = vld [vmem:[%s9570_s1 + $0x5b4] ss:$8 sps:$4 sm:$0xff]  }
  0xd8   : > { %2332 = vmatprep.mubr.f32.mxu1 %v9679_v25  ;;  %2709 = vmatprep.subr.bf16.mxu0 %v6363_v14  ;;  %v6367_v14 = vld [vmem:[%s9570_s1 + $0x6b0] ss:$8 sps:$4 sm:$0xff]  }
  0xd9   : > { %2228 = vmatmul.mubr.f32.gmra.mxu0 %v7206_v50  ;;  %5529 = vmatmul.mubr.msk.f32.gmra.mxu1 %vm852_vm1, %v7865_v63 }
  0xda   : > { %2629 = vmatpush1.bf16.msra.mxu1 %v6340_v27  ;;  %2233 = vmatprep.mubr.f32.mxu0 %v7212_v21  ;;  %v6370_v27 = vld [vmem:[%s9570_s1 + $0x5b0] ss:$8 sps:$4 sm:$0xff]  }
  0xdb   : > { %2630 = vmatprep.subr.bf16.mxu1 %v6348_v51  ;;  %2710 = vmatpush1.bf16.msra.mxu0 %v6361_v43  ;;  %v6375_v51 = vld [vmem:[%s9570_s1 + $0x6a4] ss:$8 sps:$4 sm:$0xff]  }
  0xdc   : > { %3046 = vmatprep.subr.bf16.mxu0 %v6369_v34  ;;  %2646 = vmatprep.mubr.f32.mxu1 %v7137_v37  ;;  %v7906_v37 = vunpack.c.h.bf16 %v366_v32  ;;  %v6378_v43 = vld [vmem:[%s9570_s1 + $0x5a4] ss:$8 sps:$4 sm:$0xff]   ;;  %v6373_v34 = vld [vmem:[%s9570_s1 + $0x6a0] ss:$8 sps:$4 sm:$0xff]   ;;  %v6382_v32 = vld [vmem:[%s9570_s1 + $0x590] ss:$8 sps:$4 sm:$0xff]  }
  0xdd   : > { %2234 = vmatmul.mubr.f32.gmra.mxu0 %v7246_v30 }
  0xde   : > { %2631 = vmatpush2.bf16.msra.mxu1 %v6346_v48  ;;  %2239 = vmatprep.mubr.f32.mxu0 %v7266_v41  ;;  %v7940_v48 = vpop.f32.mrf.mxu1 }
  0xdf   : > { %2632 = vmatprep.subr.bf16.mxu1 %v6354_v23  ;;  %v6376_v23 = vld [vmem:[%s9570_s1 + $0x5a0] ss:$8 sps:$4 sm:$0xff]  }
  0xe1   : > { %2240 = vmatmul.mubr.f32.gmra.mxu0 %v7289_v44 }
  0xe2   : > { %2633 = vmatpush2.bf16.msra.mxu1 %v6352_v20  ;;  %2245 = vmatprep.mubr.f32.mxu0 %v7298_v8  ;;  %v6381_v20 = vld [vmem:[%s9570_s1 + $0x694] ss:$8 sps:$4 sm:$0xff]  }
  0xe3   : > { %2634 = vmatprep.subr.bf16.mxu1 %v6360_v17  ;;  %v6384_v17 = vld [vmem:[%s9570_s1 + $0x594] ss:$8 sps:$4 sm:$0xff]  }
  0xe5   : > { %2246 = vmatmul.mubr.f32.gmra.mxu0 %v7303_v2 }
  0xe6   : > { %2635 = vmatpush2.bf16.msra.mxu1 %v6358_v45  ;;  %2251 = vmatprep.mubr.f32.mxu0 %v7906_v37  ;;  %v6387_v45 = vld [vmem:[%s9570_s1 + $0x684] ss:$8 sps:$4 sm:$0xff]  }
  0xe7   : > { %2636 = vmatprep.subr.bf16.mxu1 %v6366_v55  ;;  %v7963_v55 = vpop.f32.mrf.mxu1 }
  0xe8   : > { %9720 = vst [vmem:[#allocation39_spill] sm:$0xff] %v7963_v55  ;;  %v9724_v55 = vld [vmem:[#allocation5_spill] sm:$0xff] }
  0xe9   : > { %2252 = vmatmul.mubr.f32.gmra.mxu0 %v7912_v54 }
  0xea   : > { %2637 = vmatpush2.bf16.msra.mxu1 %v6364_v18  ;;  %2727 = vmatprep.mubr.f32.mxu0 %v9679_v25  ;;  %v6390_v18 = vld [vmem:[%s9570_s1 + $0x584] ss:$8 sps:$4 sm:$0xff]  }
  0xeb   : > { %2638 = vmatprep.subr.bf16.mxu1 %v6372_v13  ;;  %v7968_v13 = vpop.f32.mrf.mxu1 }
  0xed   : > { %5610 = vmatmul.mubr.msk.f32.vlgmr.msra.gmra.mxu0 %vm852_vm1, %v6927_v61  ;;  %v6379_v61 = vld [vmem:[%s9570_s1 + $0x690] ss:$8 sps:$4 sm:$0xff]  }
  0xee   : > { %3047 = vmatpush1.bf16.msra.mxu0 %v6367_v14  ;;  %2639 = vmatpush2.bf16.msra.mxu1 %v6370_v27  ;;  %v6385_v14 = vld [vmem:[%s9570_s1 + $0x680] ss:$8 sps:$4 sm:$0xff]  }
  0xef   : > { %3048 = vmatprep.subr.bf16.mxu0 %v6375_v51  ;;  %2640 = vmatprep.subr.bf16.mxu1 %v6378_v43  ;;  %v6388_v27 = vld [vmem:[%s9570_s1 + $0x580] ss:$8 sps:$4 sm:$0xff]   ;;  %v7979_v51 = vpop.f32.mrf.mxu1  ;;  %v6393_v43 = vld [vmem:[%s9570_s1 + $0x674] ss:$8 sps:$4 sm:$0xff]  }
  0xf0   : > { %2733 = vmatprep.mubr.f32.mxu0 %v9679_v25  ;;  %9721 = vst [vmem:[#allocation40_spill] sm:$0xff] %v7979_v51  ;;  %v9726_v51 = vld [vmem:[#allocation9_spill] sm:$0xff] }
  0xf1   : > { %5611 = vmatmul.mubr.msk.f32.gmra.mxu0 %vm852_vm1, %v6960_v11 }
  0xf2   : > { %3049 = vmatpush1.bf16.msra.mxu0 %v6373_v34  ;;  %2641 = vmatpush2.bf16.msra.mxu1 %v6376_v23  ;;  %v6396_v34 = vld [vmem:[%s9570_s1 + $0x774] ss:$8 sps:$4 sm:$0xff]   ;;  %v7987_v23 = vpop.f32.mrf.mxu1 }
  0xf3   : > { %3050 = vmatprep.subr.bf16.mxu0 %v6381_v20  ;;  %2642 = vmatprep.subr.bf16.mxu1 %v6384_v17  ;;  %v6391_v20 = vld [vmem:[%s9570_s1 + $0x670] ss:$8 sps:$4 sm:$0xff]  }
  0xf4   : > { %2739 = vmatprep.mubr.f32.mxu0 %v9679_v25  ;;  %v6394_v17 = vld [vmem:[%s9570_s1 + $0x770] ss:$8 sps:$4 sm:$0xff]  }
  0xf5   : > { %5612 = vmatmul.mubr.msk.f32.gmra.mxu0 %vm852_vm1, %v6990_v26 }
  0xf6   : > { %3051 = vmatpush1.bf16.msra.mxu0 %v6379_v61  ;;  %2643 = vmatpush2.bf16.msra.mxu1 %v6382_v32  ;;  %v7998_v61 = vpop.f32.mrf.mxu1  ;;  %v6399_v32 = vld [vmem:[%s9570_s1 + $0x664] ss:$8 sps:$4 sm:$0xff]  }
  0xf7   : > { %3052 = vmatprep.subr.bf16.mxu0 %v6387_v45  ;;  %2644 = vmatprep.subr.bf16.mxu1 %v6390_v18  ;;  %9722 = vst [vmem:[#allocation41_spill] sm:$0xff] %v7998_v61  ;;  %v8004_v45 = vld [vmem:[%s6801_s21 + $0xd4] sm:$0x1]  ;;  %v6405_v18 = vld [vmem:[%s9570_s1 + $0x764] ss:$8 sps:$4 sm:$0xff]  }
  0xf8   : > { %2745 = vmatprep.mubr.f32.mxu0 %v9679_v25  ;;  %v9727_v61 = vld [vmem:[#allocation10_spill] sm:$0xff]  ;;  %v9730_v26 = vunpack.c.l.bf16 %v8004_v45 }
  0xf9   : > { %5613 = vmatmul.mubr.msk.f32.gmra.mxu0 %vm852_vm1, %v7019_v39  ;;  %v2366_v39 = vrot.slane %v7865_v63, 1 }
  0xfa   : > { %3053 = vmatpush1.bf16.msra.mxu0 %v6385_v14  ;;  %2645 = vmatpush2.bf16.msra.mxu1 %v6388_v27  ;;  %v8009_v14 = vpop.f32.mrf.mxu1  ;;  %v9723_v27 = vld [vmem:[#allocation8_spill] sm:$0xff]  ;;  %v2367_v11 = vrot.slane %v9730_v26, 1 }
  0xfb   : > { %3054 = vmatprep.subr.bf16.mxu0 %v6393_v43  ;;  %3135 = vmatprep.subr.bf16.mxu1 %v6396_v34  ;;  %v6397_v43 = vld [vmem:[%s9570_s1 + $0x660] ss:$8 sps:$4 sm:$0xff]  }
  0xfc   : > { %2751 = vmatprep.mubr.f32.mxu0 %v9679_v25  ;;  %v8018_v34 = vpop.f32.mrf.mxu1 }
  0xfd   : > { %2647 = vmatmul.mubr.f32.vlgmr.msra.gmra.mxu1 %v9723_v27  ;;  %5614 = vmatmul.mubr.msk.f32.gmra.mxu0 %vm852_vm1, %v9724_v55  ;;  %9725 = vst [vmem:[#allocation8_spill] sm:$0xff] %v8018_v34  ;;  %v6402_v27 = vld [vmem:[%s9570_s1 + $0x654] ss:$8 sps:$4 sm:$0xff]  }
  0xfe   : > { %3055 = vmatpush1.bf16.msra.mxu0 %v6391_v20  ;;  %3136 = vmatpush1.bf16.msra.mxu1 %v6394_v17  ;;  %v6403_v20 = vld [vmem:[%s9570_s1 + $0x760] ss:$8 sps:$4 sm:$0xff]   ;;  %v8028_v17 = vpop.f32.mrf.mxu1  ;;  %v6414_v34 = vld [vmem:[%s9570_s1 + $0x754] ss:$8 sps:$4 sm:$0xff]  }
  0xff   : > { %2652 = vmatprep.mubr.f32.mxu1 %v9726_v51  ;;  %3056 = vmatprep.subr.bf16.mxu0 %v6399_v32  ;;  %v9728_v32 = vld [vmem:[#allocation6_spill] sm:$0xff] }
 0x100   : > { %3137 = vmatprep.subr.bf16.mxu1 %v6405_v18  ;;  %2757 = vmatprep.mubr.f32.mxu0 %v9679_v25  ;;  %v6400_v18 = vld [vmem:[%s9570_s1 + $0x650] ss:$8 sps:$4 sm:$0xff]   ;;  %v8041_v55 = vpop.f32.mrf.mxu1 }
 0x101   : > { %2653 = vmatmul.mubr.f32.gmra.mxu1 %v9727_v61  ;;  %5615 = vmatmul.mubr.msk.f32.gmra.mxu0 %vm852_vm1, %v9728_v32  ;;  %9729 = vst [vmem:[#allocation9_spill] sm:$0xff] %v8041_v55  ;;  %v6408_v32 = vld [vmem:[%s9570_s1 + $0x644] ss:$8 sps:$4 sm:$0xff]  }
 0x102   : > { %3057 = vmatpush1.bf16.msra.mxu0 %v6397_v43  ;;  %2658 = vmatprep.mubr.f32.mxu1 %v7222_v49  ;;  %v6412_v43 = vld [vmem:[%s9570_s1 + $0x750] ss:$8 sps:$4 sm:$0xff]   ;;  %v6423_v55 = vld [vmem:[%s9570_s1 + $0x744] ss:$8 sps:$4 sm:$0xff]   ;;  %v8057_v26 = vpop.f32.mrf.mxu1  ;;  %v8066_v49 = vsel %vm522_vm0, %v2366_v39, %v2367_v11  ;;  %v6432_v11 = vld [vmem:[%s9570_s1 + $0x7f4] ss:$8 sps:$4 sm:$0xff]  }
 0x103   : > { %3058 = vmatprep.subr.bf16.mxu0 %v6402_v27  ;;  %3138 = vmatpush1.bf16.msra.mxu1 %v6403_v20  ;;  %v9731_v27 = vld [vmem:[#allocation7_spill] sm:$0xff]  ;;  %v9732_v20 = vld [vmem:[#allocation13_spill] sm:$0xff]  ;;  %9733 = vst [vmem:[#allocation10_spill] sm:$0xff] %v8066_v49 }
 0x104   : > { %3139 = vmatprep.subr.bf16.mxu1 %v6414_v34  ;;  %2763 = vmatprep.mubr.f32.mxu0 %v9679_v25  ;;  %v6406_v34 = vld [vmem:[%s9570_s1 + $0x640] ss:$8 sps:$4 sm:$0xff]   ;;  %v8082_v39 = vpop.f32.mrf.mxu1 }
 0x105   : > { %2659 = vmatmul.mubr.f32.gmra.mxu1 %v7253_v1  ;;  %5616 = vmatmul.mubr.msk.f32.gmra.mxu0 %vm852_vm1, %v9731_v27  ;;  %v6411_v1 = vld [vmem:[%s9570_s1 + $0x734] ss:$8 sps:$4 sm:$0xff]   ;;  %v6421_v27 = vld [vmem:[%s9570_s1 + $0x740] ss:$8 sps:$4 sm:$0xff]   ;;  %9734 = vst [vmem:[#allocation42_spill] sm:$0xff] %v8082_v39 }
 0x106   : > { %3059 = vmatpush1.bf16.msra.mxu0 %v6400_v18  ;;  %2664 = vmatprep.mubr.f32.mxu1 %v9732_v20  ;;  %v8075_v18 = vld [vmem:[%s6801_s21 + $0xcc] sm:$0x11]  ;;  %v8096_v39 = vpop.f32.mrf.mxu1 }
 0x107   : > { %3060 = vmatprep.subr.bf16.mxu0 %v6408_v32  ;;  %3140 = vmatpush1.bf16.msra.mxu1 %v6412_v43  ;;  %v6417_v32 = vld [vmem:[%s9570_s1 + $0x724] ss:$8 sps:$4 sm:$0xff]  }
 0x108   : > { %3141 = vmatprep.subr.bf16.mxu1 %v6423_v55  ;;  %2769 = vmatprep.mubr.f32.mxu0 %v9679_v25  ;;  %v6409_v55 = vld [vmem:[%s9570_s1 + $0x730] ss:$8 sps:$4 sm:$0xff]  }
 0x109   : > { %2665 = vmatmul.mubr.f32.gmra.mxu1 %v7277_v15  ;;  %5617 = vmatmul.mubr.msk.f32.gmra.mxu0 %vm852_vm1, %v8066_v49  ;;  %v6436_v15 = vld [vmem:[%s9570_s1 + $0x7e0] ss:$8 sps:$4 sm:$0xff]  }
 0x10a   : > { %3061 = vmatpush1.bf16.msra.mxu0 %v6406_v34  ;;  %2670 = vmatprep.mubr.f32.mxu1 %v7285_v31 }
 0x10b   : > { %3062 = vmatprep.subr.bf16.mxu0 %v6411_v1  ;;  %3142 = vmatpush1.bf16.msra.mxu1 %v6421_v27  ;;  %v6415_v1 = vld [vmem:[%s9570_s1 + $0x720] ss:$8 sps:$4 sm:$0xff]  }
 0x10c   : > { %3468 = vmatprep.subr.bf16.mxu1 %v6432_v11  ;;  %3078 = vmatprep.mubr.f32.mxu0 %v7574_v56  ;;  %v903_v34 = vpop.f32.mrf.mxu0  ;;  %v6420_v56 = vld [vmem:[%s9570_s1 + $0x714] ss:$8 sps:$4 sm:$0xff]   ;;  %v2363_v11 = vrot.slane %v7906_v37, 1 }
 0x10d   : > { %2671 = vmatmul.mubr.f32.gmra.mxu1 %v7307_v9  ;;  %v985_v31 = vadd.f32 %v7940_v48, %v903_v34  ;;  %v9738_v9 = vunpack.c.l.bf16 %v8075_v18 }
 0x10e   : > { %3063 = vmatpush2.bf16.msra.mxu0 %v6409_v55  ;;  %2676 = vmatprep.mubr.f32.mxu1 %v7318_v52  ;;  %v8104_v43 = vpop.f32.mrf.mxu0  ;;  %v9736_v55 = vunpack.c.h.bf16 %v8075_v18  ;;  %v8113_v52 = vpop.f32.mrf.mxu1 }
 0x10f   : > { %9735 = vst [vmem:[#allocation43_spill] sm:$0xff] %v8104_v43  ;;  %3064 = vmatprep.subr.bf16.mxu0 %v6417_v32  ;;  %9737 = vst [vmem:[#allocation44_spill] sm:$0xff] %v8113_v52  ;;  %v6418_v32 = vld [vmem:[%s9570_s1 + $0x710] ss:$8 sps:$4 sm:$0xff]   ;;  %v2360_v43 = vrot.slane %v7912_v54, 1  ;;  %v2361_v49 = vrot.slane %v9738_v9, 1 }
 0x110   : > { %v2364_v48 = vrot.slane %v9736_v55, 1  ;;  %v909_v34 = vpop.f32.mrf.mxu0  ;;  %v8132_v52 = vpop.f32.mrf.mxu1  ;;  %v6424_v9 = vld [vmem:[%s9570_s1 + $0x700] ss:$8 sps:$4 sm:$0xff]  }
 0x111   : > { %2677 = vmatmul.mubr.f32.gmra.mxu1 %v7330_v16  ;;  %v991_v27 = vadd.f32 %v7968_v13, %v909_v34  ;;  %v6426_v13 = vld [vmem:[%s9570_s1 + $0x704] ss:$8 sps:$4 sm:$0xff]  }
 0x112   : > { %3065 = vmatpush2.bf16.msra.mxu0 %v6415_v1  ;;  %2682 = vmatprep.mubr.f32.mxu1 %v7340_v24  ;;  %v8123_v55 = vpop.f32.mrf.mxu0  ;;  %v8126_v16 = vsel %vm522_vm0, %v2363_v11, %v2364_v48  ;;  %v9740_v1 = vld [vmem:[#allocation20_spill] sm:$0xff] }
 0x113   : > { %3066 = vmatprep.subr.bf16.mxu0 %v6420_v56  ;;  %9739 = vst [vmem:[#allocation45_spill] sm:$0xff] %v8126_v16  ;;  %v8140_v56 = vsel %vm522_vm0, %v2360_v43, %v2361_v49  ;;  %v6429_v48 = vld [vmem:[%s9570_s1 + $0x6f4] ss:$8 sps:$4 sm:$0xff]   ;;  %v6427_v49 = vld [vmem:[%s9570_s1 + $0x6f0] ss:$8 sps:$4 sm:$0xff]  }
 0x114   : > { %v915_v34 = vpop.f32.mrf.mxu0  ;;  %9741 = vst [vmem:[#allocation46_spill] sm:$0xff] %v8140_v56  ;;  %v6430_v43 = vld [vmem:[%s9570_s1 + $0x7f0] ss:$8 sps:$4 sm:$0xff]  }
 0x115   : > { %2683 = vmatmul.mubr.f32.gmra.mxu1 %v9740_v1  ;;  %v997_v24 = vadd.f32 %v7987_v23, %v915_v34  ;;  %v8148_v23 = vpop.f32.mrf.mxu1 }
 0x116   : > { %3067 = vmatpush2.bf16.msra.mxu0 %v6418_v32  ;;  %2688 = vmatprep.mubr.f32.mxu1 %v8126_v16  ;;  %v8142_v11 = vpop.f32.mrf.mxu0  ;;  %9743 = vst [vmem:[#allocation48_spill] sm:$0xff] %v8148_v23 }
 0x117   : > { %9742 = vst [vmem:[#allocation47_spill] sm:$0xff] %v8142_v11  ;;  %3068 = vmatprep.subr.bf16.mxu0 %v6426_v13 }
 0x118   : > { %v921_v32 = vpop.f32.mrf.mxu0 }
 0x119   : > { %2689 = vmatmul.mubr.f32.gmra.mxu1 %v8140_v56  ;;  %v1003_v34 = vadd.f32 %v8009_v14, %v921_v32  ;;  %v6435_v56 = vld [vmem:[%s9570_s1 + $0x6e4] ss:$8 sps:$4 sm:$0xff]  }
 0x11a   : > { %3069 = vmatpush2.bf16.msra.mxu0 %v6424_v9  ;;  %3159 = vmatprep.mubr.f32.mxu1 %v9679_v25  ;;  %v8158_v13 = vpop.f32.mrf.mxu0  ;;  %v6438_v14 = vld [vmem:[%s9570_s1 + $0x7e4] ss:$8 sps:$4 sm:$0xff]   ;;  %v9745_v9 = vld [vmem:[#allocation21_spill] sm:$0xff] }
 0x11b   : > { %9744 = vst [vmem:[#allocation49_spill] sm:$0xff] %v8158_v13  ;;  %3070 = vmatprep.subr.bf16.mxu0 %v6429_v48  ;;  %v6433_v48 = vld [vmem:[%s9570_s1 + $0x6e0] ss:$8 sps:$4 sm:$0xff]  }
 0x11c   : > { %v927_v32 = vpop.f32.mrf.mxu0 }
 0x11d   : > { %5698 = vmatmul.mubr.msk.f32.vlgmr.msra.gmra.mxu1 %vm852_vm1, %v9745_v9  ;;  %v1281_v23 = vpop.f32.mrf.mxu1  ;;  %v8169_v16 = vadd.f32 %v8028_v17, %v927_v32  ;;  %v6441_v17 = vld [vmem:[%s9570_s1 + $0x6d4] ss:$8 sps:$4 sm:$0xff]   ;;  %v6439_v32 = vld [vmem:[%s9570_s1 + $0x6d0] ss:$8 sps:$4 sm:$0xff]  }
 0x11e   : > { %3071 = vmatpush2.bf16.msra.mxu0 %v6427_v49  ;;  %3469 = vmatpush1.bf16.msra.mxu1 %v6430_v43  ;;  %v8171_v1 = vadd.f32 %v1281_v23, %v985_v31  ;;  %v8179_v13 = vpop.f32.mrf.mxu0  ;;  %v6444_v31 = vld [vmem:[%s9570_s1 + $0x7d4] ss:$8 sps:$4 sm:$0xff]   ;;  %v9748_v43 = vld [vmem:[#allocation22_spill] sm:$0xff] }
 0x11f   : > { %9746 = vst [vmem:[#allocation21_spill] sm:$0xff] %v8179_v13  ;;  %v8181_v9 = vpop.f32.mrf.mxu1  ;;  %3072 = vmatprep.subr.bf16.mxu0 %v6435_v56  ;;  %3470 = vmatprep.subr.bf16.mxu1 %v6438_v14 }
 0x120   : > { %9747 = vst [vmem:[#allocation50_spill] sm:$0xff] %v8181_v9  ;;  %3165 = vmatprep.mubr.f32.mxu1 %v9679_v25  ;;  %v933_v23 = vpop.f32.mrf.mxu0  ;;  %v6442_v9 = vld [vmem:[%s9570_s1 + $0x7d0] ss:$8 sps:$4 sm:$0xff]  }
 0x121   : > { %v1287_v49 = vpop.f32.mrf.mxu1  ;;  %5699 = vmatmul.mubr.msk.f32.gmra.mxu1 %vm852_vm1, %v9748_v43  ;;  %v8193_v56 = vadd.f32 %v8057_v26, %v933_v23  ;;  %v6450_v26 = vld [vmem:[%s9570_s1 + $0x7c4] ss:$8 sps:$4 sm:$0xff]   ;;  %v6448_v43 = vld [vmem:[%s9570_s1 + $0x7c0] ss:$8 sps:$4 sm:$0xff]  }
 0x122   : > { %3073 = vmatpush2.bf16.msra.mxu0 %v6433_v48  ;;  %3471 = vmatpush1.bf16.msra.mxu1 %v6436_v15  ;;  %v8195_v14 = vadd.f32 %v1287_v49, %v991_v27  ;;  %v8203_v13 = vpop.f32.mrf.mxu0  ;;  %v6447_v15 = vld [vmem:[%s9570_s1 + $0x6c4] ss:$8 sps:$4 sm:$0xff]   ;;  %v6445_v49 = vld [vmem:[%s9570_s1 + $0x6c0] ss:$8 sps:$4 sm:$0xff]  }
 0x123   : > { %9749 = vst [vmem:[#allocation51_spill] sm:$0xff] %v8203_v13  ;;  %v8205_v20 = vpop.f32.mrf.mxu1  ;;  %3074 = vmatprep.subr.bf16.mxu0 %v6441_v17  ;;  %3472 = vmatprep.subr.bf16.mxu1 %v6444_v31  ;;  %v9750_v23 = vld [vmem:[#allocation23_spill] sm:$0xff] }
 0x124   : > { %3171 = vmatprep.mubr.f32.mxu1 %v9679_v25  ;;  %v939_v27 = vpop.f32.mrf.mxu0 }
 0x125   : > { %v1293_v48 = vpop.f32.mrf.mxu1  ;;  %5700 = vmatmul.mubr.msk.f32.gmra.mxu1 %vm852_vm1, %v9750_v23  ;;  %v8217_v17 = vadd.f32 %v8096_v39, %v939_v27  ;;  %v6453_v39 = vld [vmem:[%s9570_s1 + $0x7b4] ss:$8 sps:$4 sm:$0xff]   ;;  %v6451_v27 = vld [vmem:[%s9570_s1 + $0x7b0] ss:$8 sps:$4 sm:$0xff]  }
 0x126   : > { %3075 = vmatpush2.bf16.msra.mxu0 %v6439_v32  ;;  %3473 = vmatpush1.bf16.msra.mxu1 %v6442_v9  ;;  %v8219_v31 = vadd.f32 %v1293_v48, %v997_v24  ;;  %v8227_v13 = vpop.f32.mrf.mxu0  ;;  %v6465_v24 = vld [vmem:[%s9570_s1 + $0x8b4] ss:$8 sps:$4 sm:$0xff]  }
 0x127   : > { %9751 = vst [vmem:[#allocation52_spill] sm:$0xff] %v8227_v13  ;;  %v8229_v11 = vpop.f32.mrf.mxu1  ;;  %3076 = vmatprep.subr.bf16.mxu0 %v6447_v15  ;;  %3474 = vmatprep.subr.bf16.mxu1 %v6450_v26 }
 0x128   : > { %3177 = vmatprep.mubr.f32.mxu1 %v9679_v25  ;;  %v945_v9 = vpop.f32.mrf.mxu0 }
 0x129   : > { %v1299_v32 = vpop.f32.mrf.mxu1  ;;  %5701 = vmatmul.mubr.msk.f32.gmra.mxu1 %vm852_vm1, %v7562_v6  ;;  %v8241_v15 = vadd.f32 %v8132_v52, %v945_v9  ;;  %v6456_v6 = vld [vmem:[%s9570_s1 + $0x7a4] ss:$8 sps:$4 sm:$0xff]   ;;  %v6463_v52 = vld [vmem:[%s9570_s1 + $0x8b0] ss:$8 sps:$4 sm:$0xff]  }
 0x12a   : > { %3077 = vmatpush2.bf16.msra.mxu0 %v6445_v49  ;;  %3475 = vmatpush1.bf16.msra.mxu1 %v6448_v43  ;;  %v8243_v26 = vadd.f32 %v1299_v32, %v1003_v34  ;;  %v8248_v48 = vpop.f32.mrf.mxu0  ;;  %v6471_v34 = vld [vmem:[%s9570_s1 + $0x8a4] ss:$8 sps:$4 sm:$0xff]  }
 0x12b   : > { %9752 = vst [vmem:[#allocation53_spill] sm:$0xff] %v8248_v48  ;;  %v8250_v23 = vpop.f32.mrf.mxu1  ;;  %3476 = vmatprep.subr.bf16.mxu1 %v6453_v39  ;;  %3183 = vmatprep.mubr.f32.mxu1 %v9679_v25  ;;  %v9753_v32 = vld [vmem:[#allocation26_spill] sm:$0xff] }
 0x12c   : > { %3557 = vmatprep.subr.bf16.mxu0 %v6465_v24  ;;  %v1362_v49 = vpop.f32.mrf.mxu0  ;;  %v6454_v24 = vld [vmem:[%s9570_s1 + $0x7a0] ss:$8 sps:$4 sm:$0xff]  }
 0x12d   : > { %3079 = vmatmul.mubr.f32.vlgmr.msra.gmra.mxu0 %v7591_v57  ;;  %v1305_v43 = vpop.f32.mrf.mxu1  ;;  %5702 = vmatmul.mubr.msk.f32.gmra.mxu1 %vm852_vm1, %v7594_v40  ;;  %v8269_v9 = vadd.f32 %v1362_v49, %v8171_v1  ;;  %v6477_v1 = vld [vmem:[%s9570_s1 + $0x894] ss:$8 sps:$4 sm:$0xff]  }
 0x12e   : > { %3477 = vmatpush1.bf16.msra.mxu1 %v6451_v27  ;;  %v8266_v39 = vadd.f32 %v1305_v43, %v8169_v16  ;;  %3084 = vmatprep.mubr.f32.mxu0 %v9753_v32  ;;  %v8277_v57 = vpop.f32.mrf.mxu0  ;;  %v6459_v27 = vld [vmem:[%s9570_s1 + $0x794] ss:$8 sps:$4 sm:$0xff]   ;;  %v6469_v16 = vld [vmem:[%s9570_s1 + $0x8a0] ss:$8 sps:$4 sm:$0xff]  }
 0x12f   : > { %v8275_v48 = vpop.f32.mrf.mxu1  ;;  %9754 = vst [vmem:[#allocation26_spill] sm:$0xff] %v8277_v57  ;;  %3478 = vmatprep.subr.bf16.mxu1 %v6456_v6  ;;  %3558 = vmatpush1.bf16.msra.mxu0 %v6463_v52  ;;  %v9755_v57 = vunpack.c.l.bf16 %v8004_v45  ;;  %v6483_v45 = vld [vmem:[%s9570_s1 + $0x884] ss:$8 sps:$4 sm:$0xff]  }
 0x130   : > { %3189 = vmatprep.mubr.f32.mxu1 %v9679_v25  ;;  %3559 = vmatprep.subr.bf16.mxu0 %v6471_v34  ;;  %v1368_v6 = vpop.f32.mrf.mxu0  ;;  %v6457_v34 = vld [vmem:[%s9570_s1 + $0x790] ss:$8 sps:$4 sm:$0xff]  }
 0x131   : > { %3085 = vmatmul.mubr.f32.gmra.mxu0 %v7627_v60  ;;  %v1311_v43 = vpop.f32.mrf.mxu1  ;;  %5703 = vmatmul.mubr.msk.f32.gmra.mxu1 %vm852_vm1, %v7630_v3  ;;  %v8296_v49 = vadd.f32 %v1368_v6, %v8195_v14  ;;  %v2798_v60 = vrot.slane %v7865_v63, 2  ;;  %v2799_v40 = vrot.slane %v9755_v57, 2  ;;  %v6475_v14 = vld [vmem:[%s9570_s1 + $0x890] ss:$8 sps:$4 sm:$0xff]   ;;  %v9756_v6 = vld [vmem:[#allocation31_spill] sm:$0xff] }
 0x132   : > { %3479 = vmatpush1.bf16.msra.mxu1 %v6454_v24  ;;  %v8293_v52 = vadd.f32 %v1311_v43, %v8193_v56  ;;  %3090 = vmatprep.mubr.f32.mxu0 %v7636_v19  ;;  %v8307_v24 = vpop.f32.mrf.mxu0  ;;  %v6462_v56 = vld [vmem:[%s9570_s1 + $0x784] ss:$8 sps:$4 sm:$0xff]  }
 0x133   : > { %v8305_v13 = vpop.f32.mrf.mxu1  ;;  %3480 = vmatprep.subr.bf16.mxu1 %v6459_v27  ;;  %3560 = vmatpush1.bf16.msra.mxu0 %v6469_v16  ;;  %v8331_v19 = vsel %vm1409_vm2, %v2798_v60, %v2799_v40  ;;  %v6489_v40 = vld [vmem:[%s9570_s1 + $0x934] ss:$8 sps:$4 sm:$0xff]  }
 0x134   : > { %3195 = vmatprep.mubr.f32.mxu1 %v9679_v25  ;;  %3561 = vmatprep.subr.bf16.mxu0 %v6477_v1  ;;  %v1374_v27 = vpop.f32.mrf.mxu0  ;;  %v6460_v1 = vld [vmem:[%s9570_s1 + $0x780] ss:$8 sps:$4 sm:$0xff]   ;;  %9757 = vst [vmem:[#allocation31_spill] sm:$0xff] %v8331_v19 }
 0x135   : > { %3091 = vmatmul.mubr.f32.gmra.mxu0 %v7659_v5  ;;  %v1317_v57 = vpop.f32.mrf.mxu1  ;;  %5704 = vmatmul.mubr.msk.f32.gmra.mxu1 %vm852_vm1, %v7665_v62  ;;  %v8324_v43 = vadd.f32 %v1374_v27, %v8219_v31  ;;  %v6481_v31 = vld [vmem:[%s9570_s1 + $0x880] ss:$8 sps:$4 sm:$0xff]   ;;  %v6474_v27 = vld [vmem:[%s9570_s1 + $0x864] ss:$8 sps:$4 sm:$0xff]  }
 0x136   : > { %3481 = vmatpush1.bf16.msra.mxu1 %v6457_v34  ;;  %v1318_v16 = vadd.f32 %v1317_v57, %v8217_v17  ;;  %3096 = vmatprep.mubr.f32.mxu0 %v9756_v6  ;;  %v8335_v3 = vpop.f32.mrf.mxu0  ;;  %v6468_v17 = vld [vmem:[%s9570_s1 + $0x874] ss:$8 sps:$4 sm:$0xff]  }
 0x137   : > { %v8333_v5 = vpop.f32.mrf.mxu1  ;;  %3482 = vmatprep.subr.bf16.mxu1 %v6462_v56  ;;  %3562 = vmatpush1.bf16.msra.mxu0 %v6475_v14 }
 0x138   : > { %3201 = vmatprep.mubr.f32.mxu1 %v9679_v25  ;;  %3563 = vmatprep.subr.bf16.mxu0 %v6483_v45  ;;  %v1380_v34 = vpop.f32.mrf.mxu0  ;;  %v6466_v45 = vld [vmem:[%s9570_s1 + $0x870] ss:$8 sps:$4 sm:$0xff]  }
 0x139   : > { %3097 = vmatmul.mubr.f32.gmra.mxu0 %v7690_v53  ;;  %v1323_v60 = vpop.f32.mrf.mxu1  ;;  %5705 = vmatmul.mubr.msk.f32.gmra.mxu1 %vm852_vm1, %v8331_v19  ;;  %v8352_v14 = vadd.f32 %v1380_v34, %v8243_v26  ;;  %v6574_v53 = vld [vmem:[%s9570_s1 + $0xa20] ss:$8 sps:$4 sm:$0xff]  }
 0x13a   : > { %3483 = vmatpush1.bf16.msra.mxu1 %v6460_v1  ;;  %v1324_v56 = vadd.f32 %v1323_v60, %v8241_v15  ;;  %3102 = vmatprep.mubr.f32.mxu0 %v7696_v0  ;;  %v8358_v57 = vpop.f32.mrf.mxu0  ;;  %v6472_v1 = vld [vmem:[%s9570_s1 + $0x860] ss:$8 sps:$4 sm:$0xff]  }
 0x13b   : > { %3484 = vmatprep.subr.bf16.mxu1 %v6468_v17  ;;  %3564 = vmatpush1.bf16.msra.mxu0 %v6481_v31  ;;  %v2795_v31 = vrot.slane %v7906_v37, 2 }
 0x13c   : > { %3905 = vmatprep.subr.bf16.mxu0 %v6489_v40  ;;  %3500 = vmatprep.mubr.f32.mxu1 %v7100_v35  ;;  %v1386_v15 = vpop.f32.mrf.mxu0  ;;  %v6480_v35 = vld [vmem:[%s9570_s1 + $0x854] ss:$8 sps:$4 sm:$0xff]   ;;  %v9758_v40 = vunpack.c.h.bf16 %v8075_v18 }
 0x13d   : > { %3103 = vmatmul.mubr.f32.gmra.mxu0 %v7711_v12  ;;  %v8366_v26 = vadd.f32 %v1386_v15, %v8266_v39  ;;  %v9759_v15 = vunpack.c.l.bf16 %v8075_v18 }
 0x13e   : > { %3485 = vmatpush2.bf16.msra.mxu1 %v6466_v45  ;;  %3108 = vmatprep.mubr.f32.mxu0 %v7717_v7  ;;  %v8372_v17 = vpop.f32.mrf.mxu0  ;;  %v2796_v60 = vrot.slane %v9758_v40, 2  ;;  %v6478_v45 = vld [vmem:[%s9570_s1 + $0x850] ss:$8 sps:$4 sm:$0xff]  }
 0x13f   : > { %3486 = vmatprep.subr.bf16.mxu1 %v6474_v27  ;;  %v2792_v27 = vrot.slane %v7912_v54, 2  ;;  %v2793_v7 = vrot.slane %v9759_v15, 2 }
 0x140   : > { %v1392_v39 = vpop.f32.mrf.mxu0  ;;  %v8394_v40 = vsel %vm1409_vm2, %v2795_v31, %v2796_v60  ;;  %v6492_v60 = vld [vmem:[%s9570_s1 + $0x834] ss:$8 sps:$4 sm:$0xff]  }
 0x141   : > { %3109 = vmatmul.mubr.f32.gmra.mxu0 %v7731_v29  ;;  %v8382_v34 = vadd.f32 %v1392_v39, %v8293_v52  ;;  %9760 = vst [vmem:[#allocation54_spill] sm:$0xff] %v8394_v40  ;;  %v6486_v52 = vld [vmem:[%s9570_s1 + $0x844] ss:$8 sps:$4 sm:$0xff]   ;;  %v8404_v18 = vsel %vm1409_vm2, %v2792_v27, %v2793_v7  ;;  %v6487_v7 = vld [vmem:[%s9570_s1 + $0x930] ss:$8 sps:$4 sm:$0xff]  }
 0x142   : > { %3487 = vmatpush2.bf16.msra.mxu1 %v6472_v1  ;;  %3114 = vmatprep.mubr.f32.mxu0 %v7737_v4  ;;  %v8391_v12 = vpop.f32.mrf.mxu0  ;;  %9761 = vst [vmem:[#allocation55_spill] sm:$0xff] %v8404_v18  ;;  %v6490_v27 = vld [vmem:[%s9570_s1 + $0x830] ss:$8 sps:$4 sm:$0xff]   ;;  %v6517_v29 = vld [vmem:[%s9570_s1 + $0x8e0] ss:$8 sps:$4 sm:$0xff]  }
 0x143   : > { %3488 = vmatprep.subr.bf16.mxu1 %v6480_v35  ;;  %v6484_v35 = vld [vmem:[%s9570_s1 + $0x840] ss:$8 sps:$4 sm:$0xff]  }
 0x144   : > { %v1398_v1 = vpop.f32.mrf.mxu0 }
 0x145   : > { %3115 = vmatmul.mubr.f32.gmra.mxu0 %v7748_v42  ;;  %v8400_v39 = vadd.f32 %v1398_v1, %v1318_v16  ;;  %v8495_v42 = vpop.f32.mrf.mxu1 }
 0x146   : > { %3489 = vmatpush2.bf16.msra.mxu1 %v6478_v45  ;;  %3120 = vmatprep.mubr.f32.mxu0 %v8394_v40  ;;  %v8409_v31 = vpop.f32.mrf.mxu0  ;;  %v6513_v40 = vld [vmem:[%s9570_s1 + $0x8f4] ss:$8 sps:$4 sm:$0xff]  }
 0x147   : > { %3490 = vmatprep.subr.bf16.mxu1 %v6486_v52  ;;  %v6495_v52 = vld [vmem:[%s9570_s1 + $0x924] ss:$8 sps:$4 sm:$0xff]  }
 0x148   : > { %v1404_v16 = vpop.f32.mrf.mxu0 }
 0x149   : > { %3121 = vmatmul.mubr.f32.gmra.mxu0 %v8404_v18  ;;  %v8415_v45 = vadd.f32 %v1404_v16, %v1324_v56  ;;  %v6498_v56 = vld [vmem:[%s9570_s1 + $0x824] ss:$8 sps:$4 sm:$0xff]   ;;  %v6501_v16 = vld [vmem:[%s9570_s1 + $0x914] ss:$8 sps:$4 sm:$0xff]  }
 0x14a   : > { %3491 = vmatpush2.bf16.msra.mxu1 %v6484_v35  ;;  %3581 = vmatprep.mubr.f32.mxu0 %v9679_v25  ;;  %v8424_v15 = vpop.f32.mrf.mxu0  ;;  %v6493_v35 = vld [vmem:[%s9570_s1 + $0x920] ss:$8 sps:$4 sm:$0xff]   ;;  %v6507_v18 = vld [vmem:[%s9570_s1 + $0x904] ss:$8 sps:$4 sm:$0xff]  }
 0x14b   : > { %3492 = vmatprep.subr.bf16.mxu1 %v6492_v60  ;;  %v6496_v60 = vld [vmem:[%s9570_s1 + $0x820] ss:$8 sps:$4 sm:$0xff]  }
 0x14c   : > { %v1870_v1 = vpop.f32.mrf.mxu0 }
 0x14d   : > { %5786 = vmatmul.mubr.msk.f32.vlgmr.msra.gmra.mxu0 %vm852_vm1, %v6919_v58  ;;  %v6504_v58 = vld [vmem:[%s9570_s1 + $0x814] ss:$8 sps:$4 sm:$0xff]  }
 0x14e   : > { %3906 = vmatpush1.bf16.msra.mxu0 %v6487_v7  ;;  %3493 = vmatpush2.bf16.msra.mxu1 %v6490_v27  ;;  %v8446_v7 = vpop.f32.mrf.mxu0 }
 0x14f   : > { %3907 = vmatprep.subr.bf16.mxu0 %v6495_v52  ;;  %3494 = vmatprep.subr.bf16.mxu1 %v6498_v56  ;;  %v6499_v52 = vld [vmem:[%s9570_s1 + $0x910] ss:$8 sps:$4 sm:$0xff]  }
 0x150   : > { %3587 = vmatprep.mubr.f32.mxu0 %v9679_v25  ;;  %v1876_v27 = vpop.f32.mrf.mxu0  ;;  %v6502_v56 = vld [vmem:[%s9570_s1 + $0x810] ss:$8 sps:$4 sm:$0xff]  }
 0x151   : > { %5787 = vmatmul.mubr.msk.f32.gmra.mxu0 %vm852_vm1, %v6921_v59  ;;  %v6510_v59 = vld [vmem:[%s9570_s1 + $0x804] ss:$8 sps:$4 sm:$0xff]  }
 0x152   : > { %3908 = vmatpush1.bf16.msra.mxu0 %v6493_v35  ;;  %3495 = vmatpush2.bf16.msra.mxu1 %v6496_v60  ;;  %v8463_v35 = vpop.f32.mrf.mxu0 }
 0x153   : > { %3909 = vmatprep.subr.bf16.mxu0 %v6501_v16  ;;  %3496 = vmatprep.subr.bf16.mxu1 %v6504_v58  ;;  %v6505_v16 = vld [vmem:[%s9570_s1 + $0x900] ss:$8 sps:$4 sm:$0xff]  }
 0x154   : > { %3593 = vmatprep.mubr.f32.mxu0 %v9679_v25  ;;  %v8468_v60 = vpop.f32.mrf.mxu0  ;;  %v6508_v58 = vld [vmem:[%s9570_s1 + $0x800] ss:$8 sps:$4 sm:$0xff]  }
 0x155   : > { %5788 = vmatmul.mubr.msk.f32.gmra.mxu0 %vm852_vm1, %v6977_v22  ;;  %v6516_v22 = vld [vmem:[%s9570_s1 + $0x9f4] ss:$8 sps:$4 sm:$0xff]  }
 0x156   : > { %3910 = vmatpush1.bf16.msra.mxu0 %v6499_v52  ;;  %3497 = vmatpush2.bf16.msra.mxu1 %v6502_v56  ;;  %v8482_v52 = vpop.f32.mrf.mxu0 }
 0x157   : > { %3911 = vmatprep.subr.bf16.mxu0 %v6507_v18  ;;  %3498 = vmatprep.subr.bf16.mxu1 %v6510_v59  ;;  %v6511_v18 = vld [vmem:[%s9570_s1 + $0x8f0] ss:$8 sps:$4 sm:$0xff]  }
 0x158   : > { %3599 = vmatprep.mubr.f32.mxu0 %v9679_v25  ;;  %v8487_v56 = vpop.f32.mrf.mxu0  ;;  %v6514_v59 = vld [vmem:[%s9570_s1 + $0x9f0] ss:$8 sps:$4 sm:$0xff]  }
 0x159   : > { %5789 = vmatmul.mubr.msk.f32.gmra.mxu0 %vm852_vm1, %v6993_v28  ;;  %v6519_v28 = vld [vmem:[%s9570_s1 + $0x8e4] ss:$8 sps:$4 sm:$0xff]  }
 0x15a   : > { %3912 = vmatpush1.bf16.msra.mxu0 %v6505_v16  ;;  %3499 = vmatpush2.bf16.msra.mxu1 %v6508_v58  ;;  %v8500_v4 = vpop.f32.mrf.mxu0  ;;  %v6525_v16 = vld [vmem:[%s9570_s1 + $0x9e4] ss:$8 sps:$4 sm:$0xff]  }
 0x15b   : > { %3913 = vmatprep.subr.bf16.mxu0 %v6513_v40  ;;  %3994 = vmatprep.subr.bf16.mxu1 %v6516_v22 }
 0x15c   : > { %3605 = vmatprep.mubr.f32.mxu0 %v9679_v25  ;;  %v8509_v40 = vpop.f32.mrf.mxu0 }
 0x15d   : > { %3501 = vmatmul.mubr.f32.vlgmr.msra.gmra.mxu1 %v7114_v46  ;;  %v1789_v58 = vpop.f32.mrf.mxu1  ;;  %5790 = vmatmul.mubr.msk.f32.gmra.mxu0 %vm852_vm1, %v7034_v47  ;;  %v6522_v46 = vld [vmem:[%s9570_s1 + $0x8d4] ss:$8 sps:$4 sm:$0xff]   ;;  %v6523_v47 = vld [vmem:[%s9570_s1 + $0x9e0] ss:$8 sps:$4 sm:$0xff]  }
 0x15e   : > { %3914 = vmatpush1.bf16.msra.mxu0 %v6511_v18  ;;  %3995 = vmatpush1.bf16.msra.mxu1 %v6514_v59  ;;  %v1871_v22 = vadd.f32 %v1870_v1, %v1789_v58  ;;  %v1896_v59 = vpop.f32.mrf.mxu0 }
 0x15f   : > { %3506 = vmatprep.mubr.f32.mxu1 %v7141_v36  ;;  %3915 = vmatprep.subr.bf16.mxu0 %v6519_v28  ;;  %v8515_v0 = vpop.f32.mrf.mxu1  ;;  %v6534_v36 = vld [vmem:[%s9570_s1 + $0x9d4] ss:$8 sps:$4 sm:$0xff]  }
 0x160   : > { %v8524_v1 = vadd.f32 %v1871_v22, %v8269_v9  ;;  %3996 = vmatprep.subr.bf16.mxu1 %v6525_v16  ;;  %3611 = vmatprep.mubr.f32.mxu0 %v9679_v25  ;;  %v6520_v9 = vld [vmem:[%s9570_s1 + $0x8d0] ss:$8 sps:$4 sm:$0xff]   ;;  %v371_v16 = vld [vmem:[%s6801_s21 + $0xe0] sm:$0xf] }
 0x161   : > { %3507 = vmatmul.mubr.f32.gmra.mxu1 %v7155_v38  ;;  %v1795_v18 = vpop.f32.mrf.mxu1  ;;  %5791 = vmatmul.mubr.msk.f32.gmra.mxu0 %vm852_vm1, %v7072_v10  ;;  %v6528_v38 = vld [vmem:[%s9570_s1 + $0x8c4] ss:$8 sps:$4 sm:$0xff]   ;;  %v6532_v10 = vld [vmem:[%s9570_s1 + $0x9d0] ss:$8 sps:$4 sm:$0xff]   ;;  %v1900_v22 = vpop.f32.mrf.mxu0 }
 0x162   : > { %3916 = vmatpush1.bf16.msra.mxu0 %v6517_v29  ;;  %v1877_v28 = vadd.f32 %v1876_v27, %v1795_v18  ;;  %3512 = vmatprep.mubr.f32.mxu1 %v7164_v33  ;;  %v6543_v33 = vld [vmem:[%s9570_s1 + $0x9c4] ss:$8 sps:$4 sm:$0xff]  }
 0x163   : > { %3917 = vmatprep.subr.bf16.mxu0 %v6522_v46  ;;  %v8538_v58 = vpop.f32.mrf.mxu1  ;;  %3997 = vmatpush1.bf16.msra.mxu1 %v6523_v47  ;;  %v8556_v46 = vunpack.c.l.bf16 %v371_v16  ;;  %v6526_v47 = vld [vmem:[%s9570_s1 + $0x8c0] ss:$8 sps:$4 sm:$0xff]  }
 0x164   : > { %v8547_v29 = vadd.f32 %v1877_v28, %v8296_v49  ;;  %3998 = vmatprep.subr.bf16.mxu1 %v6534_v36  ;;  %3617 = vmatprep.mubr.f32.mxu0 %v9679_v25  ;;  %v1902_v28 = vpop.f32.mrf.mxu0 }
 0x165   : > { %3513 = vmatmul.mubr.f32.gmra.mxu1 %v7206_v50  ;;  %v1801_v27 = vpop.f32.mrf.mxu1  ;;  %5792 = vmatmul.mubr.msk.f32.gmra.mxu0 %vm852_vm1, %v7865_v63  ;;  %v6531_v50 = vld [vmem:[%s9570_s1 + $0x9b4] ss:$8 sps:$4 sm:$0xff]   ;;  %v6541_v63 = vld [vmem:[%s9570_s1 + $0x9c0] ss:$8 sps:$4 sm:$0xff]  }
 0x166   : > { %3918 = vmatpush1.bf16.msra.mxu0 %v6520_v9  ;;  %v1883_v49 = vadd.f32 %v8468_v60, %v1801_v27  ;;  %3518 = vmatprep.mubr.f32.mxu1 %v7212_v21  ;;  %v6552_v21 = vld [vmem:[%s9570_s1 + $0xa74] ss:$8 sps:$4 sm:$0xff]  }
 0x167   : > { %3919 = vmatprep.subr.bf16.mxu0 %v6528_v38  ;;  %v8563_v36 = vpop.f32.mrf.mxu1  ;;  %3999 = vmatpush1.bf16.msra.mxu1 %v6532_v10 }
 0x168   : > { %v8572_v60 = vadd.f32 %v1883_v49, %v8324_v43  ;;  %4000 = vmatprep.subr.bf16.mxu1 %v6543_v33  ;;  %3623 = vmatprep.mubr.f32.mxu0 %v9679_v25  ;;  %v6529_v43 = vld [vmem:[%s9570_s1 + $0x9b0] ss:$8 sps:$4 sm:$0xff]  }
 0x169   : > { %3519 = vmatmul.mubr.f32.gmra.mxu1 %v7246_v30  ;;  %v1807_v18 = vpop.f32.mrf.mxu1  ;;  %5793 = vmatmul.mubr.msk.f32.gmra.mxu0 %vm852_vm1, %v8556_v46  ;;  %v6537_v30 = vld [vmem:[%s9570_s1 + $0x9a4] ss:$8 sps:$4 sm:$0xff]  }
 0x16a   : > { %3920 = vmatpush1.bf16.msra.mxu0 %v6526_v47  ;;  %v1889_v9 = vadd.f32 %v8487_v56, %v1807_v18  ;;  %3524 = vmatprep.mubr.f32.mxu1 %v7266_v41  ;;  %v1906_v56 = vpop.f32.mrf.mxu0 }
 0x16b   : > { %3921 = vmatprep.subr.bf16.mxu0 %v6531_v50  ;;  %v1809_v16 = vpop.f32.mrf.mxu1  ;;  %4001 = vmatpush1.bf16.msra.mxu1 %v6541_v63  ;;  %v6538_v50 = vld [vmem:[%s9570_s1 + $0x990] ss:$8 sps:$4 sm:$0xff]  }
 0x16c   : > { %v8590_v38 = vadd.f32 %v1889_v9, %v8352_v14  ;;  %v8593_v10 = vadd.f32 %v8500_v4, %v1809_v16  ;;  %4337 = vmatprep.subr.bf16.mxu1 %v6552_v21  ;;  %3937 = vmatprep.mubr.f32.mxu0 %v9726_v51  ;;  %v6535_v14 = vld [vmem:[%s9570_s1 + $0x9a0] ss:$8 sps:$4 sm:$0xff]   ;;  %v6540_v4 = vld [vmem:[%s9570_s1 + $0x994] ss:$8 sps:$4 sm:$0xff]  }
 0x16d   : > { %3525 = vmatmul.mubr.f32.gmra.mxu1 %v7289_v44  ;;  %v1813_v41 = vpop.f32.mrf.mxu1  ;;  %v370_v51 = vld [vmem:[%s6801_s21 + $0xd8] sm:$0xff] }
 0x16e   : > { %3922 = vmatpush2.bf16.msra.mxu0 %v6529_v43  ;;  %v1895_v33 = vadd.f32 %v8509_v40, %v1813_v41  ;;  %3530 = vmatprep.mubr.f32.mxu1 %v7298_v8  ;;  %v1908_v8 = vpop.f32.mrf.mxu0  ;;  %v8616_v63 = vunpack.c.h.bf16 %v370_v51  ;;  %v6544_v43 = vld [vmem:[%s9570_s1 + $0x980] ss:$8 sps:$4 sm:$0xff]  }
 0x16f   : > { %3923 = vmatprep.subr.bf16.mxu0 %v6537_v30  ;;  %v1815_v27 = vpop.f32.mrf.mxu1 }
 0x170   : > { %v8607_v44 = vadd.f32 %v1895_v33, %v8366_v26  ;;  %v8609_v49 = vadd.f32 %v1896_v59, %v1815_v27  ;;  %v6546_v26 = vld [vmem:[%s9570_s1 + $0x984] ss:$8 sps:$4 sm:$0xff]   ;;  %v1912_v18 = vpop.f32.mrf.mxu0  ;;  %v6547_v33 = vld [vmem:[%s9570_s1 + $0x970] ss:$8 sps:$4 sm:$0xff]  }
 0x171   : > { %3531 = vmatmul.mubr.f32.gmra.mxu1 %v7303_v2  ;;  %v1819_v40 = vpop.f32.mrf.mxu1  ;;  %v6555_v27 = vld [vmem:[%s9570_s1 + $0x964] ss:$8 sps:$4 sm:$0xff]  }
 0x172   : > { %3924 = vmatpush2.bf16.msra.mxu0 %v6535_v14  ;;  %v1901_v47 = vadd.f32 %v1900_v22, %v1819_v40  ;;  %3536 = vmatprep.mubr.f32.mxu1 %v7906_v37  ;;  %v8627_v22 = vunpack.c.l.bf16 %v370_v51  ;;  %v1914_v41 = vpop.f32.mrf.mxu0  ;;  %v6550_v14 = vld [vmem:[%s9570_s1 + $0xa70] ss:$8 sps:$4 sm:$0xff]  }
 0x173   : > { %3925 = vmatprep.subr.bf16.mxu0 %v6540_v4  ;;  %v1821_v21 = vpop.f32.mrf.mxu1  ;;  %v6558_v4 = vld [vmem:[%s9570_s1 + $0xa64] ss:$8 sps:$4 sm:$0xff]  }
 0x174   : > { %v8622_v2 = vadd.f32 %v1901_v47, %v8382_v34  ;;  %v8624_v59 = vadd.f32 %v1902_v28, %v1821_v21  ;;  %v6549_v34 = vld [vmem:[%s9570_s1 + $0x974] ss:$8 sps:$4 sm:$0xff]   ;;  %v6556_v21 = vld [vmem:[%s9570_s1 + $0xa60] ss:$8 sps:$4 sm:$0xff]  }
 0x175   : > { %3537 = vmatmul.mubr.f32.gmra.mxu1 %v7912_v54  ;;  %v1825_v37 = vpop.f32.mrf.mxu1 }
 0x176   : > { %3926 = vmatpush2.bf16.msra.mxu0 %v6538_v50  ;;  %v1907_v9 = vadd.f32 %v1906_v56, %v1825_v37  ;;  %3542 = vmatprep.mubr.f32.mxu1 %v8616_v63  ;;  %v6553_v50 = vld [vmem:[%s9570_s1 + $0x960] ss:$8 sps:$4 sm:$0xff]   ;;  %v6564_v37 = vld [vmem:[%s9570_s1 + $0xa54] ss:$8 sps:$4 sm:$0xff]  }
 0x177   : > { %3927 = vmatprep.subr.bf16.mxu0 %v6546_v26  ;;  %v1827_v16 = vpop.f32.mrf.mxu1  ;;  %v6561_v26 = vld [vmem:[%s9570_s1 + $0x954] ss:$8 sps:$4 sm:$0xff]  }
 0x178   : > { %v8637_v54 = vadd.f32 %v1907_v9, %v8400_v39  ;;  %v8639_v28 = vadd.f32 %v1908_v8, %v1827_v16  ;;  %v9762_v8 = vld [vmem:[#allocation2_spill] sm:$0xff]  ;;  %v6562_v16 = vld [vmem:[%s9570_s1 + $0xa50] ss:$8 sps:$4 sm:$0xff]  }
 0x179   : > { %3543 = vmatmul.mubr.f32.gmra.mxu1 %v8627_v22  ;;  %v1831_v30 = vpop.f32.mrf.mxu1 }
 0x17a   : > { %3928 = vmatpush2.bf16.msra.mxu0 %v6544_v43  ;;  %v1913_v56 = vadd.f32 %v1912_v18, %v1831_v30  ;;  %4018 = vmatprep.mubr.f32.mxu1 %v9679_v25  ;;  %v9763_v18 = vld [vmem:[#allocation3_spill] sm:$0xff]  ;;  %v6559_v43 = vld [vmem:[%s9570_s1 + $0x950] ss:$8 sps:$4 sm:$0xff]  }
 0x17b   : > { %3929 = vmatprep.subr.bf16.mxu0 %v6549_v34  ;;  %v1833_v39 = vpop.f32.mrf.mxu1  ;;  %v6567_v34 = vld [vmem:[%s9570_s1 + $0x944] ss:$8 sps:$4 sm:$0xff]  }
 0x17c   : > { %v8656_v51 = vadd.f32 %v1913_v56, %v8415_v45  ;;  %v8658_v40 = vadd.f32 %v1914_v41, %v1833_v39  ;;  %v6570_v30 = vld [vmem:[%s9570_s1 + $0xa44] ss:$8 sps:$4 sm:$0xff]   ;;  %v9764_v56 = vld [vmem:[#allocation4_spill] sm:$0xff]  ;;  %v6568_v39 = vld [vmem:[%s9570_s1 + $0xa40] ss:$8 sps:$4 sm:$0xff]  }
 0x17d   : > { %5874 = vmatmul.mubr.msk.f32.vlgmr.msra.gmra.mxu1 %vm852_vm1, %v9762_v8  ;;  %v2292_v47 = vpop.f32.mrf.mxu1  ;;  %v6588_v8 = vld [vmem:[%s9570_s1 + $0xb34] ss:$8 sps:$4 sm:$0xff]  }
 0x17e   : > { %3930 = vmatpush2.bf16.msra.mxu0 %v6547_v33  ;;  %4338 = vmatpush1.bf16.msra.mxu1 %v6550_v14  ;;  %v6565_v14 = vld [vmem:[%s9570_s1 + $0x940] ss:$8 sps:$4 sm:$0xff]  }
 0x17f   : > { %3931 = vmatprep.subr.bf16.mxu0 %v6555_v27  ;;  %4339 = vmatprep.subr.bf16.mxu1 %v6558_v4  ;;  %v2294_v45 = vpop.f32.mrf.mxu1  ;;  %v6573_v27 = vld [vmem:[%s9570_s1 + $0xa34] ss:$8 sps:$4 sm:$0xff]  }
 0x180   : > { %4024 = vmatprep.mubr.f32.mxu1 %v9679_v25 }
 0x181   : > { %5875 = vmatmul.mubr.msk.f32.gmra.mxu1 %vm852_vm1, %v9763_v18  ;;  %v8677_v9 = vpop.f32.mrf.mxu1  ;;  %v6576_v18 = vld [vmem:[%s9570_s1 + $0xa24] ss:$8 sps:$4 sm:$0xff]  }
 0x182   : > { %3932 = vmatpush2.bf16.msra.mxu0 %v6553_v50  ;;  %4340 = vmatpush1.bf16.msra.mxu1 %v6556_v21  ;;  %v9765_v50 = vld [vmem:[#allocation5_spill] sm:$0xff] }
 0x183   : > { %3933 = vmatprep.subr.bf16.mxu0 %v6561_v26  ;;  %4341 = vmatprep.subr.bf16.mxu1 %v6564_v37  ;;  %v8691_v41 = vpop.f32.mrf.mxu1  ;;  %v6571_v26 = vld [vmem:[%s9570_s1 + $0xa30] ss:$8 sps:$4 sm:$0xff]   ;;  %v8721_v37 = vld [vmem:[%s6801_s21 + $0xec] sm:$0x1] }
 0x184   : > { %4030 = vmatprep.mubr.f32.mxu1 %v9679_v25 }
 0x185   : > { %5876 = vmatmul.mubr.msk.f32.gmra.mxu1 %vm852_vm1, %v9764_v56  ;;  %v8696_v33 = vpop.f32.mrf.mxu1 }
 0x186   : > { %3934 = vmatpush2.bf16.msra.mxu0 %v6559_v43  ;;  %4342 = vmatpush1.bf16.msra.mxu1 %v6562_v16  ;;  %v6586_v16 = vld [vmem:[%s9570_s1 + $0xb30] ss:$8 sps:$4 sm:$0xff]  }
 0x187   : > { %3935 = vmatprep.subr.bf16.mxu0 %v6567_v34  ;;  %4343 = vmatprep.subr.bf16.mxu1 %v6570_v30  ;;  %v8707_v4 = vpop.f32.mrf.mxu1  ;;  %v6597_v34 = vld [vmem:[%s9570_s1 + $0xb24] ss:$8 sps:$4 sm:$0xff]   ;;  %v9766_v30 = vld [vmem:[#allocation40_spill] sm:$0xff] }
 0x188   : > { %4036 = vmatprep.mubr.f32.mxu1 %v9679_v25  ;;  %v993_v56 = vadd.f32 %v9766_v30, %v8123_v55 }
 0x189   : > { %5877 = vmatmul.mubr.msk.f32.gmra.mxu1 %vm852_vm1, %v9765_v50  ;;  %v8715_v21 = vpop.f32.mrf.mxu1 }
 0x18a   : > { %3936 = vmatpush2.bf16.msra.mxu0 %v6565_v14  ;;  %4344 = vmatpush1.bf16.msra.mxu1 %v6568_v39  ;;  %v9767_v39 = vld [vmem:[#allocation6_spill] sm:$0xff]  ;;  %v1290_v55 = vadd.f32 %v8205_v20, %v993_v56  ;;  %v9770_v56 = vld [vmem:[#allocation41_spill] sm:$0xff] }
 0x18b   : > { %4345 = vmatprep.subr.bf16.mxu1 %v6573_v27  ;;  %4042 = vmatprep.mubr.f32.mxu1 %v9679_v25  ;;  %v8727_v43 = vpop.f32.mrf.mxu1  ;;  %v6595_v20 = vld [vmem:[%s9570_s1 + $0xb20] ss:$8 sps:$4 sm:$0xff]  }
 0x18c   : > { %4426 = vmatprep.subr.bf16.mxu0 %v6588_v8  ;;  %v9768_v8 = vld [vmem:[#allocation11_spill] sm:$0xff] }
 0x18d   : > { %3938 = vmatmul.mubr.f32.vlgmr.msra.gmra.mxu0 %v9727_v61  ;;  %v2211_v14 = vpop.f32.mrf.mxu0  ;;  %5878 = vmatmul.mubr.msk.f32.gmra.mxu1 %vm852_vm1, %v9767_v39  ;;  %v8740_v27 = vpop.f32.mrf.mxu1  ;;  %v6579_v61 = vld [vmem:[%s9570_s1 + $0xa14] ss:$8 sps:$4 sm:$0xff]   ;;  %v1879_v39 = vadd.f32 %v8463_v35, %v8538_v58  ;;  %v9772_v35 = vld [vmem:[#allocation7_spill] sm:$0xff] }
 0x18e   : > { %4346 = vmatpush1.bf16.msra.mxu1 %v6571_v26  ;;  %v2293_v19 = vadd.f32 %v2292_v47, %v2211_v14  ;;  %3943 = vmatprep.mubr.f32.mxu0 %v9768_v8  ;;  %v9771_v8 = vld [vmem:[#allocation12_spill] sm:$0xff] }
 0x18f   : > { %v2213_v30 = vpop.f32.mrf.mxu0  ;;  %4347 = vmatprep.subr.bf16.mxu1 %v6576_v18  ;;  %4427 = vmatpush1.bf16.msra.mxu0 %v6586_v16  ;;  %v9769_v18 = vld [vmem:[#allocation47_spill] sm:$0xff]  ;;  %v8765_v50 = vpop.f32.mrf.mxu1 }
 0x190   : > { %v8754_v47 = vadd.f32 %v2293_v19, %v8524_v1  ;;  %v8756_v26 = vadd.f32 %v2294_v45, %v2213_v30  ;;  %4048 = vmatprep.mubr.f32.mxu1 %v9679_v25  ;;  %4428 = vmatprep.subr.bf16.mxu0 %v6597_v34  ;;  %v999_v14 = vadd.f32 %v9770_v56, %v9769_v18  ;;  %v3657_v19 = vrot.slane %v8556_v46, 1  ;;  %v9774_v30 = vld [vmem:[#allocation13_spill] sm:$0xff] }
 0x191   : > { %3944 = vmatmul.mubr.f32.gmra.mxu0 %v9771_v8  ;;  %v2217_v16 = vpop.f32.mrf.mxu0  ;;  %5879 = vmatmul.mubr.msk.f32.gmra.mxu1 %vm852_vm1, %v9772_v35  ;;  %v9773_v1 = vunpack.c.l.bf16 %v8721_v37  ;;  %v1371_v45 = vadd.f32 %v8307_v24, %v1290_v55  ;;  %v6577_v18 = vld [vmem:[%s9570_s1 + $0xa10] ss:$8 sps:$4 sm:$0xff]   ;;  %v6582_v35 = vld [vmem:[%s9570_s1 + $0xa04] ss:$8 sps:$4 sm:$0xff]  }
 0x192   : > { %4348 = vmatpush1.bf16.msra.mxu1 %v6574_v53  ;;  %v2299_v34 = vadd.f32 %v8677_v9, %v2217_v16  ;;  %3949 = vmatprep.mubr.f32.mxu0 %v9774_v30  ;;  %v1296_v56 = vadd.f32 %v8229_v11, %v999_v14  ;;  %v1885_v53 = vadd.f32 %v8482_v52, %v8563_v36  ;;  %v6606_v11 = vld [vmem:[%s9570_s1 + $0xb14] ss:$8 sps:$4 sm:$0xff]  }
 0x193   : > { %v3658_v58 = vrot.slane %v9773_v1, 1  ;;  %v2219_v8 = vpop.f32.mrf.mxu0  ;;  %4349 = vmatprep.subr.bf16.mxu1 %v6579_v61  ;;  %4054 = vmatprep.mubr.f32.mxu1 %v9679_v25  ;;  %v1920_v24 = vadd.f32 %v1879_v39, %v1371_v45  ;;  %v9775_v61 = vld [vmem:[#allocation49_spill] sm:$0xff]  ;;  %v9776_v14 = vld [vmem:[#allocation8_spill] sm:$0xff]  ;;  %v9777_v1 = vld [vmem:[#allocation14_spill] sm:$0xff]  ;;  %v8795_v39 = vpop.f32.mrf.mxu1 }
 0x194   : > { %v8786_v9 = vadd.f32 %v2299_v34, %v8547_v29  ;;  %v2301_v55 = vadd.f32 %v8691_v41, %v2219_v8  ;;  %4429 = vmatpush1.bf16.msra.mxu0 %v6595_v20  ;;  %v1005_v16 = vadd.f32 %v9776_v14, %v9775_v61  ;;  %v9778_v45 = vld [vmem:[#allocation10_spill] sm:$0xff]  ;;  %v1377_v29 = vadd.f32 %v8335_v3, %v1296_v56  ;;  %v9779_v20 = vld [vmem:[#allocation15_spill] sm:$0xff]  ;;  %v6604_v3 = vld [vmem:[%s9570_s1 + $0xb10] ss:$8 sps:$4 sm:$0xff]  }
 0x195   : > { %3950 = vmatmul.mubr.f32.gmra.mxu0 %v9777_v1  ;;  %v2223_v30 = vpop.f32.mrf.mxu0  ;;  %5880 = vmatmul.mubr.msk.f32.gmra.mxu1 %vm852_vm1, %v9778_v45  ;;  %v3659_v52 = vsel %vm522_vm0, %v3657_v19, %v3658_v58  ;;  %v6580_v34 = vld [vmem:[%s9570_s1 + $0xa00] ss:$8 sps:$4 sm:$0xff]   ;;  %v6585_v19 = vld [vmem:[%s9570_s1 + $0xaf4] ss:$8 sps:$4 sm:$0xff]  }
 0x196   : > { %v8801_v36 = vadd.f32 %v2301_v55, %v1920_v24  ;;  %4350 = vmatpush1.bf16.msra.mxu1 %v6577_v18  ;;  %v2305_v41 = vadd.f32 %v8696_v33, %v2223_v30  ;;  %3955 = vmatprep.mubr.f32.mxu0 %v9779_v20  ;;  %v1302_v33 = vadd.f32 %v8250_v23, %v1005_v16  ;;  %v8821_v24 = vld [vmem:[%s6801_s21 + $0xe4] sm:$0x11]  ;;  %v9780_v55 = vld [vmem:[#allocation21_spill] sm:$0xff]  ;;  %v9782_v1 = vld [vmem:[#allocation16_spill] sm:$0xff]  ;;  %v2324_v23 = vpop.f32.mrf.mxu1  ;;  %s9543_s21 = scalar_lea.vmem %s9578_s9, %s6001_s14 }
 0x197   : > { %v2225_v8 = vpop.f32.mrf.mxu0  ;;  %4351 = vmatprep.subr.bf16.mxu1 %v6582_v35  ;;  %4060 = vmatprep.mubr.f32.mxu1 %v9679_v25  ;;  %v1922_v58 = vadd.f32 %v1885_v53, %v1377_v29  ;;  %v6615_v35 = vld [vmem:[%s9570_s1 + $0xb04] ss:$8 sps:$4 sm:$0xff]   ;;  %v9781_v61 = vld [vmem:[#allocation9_spill] sm:$0xff] }
 0x198   : > { %v8817_v18 = vadd.f32 %v2305_v41, %v8572_v60  ;;  %v2307_v56 = vadd.f32 %v8707_v4, %v2225_v8  ;;  %4430 = vmatprep.subr.bf16.mxu0 %v6606_v11  ;;  %v1011_v14 = vadd.f32 %v9781_v61, %v9780_v55  ;;  %v1383_v60 = vadd.f32 %v8358_v57, %v1302_v33  ;;  %v9783_v11 = vld [vmem:[#allocation17_spill] sm:$0xff]  ;;  %v9785_v8 = vld [vmem:[#allocation42_spill] sm:$0xff] }
 0x199   : > { %3956 = vmatmul.mubr.f32.gmra.mxu0 %v9782_v1  ;;  %v2229_v30 = vpop.f32.mrf.mxu0  ;;  %5881 = vmatmul.mubr.msk.f32.gmra.mxu1 %vm852_vm1, %v3659_v52  ;;  %v6583_v16 = vld [vmem:[%s9570_s1 + $0xaf0] ss:$8 sps:$4 sm:$0xff]   ;;  %v6591_v52 = vld [vmem:[%s9570_s1 + $0xae4] ss:$8 sps:$4 sm:$0xff]   ;;  %v432_v57 = vunpack.c.h.bf16 %v8821_v24  ;;  %v6594_v61 = vld [vmem:[%s9570_s1 + $0xad4] ss:$8 sps:$4 sm:$0xff]  }
 0x19a   : > { %v8831_v53 = vadd.f32 %v2307_v56, %v1922_v58  ;;  %4352 = vmatpush1.bf16.msra.mxu1 %v6580_v34  ;;  %v2311_v4 = vadd.f32 %v8715_v21, %v2229_v30  ;;  %3961 = vmatprep.mubr.f32.mxu0 %v9783_v11  ;;  %v1308_v45 = vadd.f32 %v8275_v48, %v1011_v14  ;;  %v6613_v21 = vld [vmem:[%s9570_s1 + $0xb00] ss:$8 sps:$4 sm:$0xff]   ;;  %v2328_v58 = vpop.f32.mrf.mxu1  ;;  %v431_v56 = vunpack.c.l.bf16 %v8821_v24  ;;  %v9789_v11 = vld [vmem:[#allocation44_spill] sm:$0xff] }
 0x19b   : > { %v2231_v29 = vpop.f32.mrf.mxu0  ;;  %4353 = vmatprep.subr.bf16.mxu1 %v6585_v19  ;;  %4431 = vmatpush1.bf16.msra.mxu0 %v6604_v3  ;;  %v1924_v41 = vadd.f32 %v8593_v10, %v1383_v60  ;;  %v9784_v34 = vld [vmem:[#allocation51_spill] sm:$0xff]  ;;  %v9786_v33 = vld [vmem:[#allocation18_spill] sm:$0xff]  ;;  %v3654_v14 = vrot.slane %v8616_v63, 1 }
 0x19c   : > { %v8848_v20 = vadd.f32 %v2311_v4, %v8590_v38  ;;  %v2313_v48 = vadd.f32 %v8727_v43, %v2231_v29  ;;  %4432 = vmatprep.subr.bf16.mxu0 %v6615_v35  ;;  %4369 = vmatprep.mubr.f32.mxu1 %v9753_v32  ;;  %v1017_v19 = vadd.f32 %v9785_v8, %v9784_v34  ;;  %v9787_v43 = vld [vmem:[#allocation19_spill] sm:$0xff]  ;;  %v9788_v4 = vld [vmem:[#allocation52_spill] sm:$0xff] }
 0x19d   : > { %3962 = vmatmul.mubr.f32.gmra.mxu0 %v9786_v33  ;;  %v2235_v3 = vpop.f32.mrf.mxu0  ;;  %v1389_v55 = vadd.f32 %v8372_v17, %v1308_v45  ;;  %v6589_v32 = vld [vmem:[%s9570_s1 + $0xae0] ss:$8 sps:$4 sm:$0xff]   ;;  %v3655_v17 = vrot.slane %v432_v57, 1  ;;  %v9790_v45 = vld [vmem:[#allocation20_spill] sm:$0xff] }
 0x19e   : > { %v8857_v10 = vadd.f32 %v2313_v48, %v1924_v41  ;;  %4354 = vmatpush2.bf16.msra.mxu1 %v6583_v16  ;;  %v2317_v38 = vadd.f32 %v8740_v27, %v2235_v3  ;;  %3967 = vmatprep.mubr.f32.mxu0 %v9787_v43  ;;  %v1314_v27 = vadd.f32 %v8305_v13, %v1017_v19  ;;  %v3651_v41 = vrot.slane %v8627_v22, 1  ;;  %v6592_v48 = vld [vmem:[%s9570_s1 + $0xad0] ss:$8 sps:$4 sm:$0xff]   ;;  %v6600_v19 = vld [vmem:[%s9570_s1 + $0xac4] ss:$8 sps:$4 sm:$0xff]  }
 0x19f   : > { %v2237_v35 = vpop.f32.mrf.mxu0  ;;  %4355 = vmatprep.subr.bf16.mxu1 %v6591_v52  ;;  %4433 = vmatpush1.bf16.msra.mxu0 %v6613_v21  ;;  %v1926_v1 = vadd.f32 %v8609_v49, %v1389_v55  ;;  %v1023_v16 = vadd.f32 %v9789_v11, %v9788_v4  ;;  %v2330_v52 = vpop.f32.mrf.mxu1  ;;  %v3652_v21 = vrot.slane %v431_v56, 1  ;;  %v3656_v8 = vsel %vm522_vm0, %v3654_v14, %v3655_v17  ;;  %v9792_v55 = vld [vmem:[#allocation53_spill] sm:$0xff] }
 0x1a0   : > { %v8873_v30 = vadd.f32 %v2317_v38, %v8607_v44  ;;  %v2319_v60 = vadd.f32 %v8765_v50, %v2237_v35  ;;  %v1395_v13 = vadd.f32 %v8391_v12, %v1314_v27  ;;  %v9791_v50 = vld [vmem:[#allocation45_spill] sm:$0xff]  ;;  %v9793_v38 = vld [vmem:[#allocation48_spill] sm:$0xff] }
 0x1a1   : > { %3968 = vmatmul.mubr.f32.gmra.mxu0 %v9790_v45  ;;  %v2241_v29 = vpop.f32.mrf.mxu0  ;;  %v1320_v12 = vadd.f32 %v8333_v5, %v1023_v16  ;;  %v1029_v43 = vadd.f32 %v9793_v38, %v9792_v55  ;;  %v2334_v14 = vpop.f32.mrf.mxu1  ;;  %v6616_v55 = vld [vmem:[%s9570_s1 + $0xa80] ss:$8 sps:$4 sm:$0xff]  }
 0x1a2   : > { %v8883_v49 = vadd.f32 %v2319_v60, %v1926_v1  ;;  %4356 = vmatpush2.bf16.msra.mxu1 %v6589_v32  ;;  %v2323_v44 = vadd.f32 %v8795_v39, %v2241_v29  ;;  %3973 = vmatprep.mubr.f32.mxu0 %v9791_v50  ;;  %v1928_v33 = vadd.f32 %v8624_v59, %v1395_v13  ;;  %v9794_v32 = vld [vmem:[#allocation46_spill] sm:$0xff] }
 0x1a3   : > { %v2243_v34 = vpop.f32.mrf.mxu0  ;;  %4357 = vmatprep.subr.bf16.mxu1 %v6594_v61  ;;  %v3653_v61 = vsel %vm522_vm0, %v3651_v41, %v3652_v21  ;;  %v1401_v17 = vadd.f32 %v8409_v31, %v1320_v12  ;;  %v1326_v1 = vadd.f32 %v8495_v42, %v1029_v43  ;;  %v2336_v11 = vpop.f32.mrf.mxu1  ;;  %v6601_v41 = vld [vmem:[%s9570_s1 + $0xab0] ss:$8 sps:$4 sm:$0xff]   ;;  %v9795_v21 = vld [vmem:[#allocation22_spill] sm:$0xff]  ;;  %v9798_v43 = vld [vmem:[#allocation43_spill] sm:$0xff] }
 0x1a4   : > { %v8897_v39 = vadd.f32 %v2323_v44, %v8622_v2  ;;  %v2325_v3 = vadd.f32 %v2324_v23, %v2243_v34  ;;  %v6598_v2 = vld [vmem:[%s9570_s1 + $0xac0] ss:$8 sps:$4 sm:$0xff]   ;;  %v6603_v23 = vld [vmem:[%s9570_s1 + $0xab4] ss:$8 sps:$4 sm:$0xff]  }
 0x1a5   : > { %3974 = vmatmul.mubr.f32.gmra.mxu0 %v9794_v32  ;;  %v2247_v35 = vpop.f32.mrf.mxu0  ;;  %v1930_v60 = vadd.f32 %v8639_v28, %v1401_v17  ;;  %v1407_v16 = vadd.f32 %v8424_v15, %v1326_v1  ;;  %v6607_v50 = vld [vmem:[%s9570_s1 + $0xaa0] ss:$8 sps:$4 sm:$0xff]  }
 0x1a6   : > { %v8904_v27 = vadd.f32 %v2325_v3, %v1928_v33  ;;  %4358 = vmatpush2.bf16.msra.mxu1 %v6592_v48  ;;  %v2329_v5 = vadd.f32 %v2328_v58, %v2247_v35  ;;  %3979 = vmatprep.mubr.f32.mxu0 %v3656_v8  ;;  %v9796_v48 = vld [vmem:[#allocation23_spill] sm:$0xff]  ;;  %v6610_v8 = vld [vmem:[%s9570_s1 + $0xa90] ss:$8 sps:$4 sm:$0xff]   ;;  %v9801_v17 = vld [vmem:[#allocation50_spill] sm:$0xff] }
 0x1a7   : > { %v2249_v59 = vpop.f32.mrf.mxu0  ;;  %4359 = vmatprep.subr.bf16.mxu1 %v6600_v19  ;;  %v1932_v28 = vadd.f32 %v8658_v40, %v1407_v16  ;;  %v6618_v19 = vld [vmem:[%s9570_s1 + $0xa84] ss:$8 sps:$4 sm:$0xff]   ;;  %v9797_v33 = vld [vmem:[#allocation24_spill] sm:$0xff] }
 0x1a8   : > { %v8915_v31 = vadd.f32 %v2329_v5, %v8637_v54  ;;  %v2331_v4 = vadd.f32 %v2330_v52, %v2249_v59  ;;  %v6609_v54 = vld [vmem:[%s9570_s1 + $0xaa4] ss:$8 sps:$4 sm:$0xff]  }
 0x1a9   : > { %3980 = vmatmul.mubr.f32.gmra.mxu0 %v3653_v61  ;;  %v2253_v58 = vpop.f32.mrf.mxu0  ;;  %v9799_v32 = vld [vmem:[#allocation39_spill] sm:$0xff]  ;;  %v9800_v61 = vld [vmem:[#allocation25_spill] sm:$0xff] }
 0x1aa   : > { %v8918_v45 = vadd.f32 %v2331_v4, %v1930_v60  ;;  %4360 = vmatpush2.bf16.msra.mxu1 %v6598_v2  ;;  %v2335_v29 = vadd.f32 %v2334_v14, %v2253_v58  ;;  %4450 = vmatprep.mubr.f32.mxu0 %v9679_v25  ;;  %v987_v35 = vadd.f32 %v9799_v32, %v9798_v43  ;;  %v9803_v60 = vld [vmem:[#allocation27_spill] sm:$0xff]  ;;  %v9804_v58 = vld [vmem:[#allocation28_spill] sm:$0xff]  ;;  %v9811_v32 = vld [vmem:[#allocation34_spill] sm:$0xff] }
 0x1ab   : > { %v2255_v42 = vpop.f32.mrf.mxu0  ;;  %4361 = vmatprep.subr.bf16.mxu1 %v6603_v23  ;;  %v1873_v2 = vadd.f32 %v8446_v7, %v8515_v0  ;;  %v9802_v23 = vld [vmem:[#allocation26_spill] sm:$0xff] }
 0x1ac   : > { %v8929_v15 = vadd.f32 %v2335_v29, %v8656_v51  ;;  %v2337_v52 = vadd.f32 %v2336_v11, %v2255_v42  ;;  %v6612_v51 = vld [vmem:[%s9570_s1 + $0xa94] ss:$8 sps:$4 sm:$0xff]   ;;  %v1284_v5 = vadd.f32 %v9801_v17, %v987_v35  ;;  %v9812_v17 = vld [vmem:[#allocation35_spill] sm:$0xff] }
 0x1ad   : > { %5962 = vmatmul.mubr.msk.f32.vlgmr.msra.gmra.mxu0 %vm852_vm1, %v9795_v21  ;;  %v2729_v13 = vpop.f32.mrf.mxu0 }
 0x1ae   : > { %v8933_v44 = vadd.f32 %v2337_v52, %v1932_v28  ;;  %4362 = vmatpush2.bf16.msra.mxu1 %v6601_v41  ;;  %4456 = vmatprep.mubr.f32.mxu0 %v9679_v25  ;;  %v1365_v1 = vadd.f32 %v9802_v23, %v1284_v5  ;;  %v9805_v41 = vld [vmem:[#allocation29_spill] sm:$0xff]  ;;  %v9806_v28 = vld [vmem:[#allocation30_spill] sm:$0xff] }
 0x1af   : > { %4363 = vmatprep.subr.bf16.mxu1 %v6609_v54  ;;  %v2731_v40 = vpop.f32.mrf.mxu0 }
 0x1b0   : > { %v1918_v16 = vadd.f32 %v1873_v2, %v1365_v1 }
 0x1b1   : > { %5963 = vmatmul.mubr.msk.f32.gmra.mxu0 %vm852_vm1, %v9796_v48  ;;  %v2735_v34 = vpop.f32.mrf.mxu0 }
 0x1b2   : > { %4364 = vmatpush2.bf16.msra.mxu1 %v6607_v50  ;;  %4462 = vmatprep.mubr.f32.mxu0 %v9679_v25  ;;  %v2340_v7 = vadd.f32 %v8756_v26, %v1918_v16  ;;  %v4089_v26 = vrot.slane %v8556_v46, 2  ;;  %v9810_v46 = vld [vmem:[#allocation33_spill] sm:$0xff]  ;;  %v4087_v16 = vrot.slane %v432_v57, 2 }
 0x1b3   : > { %4365 = vmatprep.subr.bf16.mxu1 %v6612_v51  ;;  %v2737_v12 = vpop.f32.mrf.mxu0 }
 0x1b5   : > { %5964 = vmatmul.mubr.msk.f32.gmra.mxu0 %vm852_vm1, %v9797_v33  ;;  %v2741_v3 = vpop.f32.mrf.mxu0 }
 0x1b6   : > { %4366 = vmatpush2.bf16.msra.mxu1 %v6610_v8  ;;  %4468 = vmatprep.mubr.f32.mxu0 %v9679_v25 }
 0x1b7   : > { %4367 = vmatprep.subr.bf16.mxu1 %v6618_v19  ;;  %v2743_v38 = vpop.f32.mrf.mxu0  ;;  %v9808_v19 = vld [vmem:[#allocation32_spill] sm:$0xff] }
 0x1b9   : > { %5965 = vmatmul.mubr.msk.f32.gmra.mxu0 %vm852_vm1, %v9800_v61  ;;  %v2747_v14 = vpop.f32.mrf.mxu0 }
 0x1ba   : > { %4368 = vmatpush2.bf16.msra.mxu1 %v6616_v55  ;;  %4474 = vmatprep.mubr.f32.mxu0 %v9679_v25  ;;  %v9809_v55 = vld [vmem:[#allocation31_spill] sm:$0xff] }
 0x1bb   : > { %v2749_v59 = vpop.f32.mrf.mxu0 }
 0x1bd   : > { %4370 = vmatmul.mubr.f32.vlgmr.msra.gmra.mxu1 %v9803_v60  ;;  %v2648_v4 = vpop.f32.mrf.mxu1  ;;  %5966 = vmatmul.mubr.msk.f32.gmra.mxu0 %vm852_vm1, %v9804_v58  ;;  %v2753_v11 = vpop.f32.mrf.mxu0  ;;  %v9814_v58 = vld [vmem:[#allocation37_spill] sm:$0xff] }
 0x1be   : > { %v2730_v29 = vadd.f32 %v2729_v13, %v2648_v4  ;;  %4375 = vmatprep.mubr.f32.mxu1 %v9805_v41  ;;  %4480 = vmatprep.mubr.f32.mxu0 %v9679_v25 }
 0x1bf   : > { %v2650_v0 = vpop.f32.mrf.mxu1  ;;  %v2755_v21 = vpop.f32.mrf.mxu0 }
 0x1c0   : > { %v8973_v42 = vadd.f32 %v2730_v29, %v8754_v47  ;;  %v2732_v54 = vadd.f32 %v2731_v40, %v2650_v0  ;;  %v9807_v47 = vunpack.c.l.bf16 %v8721_v37  ;;  %v9815_v29 = vld [vmem:[#allocation38_spill] sm:$0xff] }
 0x1c1   : > { %4376 = vmatmul.mubr.f32.gmra.mxu1 %v9806_v28  ;;  %v2654_v52 = vpop.f32.mrf.mxu1  ;;  %5967 = vmatmul.mubr.msk.f32.gmra.mxu0 %vm852_vm1, %v7665_v62  ;;  %v2759_v33 = vpop.f32.mrf.mxu0 }
 0x1c2   : > { %v8978_v50 = vadd.f32 %v2732_v54, %v2340_v7  ;;  %v2736_v13 = vadd.f32 %v2735_v34, %v2654_v52  ;;  %4381 = vmatprep.mubr.f32.mxu1 %v9756_v6  ;;  %4486 = vmatprep.mubr.f32.mxu0 %v9679_v25  ;;  %v4090_v51 = vrot.slane %v9807_v47, 2  ;;  %v9816_v7 = vld [vmem:[#allocation54_spill] sm:$0xff]  ;;  %v4083_v54 = vrot.slane %v8627_v22, 2 }
 0x1c3   : > { %v2656_v40 = vpop.f32.mrf.mxu1  ;;  %v2761_v61 = vpop.f32.mrf.mxu0 }
 0x1c4   : > { %v8986_v48 = vadd.f32 %v2736_v13, %v8786_v9  ;;  %v2738_v8 = vadd.f32 %v2737_v12, %v2656_v40  ;;  %v4091_v37 = vsel %vm1409_vm2, %v4089_v26, %v4090_v51 }
 0x1c5   : > { %4382 = vmatmul.mubr.f32.gmra.mxu1 %v9808_v19  ;;  %v2660_v62 = vpop.f32.mrf.mxu1  ;;  %5968 = vmatmul.mubr.msk.f32.gmra.mxu0 %vm852_vm1, %v9809_v55  ;;  %v2765_v1 = vpop.f32.mrf.mxu0 }
 0x1c6   : > { %v8992_v6 = vadd.f32 %v2738_v8, %v8801_v36  ;;  %v2742_v34 = vadd.f32 %v2741_v3, %v2660_v62  ;;  %4387 = vmatprep.mubr.f32.mxu1 %v9810_v46  ;;  %4492 = vmatprep.mubr.f32.mxu0 %v9679_v25 }
 0x1c7   : > { %v2662_v9 = vpop.f32.mrf.mxu1  ;;  %v2767_v0 = vpop.f32.mrf.mxu0 }
 0x1c8   : > { %v8998_v12 = vadd.f32 %v2742_v34, %v8817_v18  ;;  %v2744_v43 = vadd.f32 %v2743_v38, %v2662_v9  ;;  %v9813_v18 = vld [vmem:[#allocation36_spill] sm:$0xff] }
 0x1c9   : > { %4388 = vmatmul.mubr.f32.gmra.mxu1 %v9811_v32  ;;  %v2666_v35 = vpop.f32.mrf.mxu1  ;;  %5969 = vmatmul.mubr.msk.f32.gmra.mxu0 %vm852_vm1, %v4091_v37 }
 0x1ca   : > { %v9003_v36 = vadd.f32 %v2744_v43, %v8831_v53  ;;  %v2748_v3 = vadd.f32 %v2747_v14, %v2666_v35  ;;  %4393 = vmatprep.mubr.f32.mxu1 %v9812_v17  ;;  %v4086_v14 = vrot.slane %v8616_v63, 2  ;;  %v4084_v63 = vrot.slane %v431_v56, 2 }
 0x1cb   : > { %v2668_v5 = vpop.f32.mrf.mxu1 }
 0x1cc   : > { %v9007_v2 = vadd.f32 %v2748_v3, %v8848_v20  ;;  %v2750_v23 = vadd.f32 %v2749_v59, %v2668_v5  ;;  %v4085_v22 = vsel %vm1409_vm2, %v4083_v54, %v4084_v63 }
 0x1cd   : > { %4394 = vmatmul.mubr.f32.gmra.mxu1 %v9813_v18  ;;  %v2672_v38 = vpop.f32.mrf.mxu1 }
 0x1ce   : > { %v9011_v60 = vadd.f32 %v2750_v23, %v8857_v10  ;;  %v2754_v4 = vadd.f32 %v2753_v11, %v2672_v38  ;;  %4399 = vmatprep.mubr.f32.mxu1 %v9814_v58 }
 0x1cf   : > { %v2674_v53 = vpop.f32.mrf.mxu1 }
 0x1d0   : > { %v9018_v20 = vadd.f32 %v2754_v4, %v8873_v30  ;;  %v2756_v59 = vadd.f32 %v2755_v21, %v2674_v53  ;;  %v4088_v30 = vsel %vm1409_vm2, %v4086_v14, %v4087_v16  ;;  %v9817_v21 = vld [vmem:[#allocation55_spill] sm:$0xff] }
 0x1d1   : > { %4400 = vmatmul.mubr.f32.gmra.mxu1 %v9815_v29  ;;  %v2678_v41 = vpop.f32.mrf.mxu1 }
 0x1d2   : > { %v9022_v10 = vadd.f32 %v2756_v59, %v8883_v49  ;;  %v2760_v11 = vadd.f32 %v2759_v33, %v2678_v41  ;;  %4405 = vmatprep.mubr.f32.mxu1 %v9816_v7  ;;  %v2771_v49 = vpop.f32.mrf.mxu0 }
 0x1d3   : > { %v2680_v57 = vpop.f32.mrf.mxu1 }
 0x1d4   : > { %v9030_v28 = vadd.f32 %v2760_v11, %v8897_v39  ;;  %v2762_v52 = vadd.f32 %v2761_v61, %v2680_v57  ;;  %v2773_v40 = vpop.f32.mrf.mxu0 }
 0x1d5   : > { %4406 = vmatmul.mubr.f32.gmra.mxu1 %v9817_v21  ;;  %v2684_v13 = vpop.f32.mrf.mxu1 }
 0x1d6   : > { %v9034_v26 = vadd.f32 %v2762_v52, %v8904_v27  ;;  %v2766_v47 = vadd.f32 %v2765_v1, %v2684_v13  ;;  %4411 = vmatprep.mubr.f32.mxu1 %v4088_v30 }
 0x1d7   : > { %v2686_v24 = vpop.f32.mrf.mxu1 }
 0x1d8   : > { %v9038_v56 = vadd.f32 %v2766_v47, %v8915_v31  ;;  %v2768_v51 = vadd.f32 %v2767_v0, %v2686_v24 }
 0x1d9   : > { %4412 = vmatmul.mubr.f32.gmra.mxu1 %v4085_v22  ;;  %v2690_v39 = vpop.f32.mrf.mxu1 }
 0x1da   : > { %v9041_v8 = vadd.f32 %v2768_v51, %v8918_v45  ;;  %v2772_v19 = vadd.f32 %v2771_v49, %v2690_v39  ;;  %4940 = vmatprep.mubr.f32.mxu1 %v9679_v25 }
 0x1db   : > { %v2692_v27 = vpop.f32.mrf.mxu1 }
 0x1dc   : > { %v9045_v62 = vadd.f32 %v2772_v19, %v8929_v15  ;;  %v2774_v33 = vadd.f32 %v2773_v40, %v2692_v27 }
 0x1dd   : > { %v3161_v55 = vpop.f32.mrf.mxu1 }
 0x1de   : > { %v9048_v34 = vadd.f32 %v2774_v33, %v8933_v44 }
 0x1df   : > { %v3163_v31 = vpop.f32.mrf.mxu1 }
 0x1e1   : > { %v3167_v46 = vpop.f32.mrf.mxu1 }
 0x1e3   : > { %v3169_v37 = vpop.f32.mrf.mxu1 }
 0x1e5   : > { %v3173_v9 = vpop.f32.mrf.mxu1 }
 0x1e7   : > { %v3175_v43 = vpop.f32.mrf.mxu1 }
 0x1e9   : > { %v3179_v32 = vpop.f32.mrf.mxu1 }
 0x1eb   : > { %v3181_v45 = vpop.f32.mrf.mxu1 }
 0x1ed   : > { %v3080_v35 = vpop.f32.mrf.mxu0  ;;  %v3185_v61 = vpop.f32.mrf.mxu1 }
 0x1ee   : > { %v3162_v3 = vadd.f32 %v3161_v55, %v3080_v35 }
 0x1ef   : > { %v3082_v17 = vpop.f32.mrf.mxu0  ;;  %v3187_v18 = vpop.f32.mrf.mxu1 }
 0x1f0   : > { %v9051_v5 = vadd.f32 %v3162_v3, %v8973_v42  ;;  %v3164_v15 = vadd.f32 %v3163_v31, %v3082_v17  ;;  %v4615_v3 = vld [vmem:[%s9572_s3 + $0x70] sm:$0xff]  ;;  %v4630_v17 = vld [vmem:[%s9572_s3 + $0xe8] sm:$0xff] }
 0x1f1   : > { %v3086_v23 = vpop.f32.mrf.mxu0  ;;  %v3191_v14 = vpop.f32.mrf.mxu1 }
 0x1f2   : > { %v9054_v44 = vadd.f32 %v3164_v15, %v8978_v50  ;;  %v3168_v38 = vadd.f32 %v3167_v46, %v3086_v23  ;;  %v4614_v15 = vld [vmem:[%s9572_s3 + $0x68] sm:$0xff] }
 0x1f3   : > { %v3088_v1 = vpop.f32.mrf.mxu0  ;;  %v3193_v50 = vpop.f32.mrf.mxu1 }
 0x1f4   : > { %v9057_v4 = vadd.f32 %v3168_v38, %v8986_v48  ;;  %v3170_v58 = vadd.f32 %v3169_v37, %v3088_v1  ;;  %v4613_v38 = vld [vmem:[%s9572_s3 + $0x60] sm:$0xff] }
 0x1f5   : > { %v3092_v53 = vpop.f32.mrf.mxu0 }
 0x1f6   : > { %v9060_v16 = vadd.f32 %v3170_v58, %v8992_v6  ;;  %v3174_v59 = vadd.f32 %v3173_v9, %v3092_v53  ;;  %v3197_v6 = vpop.f32.mrf.mxu1  ;;  %v4628_v58 = vld [vmem:[%s9572_s3 + $0xd8] sm:$0xff] }
 0x1f7   : > { %v3094_v42 = vpop.f32.mrf.mxu0 }
 0x1f8   : > { %v9063_v29 = vadd.f32 %v3174_v59, %v8998_v12  ;;  %v3176_v41 = vadd.f32 %v3175_v43, %v3094_v42 }
 0x1f9   : > { %v3098_v0 = vpop.f32.mrf.mxu0 }
 0x1fa   : > { %v9066_v11 = vadd.f32 %v3176_v41, %v9003_v36  ;;  %v3180_v7 = vadd.f32 %v3179_v32, %v3098_v0  ;;  %v3199_v36 = vpop.f32.mrf.mxu1  ;;  %v4627_v41 = vld [vmem:[%s9572_s3 + $0xd0] sm:$0xff] }
 0x1fb   : > { %v3100_v48 = vpop.f32.mrf.mxu0 }
 0x1fc   : > { %v9069_v54 = vadd.f32 %v3180_v7, %v9007_v2  ;;  %v3182_v63 = vadd.f32 %v3181_v45, %v3100_v48  ;;  %v4611_v7 = vld [vmem:[%s9572_s3 + $0x50] sm:$0xff] }
 0x1fd   : > { %v3104_v57 = vpop.f32.mrf.mxu0 }
 0x1fe   : > { %v9072_v30 = vadd.f32 %v3182_v63, %v9011_v60  ;;  %v3186_v52 = vadd.f32 %v3185_v61, %v3104_v57  ;;  %v3203_v60 = vpop.f32.mrf.mxu1  ;;  %v4632_v61 = vld [vmem:[%s9572_s3 + $0xf8] sm:$0xff]  ;;  %v4626_v63 = vld [vmem:[%s9572_s3 + $0xc8] sm:$0xff] }
 0x1ff   : > { %v3106_v12 = vpop.f32.mrf.mxu0  ;;  %6010 = vmatprep.subr.mxu0 %v4632_v61 }
 0x200   : > { %v9075_v21 = vadd.f32 %v3186_v52, %v9018_v20  ;;  %v3188_v13 = vadd.f32 %v3187_v18, %v3106_v12  ;;  %v4629_v18 = vld [vmem:[%s9572_s3 + $0xe0] sm:$0xff] }
 0x201   : > { %v3110_v49 = vpop.f32.mrf.mxu0 }
 0x202   : > { %v9078_v47 = vadd.f32 %v3188_v13, %v9022_v10  ;;  %v3192_v22 = vadd.f32 %v3191_v14, %v3110_v49  ;;  %v3205_v10 = vpop.f32.mrf.mxu1  ;;  %v4612_v14 = vld [vmem:[%s9572_s3 + $0x58] sm:$0xff]  ;;  %v4625_v13 = vld [vmem:[%s9572_s3 + $0xc0] sm:$0xff] }
 0x203   : > { %v3112_v2 = vpop.f32.mrf.mxu0 }
 0x204   : > { %v9081_v24 = vadd.f32 %v3192_v22, %v9030_v28  ;;  %v3194_v51 = vadd.f32 %v3193_v50, %v3112_v2  ;;  %v4624_v2 = vld [vmem:[%s9572_s3 + $0xb8] sm:$0xff] }
 0x205   : > { %v3116_v39 = vpop.f32.mrf.mxu0 }
 0x206   : > { %v9084_v40 = vadd.f32 %v3194_v51, %v9034_v26  ;;  %v3198_v19 = vadd.f32 %v3197_v6, %v3116_v39 }
 0x207   : > { %v3118_v20 = vpop.f32.mrf.mxu0 }
 0x208   : > { %v9087_v27 = vadd.f32 %v3198_v19, %v9038_v56  ;;  %v3200_v33 = vadd.f32 %v3199_v36, %v3118_v20  ;;  %v4623_v20 = vld [vmem:[%s9572_s3 + $0xb0] sm:$0xff] }
 0x209   : > { %v3122_v55 = vpop.f32.mrf.mxu0 }
 0x20a   : > { %v9090_v31 = vadd.f32 %v3200_v33, %v9041_v8  ;;  %v3204_v46 = vadd.f32 %v3203_v60, %v3122_v55  ;;  %v4616_v8 = vld [vmem:[%s9572_s3 + $0x78] sm:$0xff] }
 0x20b   : > { %v3124_v28 = vpop.f32.mrf.mxu0  ;;  %6011 = vmatpush3.msra.mxu0 %v4616_v8  ;;  %v4620_v8 = vld [vmem:[%s9572_s3 + $0x98] sm:$0xff] }
 0x20c   : > { %v9093_v37 = vadd.f32 %v3204_v46, %v9045_v62  ;;  %v3206_v9 = vadd.f32 %v3205_v10, %v3124_v28  ;;  %v4622_v46 = vld [vmem:[%s9572_s3 + $0xa8] sm:$0xff] }
 0x20d   : > { %v3583_v43 = vpop.f32.mrf.mxu0 }
 0x20e   : > { %v9096_v26 = vadd.f32 %v3206_v9, %v9048_v34  ;;  %v4631_v34 = vld [vmem:[%s9572_s3 + $0xf0] sm:$0xff] }
 0x20f   : > { %v3585_v32 = vpop.f32.mrf.mxu0  ;;  %6012 = vmatprep.subr.mxu0 %v4631_v34 }
 0x210   : > { %6013 = vmatpush3.msra.mxu0 %v4615_v3 }
 0x211   : > { %v3589_v45 = vpop.f32.mrf.mxu0  ;;  %6014 = vmatprep.subr.mxu0 %v4630_v17 }
 0x212   : > { %6015 = vmatpush3.msra.mxu0 %v4614_v15  ;;  %v4619_v15 = vld [vmem:[%s9572_s3 + $0x90] sm:$0xff] }
 0x213   : > { %v3591_v56 = vpop.f32.mrf.mxu0  ;;  %6016 = vmatprep.subr.mxu0 %v4629_v18 }
 0x214   : > { %6017 = vmatpush3.msra.mxu0 %v4613_v38  ;;  %v4618_v38 = vld [vmem:[%s9572_s3 + $0x88] sm:$0xff] }
 0x215   : > { %v3595_v35 = vpop.f32.mrf.mxu0  ;;  %6018 = vmatprep.subr.mxu0 %v4628_v58 }
 0x216   : > { %6019 = vmatpush3.msra.mxu0 %v4612_v14 }
 0x217   : > { %v3597_v62 = vpop.f32.mrf.mxu0  ;;  %6020 = vmatprep.subr.mxu0 %v4627_v41 }
 0x218   : > { %6021 = vmatpush3.msra.mxu0 %v4611_v7 }
 0x219   : > { %v3601_v23 = vpop.f32.mrf.mxu0  ;;  %6022 = vmatprep.subr.mxu0 %v4626_v63 }
 0x21b   : > { %v3603_v42 = vpop.f32.mrf.mxu0 }
 0x21d   : > { %v3502_v1 = vpop.f32.mrf.mxu1  ;;  %v3607_v12 = vpop.f32.mrf.mxu0 }
 0x21e   : > { %v3584_v53 = vadd.f32 %v3583_v43, %v3502_v1  ;;  %v4602_v1 = vld [vmem:[%s9572_s3 + $0x8] sm:$0xff] }
 0x21f   : > { %v3504_v59 = vpop.f32.mrf.mxu1  ;;  %v3609_v19 = vpop.f32.mrf.mxu0 }
 0x220   : > { %v9132_v0 = vadd.f32 %v3584_v53, %v9051_v5  ;;  %v3586_v50 = vadd.f32 %v3585_v32, %v3504_v59  ;;  %v4610_v5 = vld [vmem:[%s9572_s3 + $0x48] sm:$0xff]  ;;  %v4601_v59 = vld [vmem:[%s9572_s3] sm:$0xff] }
 0x221   : > { %v3508_v48 = vpop.f32.mrf.mxu1  ;;  %6023 = vmatpush3.msra.mxu0 %v4610_v5  ;;  %v3613_v32 = vpop.f32.mrf.mxu0 }
 0x222   : > { %v9141_v57 = vadd.f32 %v3586_v50, %v9054_v44  ;;  %v3590_v6 = vadd.f32 %v3589_v45, %v3508_v48  ;;  %6024 = vmatprep.subr.mxu0 %v4625_v13  ;;  %v4609_v44 = vld [vmem:[%s9572_s3 + $0x40] sm:$0xff] }
 0x223   : > { %v3510_v52 = vpop.f32.mrf.mxu1  ;;  %6025 = vmatpush3.msra.mxu0 %v4609_v44  ;;  %v4621_v45 = vld [vmem:[%s9572_s3 + $0xa0] sm:$0xff]  ;;  %v3615_v17 = vpop.f32.mrf.mxu0 }
 0x224   : > { %v9150_v49 = vadd.f32 %v3590_v6, %v9057_v4  ;;  %v3592_v36 = vadd.f32 %v3591_v56, %v3510_v52  ;;  %6026 = vmatprep.subr.mxu0 %v4624_v2  ;;  %v4608_v4 = vld [vmem:[%s9572_s3 + $0x38] sm:$0xff] }
 0x225   : > { %v3514_v22 = vpop.f32.mrf.mxu1  ;;  %6027 = vmatpush3.msra.mxu0 %v4608_v4  ;;  %v3619_v41 = vpop.f32.mrf.mxu0 }
 0x226   : > { %v9159_v51 = vadd.f32 %v3592_v36, %v9060_v16  ;;  %v3596_v39 = vadd.f32 %v3595_v35, %v3514_v22  ;;  %6028 = vmatprep.subr.mxu0 %v4623_v20  ;;  %v4607_v16 = vld [vmem:[%s9572_s3 + $0x30] sm:$0xff] }
 0x227   : > { %v3516_v60 = vpop.f32.mrf.mxu1  ;;  %6029 = vmatpush3.msra.mxu0 %v4607_v16  ;;  %v3621_v36 = vpop.f32.mrf.mxu0 }
 0x228   : > { %v9168_v33 = vadd.f32 %v3596_v39, %v9063_v29  ;;  %v3598_v55 = vadd.f32 %v3597_v62, %v3516_v60  ;;  %6030 = vmatprep.subr.mxu0 %v4622_v46  ;;  %v4606_v29 = vld [vmem:[%s9572_s3 + $0x28] sm:$0xff] }
 0x229   : > { %v3520_v10 = vpop.f32.mrf.mxu1  ;;  %6031 = vmatpush3.msra.mxu0 %v4606_v29  ;;  %v3625_v44 = vpop.f32.mrf.mxu0 }
 0x22a   : > { %v9177_v28 = vadd.f32 %v3598_v55, %v9066_v11  ;;  %v3602_v9 = vadd.f32 %v3601_v23, %v3520_v10  ;;  %6032 = vmatprep.subr.mxu0 %v4621_v45  ;;  %v4605_v11 = vld [vmem:[%s9572_s3 + $0x20] sm:$0xff] }
 0x22b   : > { %v3522_v43 = vpop.f32.mrf.mxu1  ;;  %6033 = vmatpush3.msra.mxu0 %v4605_v11  ;;  %v3627_v2 = vpop.f32.mrf.mxu0 }
 0x22c   : > { %v9186_v56 = vadd.f32 %v3602_v9, %v9069_v54  ;;  %v3604_v35 = vadd.f32 %v3603_v42, %v3522_v43  ;;  %6034 = vmatprep.subr.mxu0 %v4620_v8  ;;  %v4604_v54 = vld [vmem:[%s9572_s3 + $0x18] sm:$0xff] }
 0x22d   : > { %v3526_v61 = vpop.f32.mrf.mxu1  ;;  %6035 = vmatpush3.msra.mxu0 %v4604_v54 }
 0x22e   : > { %v9195_v62 = vadd.f32 %v3604_v35, %v9072_v30  ;;  %v3608_v34 = vadd.f32 %v3607_v12, %v3526_v61  ;;  %6036 = vmatprep.subr.mxu0 %v4619_v15  ;;  %v4603_v30 = vld [vmem:[%s9572_s3 + $0x10] sm:$0xff] }
 0x22f   : > { %v3528_v3 = vpop.f32.mrf.mxu1  ;;  %6037 = vmatpush3.msra.mxu0 %v4603_v30 }
 0x230   : > { %9818 = vst [vmem:[#allocation2_spill] sm:$0xff] %v9195_v62  ;;  %v9204_v23 = vadd.f32 %v3608_v34, %v9075_v21  ;;  %v3610_v18 = vadd.f32 %v3609_v19, %v3528_v3  ;;  %v4617_v21 = vld [vmem:[%s9572_s3 + $0x80] sm:$0xff]  ;;  %6038 = vmatprep.subr.mxu0 %v4618_v38 }
 0x231   : > { %v3532_v58 = vpop.f32.mrf.mxu1  ;;  %6039 = vmatpush3.msra.mxu0 %v4602_v1 }
 0x232   : > { %9819 = vst [vmem:[#allocation3_spill] sm:$0xff] %v9204_v23  ;;  %v9219_v53 = vadd.f32 %v3610_v18, %v9078_v47  ;;  %v3614_v14 = vadd.f32 %v3613_v32, %v3532_v58  ;;  %6040 = vmatprep.subr.mxu0 %v4617_v21 }
 0x233   : > { %v3534_v42 = vpop.f32.mrf.mxu1  ;;  %6041 = vmatpush3.msra.mxu0 %v4601_v59  ;;  %v4517_v59 = vlaneseq }
 0x234   : > { %9820 = vst [vmem:[#allocation4_spill] sm:$0xff] %v9219_v53  ;;  %v9225_v50 = vadd.f32 %v3614_v14, %v9081_v24  ;;  %v3616_v7 = vadd.f32 %v3615_v17, %v3534_v42  ;;  %6052 = vmatprep.subr.mxu0 %v9679_v25 }
 0x235   : > { %v3538_v48 = vpop.f32.mrf.mxu1 }
 0x236   : > { %9821 = vst [vmem:[#allocation5_spill] sm:$0xff] %v9225_v50  ;;  %v9228_v63 = vadd.f32 %v3616_v7, %v9084_v40  ;;  %v3620_v47 = vadd.f32 %v3619_v41, %v3538_v48  ;;  %v4518_v48 = vshrl.u32 %v4517_v59, 7 }
 0x237   : > { %v3540_v6 = vpop.f32.mrf.mxu1 }
 0x238   : > { %9822 = vst [vmem:[#allocation40_spill] sm:$0xff] %v9228_v63  ;;  %v9232_v5 = vadd.f32 %v3620_v47, %v9087_v27  ;;  %v4523_v63 = vsub.s32 1, %v4518_v48  ;;  %v3622_v50 = vadd.f32 %v3621_v36, %v3540_v6 }
 0x239   : > { %v3544_v52 = vpop.f32.mrf.mxu1 }
 0x23a   : > { %9823 = vst [vmem:[#allocation6_spill] sm:$0xff] %v9232_v5  ;;  %v3626_v23 = vadd.f32 %v3625_v44, %v3544_v52  ;;  %v9293_v6 = vadd.f32 %v3622_v50, %v9090_v31 }
 0x23b   : > { %v3546_v12 = vpop.f32.mrf.mxu1 }
 0x23d   : > { %v4020_v13 = vpop.f32.mrf.mxu1 }
 0x23f   : > { %v9234_v24 = vpop.f32.mrf.mxu1 }
 0x241   : > { %v4026_v22 = vpop.f32.mrf.mxu1 }
 0x243   : > { %v4028_v39 = vpop.f32.mrf.mxu1 }
 0x245   : > { %v4032_v60 = vpop.f32.mrf.mxu1 }
 0x247   : > { %v4034_v55 = vpop.f32.mrf.mxu1 }
 0x249   : > { %v4038_v27 = vpop.f32.mrf.mxu1 }
 0x24b   : > { %v9238_v29 = vpop.f32.mrf.mxu1 }
 0x24d   : > { %v3939_v4 = vpop.f32.mrf.mxu0  ;;  %v9242_v32 = vpop.f32.mrf.mxu1 }
 0x24f   : > { %v3941_v40 = vpop.f32.mrf.mxu0  ;;  %v9248_v11 = vpop.f32.mrf.mxu1 }
 0x250   : > { %v4023_v36 = vadd.f32 %v9234_v24, %v3941_v40 }
 0x251   : > { %v3945_v19 = vpop.f32.mrf.mxu0  ;;  %v9254_v34 = vpop.f32.mrf.mxu1 }
 0x252   : > { %9827 = vst [vmem:[#allocation12_spill] sm:$0xff] %v9254_v34  ;;  %v4027_v53 = vadd.f32 %v4026_v22, %v3945_v19 }
 0x253   : > { %v3947_v20 = vpop.f32.mrf.mxu0  ;;  %v9260_v17 = vpop.f32.mrf.mxu1 }
 0x254   : > { %9830 = vst [vmem:[#allocation49_spill] sm:$0xff] %v9260_v17 }
 0x255   : > { %v3951_v16 = vpop.f32.mrf.mxu0  ;;  %v9264_v30 = vpop.f32.mrf.mxu1 }
 0x256   : > { %9832 = vst [vmem:[#allocation14_spill] sm:$0xff] %v9264_v30  ;;  %v3628_v30 = vadd.f32 %v3627_v2, %v3546_v12  ;;  %v4033_v22 = vadd.f32 %v4032_v60, %v3951_v16  ;;  %v4068_v60 = vadd.f32 %v4023_v36, %v9141_v57 }
 0x257   : > { %v3953_v10 = vpop.f32.mrf.mxu0  ;;  %v9266_v58 = vpop.f32.mrf.mxu1 }
 0x258   : > { %9833 = vst [vmem:[#allocation10_spill] sm:$0xff] %v9266_v58  ;;  %v4035_v52 = vadd.f32 %v4034_v55, %v3953_v10 }
 0x259   : > { %v3957_v46 = vpop.f32.mrf.mxu0  ;;  %v9268_v42 = vpop.f32.mrf.mxu1 }
 0x25a   : > { %9834 = vst [vmem:[#allocation15_spill] sm:$0xff] %v9268_v42  ;;  %v5970_v42 = vld [vmem:[%s9571_s2 + $0x1] ss:$2 sm:$0x3]  ;;  %v4039_v44 = vadd.f32 %v4038_v27, %v3957_v46  ;;  %v9838_v46 = vld [vmem:[#allocation12_spill] sm:$0xff] }
 0x25b   : > { %v9236_v9 = vpop.f32.mrf.mxu0  ;;  %v9270_v47 = vpop.f32.mrf.mxu1 }
 0x25c   : > { %9835 = vst [vmem:[#allocation21_spill] sm:$0xff] %v9270_v47  ;;  %v4041_v40 = vadd.f32 %v9238_v29, %v9236_v9 }
 0x25d   : > { %v9240_v43 = vpop.f32.mrf.mxu0 }
 0x25e   : > { %v4045_v16 = vadd.f32 %v9242_v32, %v9240_v43  ;;  %v9841_v43 = vld [vmem:[#allocation49_spill] sm:$0xff] }
 0x25f   : > { %v9244_v45 = vpop.f32.mrf.mxu0 }
 0x260   : > { %v4047_v27 = vadd.f32 %v9248_v11, %v9244_v45 }
 0x261   : > { %v9246_v35 = vpop.f32.mrf.mxu0 }
 0x262   : > { %9824 = vst [vmem:[#allocation11_spill] sm:$0xff] %v9246_v35  ;;  %v9290_v35 = vrot.slane %v5970_v42, %v4523_v63 }
 0x263   : > { %v9250_v61 = vpop.f32.mrf.mxu0 }
 0x264   : > { %9825 = vst [vmem:[#allocation47_spill] sm:$0xff] %v9250_v61 }
 0x265   : > { %v9252_v8 = vpop.f32.mrf.mxu0 }
 0x266   : > { %9826 = vst [vmem:[#allocation41_spill] sm:$0xff] %v9252_v8  ;;  %v4021_v8 = vadd.f32 %v4020_v13, %v3939_v4  ;;  %v4069_v13 = vadd.f32 %v4027_v53, %v9150_v49 }
 0x267   : > { %v9256_v54 = vpop.f32.mrf.mxu0 }
 0x268   : > { %9828 = vst [vmem:[#allocation7_spill] sm:$0xff] %v9256_v54  ;;  %v4515_v54 = vld [vmem:[%s9571_s2] ss:$2 sm:$0x3]  ;;  %v4067_v19 = vadd.f32 %v4021_v8, %v9132_v0  ;;  %v4073_v0 = vadd.f32 %v4039_v44, %v9186_v56 }
 0x269   : > { %v9258_v3 = vpop.f32.mrf.mxu0  ;;  %v9288_v34 = vrot.slane %v4515_v54, %v4523_v63  ;;  %v9301_v63 = vadd.f32 %v3628_v30, %v9096_v26 }
 0x26a   : > { %9829 = vst [vmem:[#allocation13_spill] sm:$0xff] %v9258_v3 }
 0x26b   : > { %v9262_v15 = vpop.f32.mrf.mxu0 }
 0x26c   : > { %9831 = vst [vmem:[#allocation8_spill] sm:$0xff] %v9262_v15  ;;  %v9272_v15 = vsub.s32 0, %v4518_v48 }
 0x26d   : > { %v4452_v18 = vpop.f32.mrf.mxu0  ;;  %v9842_v30 = vld [vmem:[#allocation41_spill] sm:$0xff] }
 0x26e   : > { %v9283_v47 = vrot.slane %v4515_v54, %v9272_v15  ;;  %v9286_v17 = vrot.slane %v5970_v42, %v9272_v15 }
 0x26f   : > { %v4454_v38 = vpop.f32.mrf.mxu0 }
 0x271   : > { %v4458_v1 = vpop.f32.mrf.mxu0 }
 0x273   : > { %v4460_v21 = vpop.f32.mrf.mxu0 }
 0x275   : > { %v4464_v14 = vpop.f32.mrf.mxu0 }
 0x277   : > { %v4466_v41 = vpop.f32.mrf.mxu0 }
 0x279   : > { %v4470_v7 = vpop.f32.mrf.mxu0 }
 0x27b   : > { %v4472_v25 = vpop.f32.mrf.mxu0 }
 0x27d   : > { %v4371_v3 = vpop.f32.mrf.mxu1  ;;  %v9277_v58 = vpop.f32.mrf.mxu0 }
 0x27e   : > { %9836 = vst [vmem:[#allocation9_spill] sm:$0xff] %v9277_v58  ;;  %v4029_v58 = vadd.f32 %v4028_v39, %v3947_v20  ;;  %v4453_v2 = vadd.f32 %v4452_v18, %v4371_v3  ;;  %v9298_v39 = vadd.f32 %v3626_v23, %v9093_v37  ;;  %v4071_v37 = vadd.f32 %v4033_v22, %v9168_v33  ;;  %v9840_v18 = vld [vmem:[#allocation47_spill] sm:$0xff] }
 0x27f   : > { %v4373_v5 = vpop.f32.mrf.mxu1  ;;  %v4478_v62 = vpop.f32.mrf.mxu0  ;;  %v4072_v23 = vadd.f32 %v4035_v52, %v9177_v28  ;;  %v9839_v28 = vld [vmem:[#allocation2_spill] sm:$0xff]  ;;  %v4053_v32 = vadd.f32 %v9841_v43, %v9840_v18 }
 0x280   : > { %v4070_v24 = vadd.f32 %v4029_v58, %v9159_v51  ;;  %v4455_v49 = vadd.f32 %v4454_v38, %v4373_v5  ;;  %v4499_v10 = vadd.f32 %v4453_v2, %v4067_v19  ;;  %v9837_v5 = vld [vmem:[#allocation11_spill] sm:$0xff]  ;;  %v4074_v8 = vadd.f32 %v4041_v40, %v9839_v28  ;;  %v9843_v38 = vld [vmem:[#allocation14_spill] sm:$0xff] }
 0x281   : > { %v4377_v59 = vpop.f32.mrf.mxu1  ;;  %v4482_v20 = vpop.f32.mrf.mxu0  ;;  %v4051_v9 = vadd.f32 %v9838_v46, %v9837_v5  ;;  %v9849_v40 = vld [vmem:[#allocation6_spill] sm:$0xff] }
 0x282   : > { %v4459_v48 = vadd.f32 %v4458_v1, %v4377_v59  ;;  %v4500_v54 = vadd.f32 %v4455_v49, %v4068_v60  ;;  %v4057_v1 = vadd.f32 %v9843_v38, %v9842_v30  ;;  %v4527_v42 = vmul.f32 %v9283_v47, %v4499_v10  ;;  %v9851_v10 = vld [vmem:[#allocation10_spill] sm:$0xff]  ;;  %v9855_v30 = vld [vmem:[#allocation21_spill] sm:$0xff] }
 0x283   : > { %v4379_v61 = vpop.f32.mrf.mxu1 }
 0x284   : > { %v4461_v4 = vadd.f32 %v4460_v21, %v4379_v61  ;;  %v4501_v53 = vadd.f32 %v4459_v48, %v4069_v13  ;;  %v4484_v61 = vpop.f32.mrf.mxu0  ;;  %v9844_v21 = vld [vmem:[#allocation3_spill] sm:$0xff]  ;;  %v9846_v48 = vld [vmem:[#allocation4_spill] sm:$0xff]  ;;  %v4528_v2 = vmul.f32 %v9288_v34, %v4500_v54  ;;  %v4079_v49 = vadd.f32 %v4057_v1, %v9849_v40 }
 0x285   : > { %v4383_v12 = vpop.f32.mrf.mxu1  ;;  %v4076_v36 = vadd.f32 %v4047_v27, %v9846_v48 }
 0x286   : > { %v4465_v31 = vadd.f32 %v4464_v14, %v4383_v12  ;;  %v4502_v51 = vadd.f32 %v4461_v4, %v4070_v24  ;;  %v4529_v56 = vmul.f32 %v9283_v47, %v4501_v53  ;;  %v4075_v14 = vadd.f32 %v4045_v16, %v9844_v21  ;;  %v4488_v44 = vpop.f32.mrf.mxu0  ;;  %v9850_v16 = vld [vmem:[#allocation7_spill] sm:$0xff] }
 0x287   : > { %v4385_v50 = vpop.f32.mrf.mxu1  ;;  %v9354_v28 = vadd.f32 %v9290_v35, %v4528_v2 }
 0x288   : > { %v4467_v26 = vadd.f32 %v4466_v41, %v4385_v50  ;;  %v4503_v57 = vadd.f32 %v4465_v31, %v4071_v37  ;;  %v4530_v41 = vmul.f32 %v9288_v34, %v4502_v51  ;;  %v9332_v4 = vadd.f32 %v9286_v17, %v4529_v56  ;;  %v9848_v50 = vld [vmem:[#allocation40_spill] sm:$0xff] }
 0x289   : > { %v4389_v55 = vpop.f32.mrf.mxu1  ;;  %v4078_v24 = vadd.f32 %v4053_v32, %v9848_v50  ;;  %v9854_v32 = vld [vmem:[#allocation8_spill] sm:$0xff] }
 0x28a   : > { %v4471_v29 = vadd.f32 %v4470_v7, %v4389_v55  ;;  %v4504_v45 = vadd.f32 %v4467_v26, %v4072_v23  ;;  %v9845_v7 = vld [vmem:[#allocation9_spill] sm:$0xff]  ;;  %v4531_v52 = vmul.f32 %v9283_v47, %v4503_v57  ;;  %v9339_v23 = vadd.f32 %v9286_v17, %v4527_v42 }
 0x28b   : > { %v4391_v33 = vpop.f32.mrf.mxu1  ;;  %v9342_v26 = vadd.f32 %v9290_v35, %v4530_v41  ;;  %v9852_v57 = vld [vmem:[#allocation13_spill] sm:$0xff]  ;;  %v4065_v38 = vadd.f32 %v9855_v30, %v9854_v32 }
 0x28c   : > { %v4473_v3 = vadd.f32 %v4472_v25, %v4391_v33  ;;  %v4505_v11 = vadd.f32 %v4471_v29, %v4073_v0  ;;  %v9847_v25 = vld [vmem:[#allocation5_spill] sm:$0xff]  ;;  %v4532_v53 = vmul.f32 %v9288_v34, %v4504_v45  ;;  %v9347_v51 = vadd.f32 %v9286_v17, %v4531_v52  ;;  %v9853_v29 = vld [vmem:[#allocation15_spill] sm:$0xff] }
 0x28d   : > { %v4395_v58 = vpop.f32.mrf.mxu1  ;;  %v4077_v22 = vadd.f32 %v4051_v9, %v9847_v25  ;;  %v4490_v9 = vpop.f32.mrf.mxu0  ;;  %v4063_v33 = vadd.f32 %v9853_v29, %v9852_v57  ;;  %v4585_v1 = vadd.f32 %v9342_v26, %v9354_v28 }
 0x28e   : > { %v4477_v59 = vadd.f32 %v9845_v7, %v4395_v58  ;;  %v4506_v12 = vadd.f32 %v4473_v3, %v4074_v8  ;;  %v4533_v60 = vmul.f32 %v9283_v47, %v4505_v11  ;;  %v9359_v54 = vadd.f32 %v9290_v35, %v4532_v53 }
 0x28f   : > { %v4397_v13 = vpop.f32.mrf.mxu1  ;;  %v4494_v41 = vpop.f32.mrf.mxu0 }
 0x290   : > { %v4507_v19 = vadd.f32 %v4477_v59, %v4075_v14  ;;  %v4479_v31 = vadd.f32 %v4478_v62, %v4397_v13  ;;  %v4059_v62 = vadd.f32 %v9851_v10, %v9850_v16  ;;  %v4534_v27 = vmul.f32 %v9288_v34, %v4506_v12 }
 0x291   : > { %v4401_v37 = vpop.f32.mrf.mxu1  ;;  %v9362_v56 = vadd.f32 %v9286_v17, %v4533_v60  ;;  %v4081_v59 = vadd.f32 %v4063_v33, %v9298_v39  ;;  %v4586_v25 = vadd.f32 %v4585_v1, %v9359_v54  ;;  %v4082_v39 = vadd.f32 %v4065_v38, %v9301_v63  ;;  %v4496_v40 = vpop.f32.mrf.mxu0 }
 0x292   : > { %v4508_v55 = vadd.f32 %v4479_v31, %v4076_v36  ;;  %v4483_v0 = vadd.f32 %v4482_v20, %v4401_v37  ;;  %v4535_v5 = vmul.f32 %v9283_v47, %v4507_v19  ;;  %v4572_v20 = vadd.f32 %v9332_v4, %v9339_v23 }
 0x293   : > { %v4403_v46 = vpop.f32.mrf.mxu1  ;;  %v9372_v21 = vadd.f32 %v9290_v35, %v4534_v27  ;;  %v4080_v7 = vadd.f32 %v4059_v62, %v9293_v6 }
 0x294   : > { %v4509_v8 = vadd.f32 %v4483_v0, %v4077_v22  ;;  %v4536_v3 = vmul.f32 %v9288_v34, %v4508_v55  ;;  %v4485_v18 = vadd.f32 %v4484_v61, %v4403_v46  ;;  %v4573_v58 = vadd.f32 %v4572_v20, %v9347_v51 }
 0x295   : > { %v4407_v43 = vpop.f32.mrf.mxu1  ;;  %v9375_v14 = vadd.f32 %v9286_v17, %v4535_v5  ;;  %v4587_v31 = vadd.f32 %v4586_v25, %v9372_v21  ;;  %v4783_v25 = vld [vmem:[%s9575_s6] sm:$0xff] }
 0x296   : > { %v4537_v45 = vmul.f32 %v9283_v47, %v4509_v8  ;;  %v4489_v11 = vadd.f32 %v4488_v44, %v4407_v43  ;;  %v4510_v42 = vadd.f32 %v4485_v18, %v4078_v24  ;;  %v4574_v22 = vadd.f32 %v4573_v58, %v9362_v56 }
 0x297   : > { %v4409_v61 = vpop.f32.mrf.mxu1  ;;  %v9382_v52 = vadd.f32 %v9290_v35, %v4536_v3 }
 0x298   : > { %v4511_v48 = vadd.f32 %v4489_v11, %v4079_v49  ;;  %v4491_v36 = vadd.f32 %v4490_v9, %v4409_v61  ;;  %v4538_v12 = vmul.f32 %v9288_v34, %v4510_v42  ;;  %v9386_v44 = vadd.f32 %v9286_v17, %v4537_v45  ;;  %v4705_v61 = vld [vmem:[%s9573_s4 + $0x10] sm:$0xff] }
 0x299   : > { %v4413_v13 = vpop.f32.mrf.mxu1  ;;  %v4575_v50 = vadd.f32 %v4574_v22, %v9375_v14  ;;  %v4588_v0 = vadd.f32 %v4587_v31, %v9382_v52  ;;  %v9856_v42 = vmov 0.0   ;;  %v4707_v22 = vld [vmem:[%s9574_s5] sm:$0x1]  ;;  %v4870_v31 = vld [vmem:[%s9577_s8 + $0x28] sm:$0xff] }
 0x29a   : > { %v4539_v2 = vmul.f32 %v9283_v47, %v4511_v48  ;;  %v4512_v6 = vadd.f32 %v4491_v36, %v4080_v7  ;;  %v4495_v19 = vadd.f32 %v4494_v41, %v4413_v13  ;;  %v9393_v24 = vadd.f32 %v9290_v35, %v4538_v12  ;;  %v4704_v41 = vld [vmem:[%s9573_s4 + $0x8] sm:$0xff]  ;;  %v4703_v7 = vld [vmem:[%s9573_s4] sm:$0xff] }
 0x29b   : > { %v4415_v49 = vpop.f32.mrf.mxu1  ;;  %v4576_v63 = vadd.f32 %v4575_v50, %v9386_v44  ;;  %v4869_v50 = vld [vmem:[%s9577_s8 + $0x20] sm:$0xff] }
 0x29c   : > { %v9396_v53 = vadd.f32 %v9286_v17, %v4539_v2  ;;  %v4540_v60 = vmul.f32 %v9288_v34, %v4512_v6  ;;  %v4513_v37 = vadd.f32 %v4495_v19, %v4081_v59  ;;  %v4497_v55 = vadd.f32 %v4496_v40, %v4415_v49  ;;  %v4872_v19 = vld [vmem:[%s9577_s8 + $0x38] sm:$0xff]  ;;  %v4867_v49 = vld [vmem:[%s9577_s8 + $0x10] sm:$0xff] }
 0x29d   : > { %v4589_v27 = vadd.f32 %v4588_v0, %v9393_v24  ;;  %4900 = vmatprep.subr.mxu1 %v4872_v19  ;;  %v4868_v40 = vld [vmem:[%s9577_s8 + $0x18] sm:$0xff] }
 0x29e   : > { %v9402_v16 = vadd.f32 %v9290_v35, %v4540_v60  ;;  %v4541_v10 = vmul.f32 %v9283_v47, %v4513_v37  ;;  %v4514_v62 = vadd.f32 %v4497_v55, %v4082_v39  ;;  %v4577_v5 = vadd.f32 %v4576_v63, %v9396_v53  ;;  %v4871_v39 = vld [vmem:[%s9577_s8 + $0x30] sm:$0xff]  ;;  %v4866_v60 = vld [vmem:[%s9577_s8 + $0x8] sm:$0xff]  ;;  %v4865_v37 = vld [vmem:[%s9577_s8] sm:$0xff] }
 0x29f   : > { %4901 = vmatpush1.msra.mxu1 %v4871_v39  ;;  %v4784_v55 = vld [vmem:[%s9576_s7] sm:$0x1] }
 0x2a0   : > { %v9408_v46 = vadd.f32 %v9286_v17, %v4541_v10  ;;  %v4542_v9 = vmul.f32 %v9288_v34, %v4514_v62  ;;  %v4590_v57 = vadd.f32 %v4589_v27, %v9402_v16  ;;  %4902 = vmatprep.subr.mxu1 %v4870_v31 }
 0x2a1   : > { %4903 = vmatpush1.msra.mxu1 %v4869_v50 }
 0x2a2   : > { %v4578_v29 = vadd.f32 %v4577_v5, %v9408_v46  ;;  %v9414_v33 = vadd.f32 %v9290_v35, %v4542_v9  ;;  %v4706_v35 = vld [vmem:[%s9573_s4 + $0x18] sm:$0xff]  ;;  %4904 = vmatprep.subr.mxu1 %v4868_v40 }
 0x2a3   : > { %4905 = vmatpush1.msra.mxu1 %v4867_v49 }
 0x2a4   : > { %v4579_v20 = vrot.slane %v4578_v29, 4  ;;  %v4591_v47 = vadd.f32 %v4590_v57, %v9414_v33  ;;  %4906 = vmatprep.subr.mxu1 %v4866_v60 }
 0x2a5   : > { %4907 = vmatpush1.msra.mxu1 %v4865_v37 }
 0x2a6   : > { %v4580_v8 = vadd.f32 %v4579_v20, %v4578_v29  ;;  %v4592_v3 = vrot.slane %v4591_v47, 4 }
 0x2a8   : > { %v4581_v18 = vrot.slane %v4580_v8, 2  ;;  %v4593_v43 = vadd.f32 %v4592_v3, %v4591_v47 }
 0x2aa   : > { %v4582_v32 = vadd.f32 %v4581_v18, %v4580_v8  ;;  %v4594_v30 = vrot.slane %v4593_v43, 2 }
 0x2ac   : > { %v4583_v17 = vrot.slane %v4582_v32, 1  ;;  %v4595_v38 = vadd.f32 %v4594_v30, %v4593_v43 }
 0x2ae   : > { %v4596_v1 = vrot.slane %v4595_v38, 1  ;;  %v4584_v34 = vadd.f32 %v4583_v17, %v4582_v32 }
 0x2b0   : > { %v4597_v45 = vadd.f32 %v4596_v1, %v4595_v38  ;;  %v4599_v58 = vmul.f32 0.015625, %v4584_v34 }
 0x2b2   : > { %v4600_v11 = vmul.f32 0.015625, %v4597_v45 }
 0x2b4   : > { %4697 = vmatprep.mubr.f32.mxu0 %v4600_v11 }
 0x2b5   : > { %4698 = vmatmul.mubr.f32.vlgmr.msra.gmra.mxu0 %v4599_v58 }
 0x2b6   : > { %6053 = vmatpush3.msra.mxu0 %v4706_v35  ;;  %6060 = vmatprep.mubr.msk.f32.mxu0 %vm6696_vm3, %v9856_v42 }
 0x2b7   : > { %6054 = vmatprep.subr.mxu0 %v9856_v42 }
 0x2b8   : > { %6055 = vmatpush3.msra.mxu0 %v4705_v61 }
 0x2b9   : > { %6056 = vmatprep.subr.mxu0 %v9856_v42 }
 0x2ba   : > { %6057 = vmatpush3.msra.mxu0 %v4704_v41 }
 0x2bb   : > { %6058 = vmatprep.subr.mxu0 %v9856_v42 }
 0x2bc   : > { %6059 = vmatpush3.msra.mxu0 %v4703_v7 }
 0x2bd   : > { %6063 = vmatprep.subr.mxu0 %v9856_v42 }
 0x375   : > { %v6042_v59 = vpop.f32.mrf.mxu0 }
 0x377   : > { %v6043_v48 = vpop.f32.mrf.mxu0 }
 0x378   : > { %v6044_v36 = vadd.f32 %v6043_v48, %v6042_v59 }
 0x37a   : > { %6061 = vmatmul.mubr.msk.f32.vlgmr.msra.gmra.mxu0 %vm4708_vm4, %v6044_v36 }
 0x37b   : > { %6065 = vmatprep.mubr.msk.f32.mxu0 %vm6696_vm3, %v9856_v42  ;;  %6064 = vmatpush3.msra.mxu0 %v4783_v25 }
 0x43a   : > { %v4778_v12 = vpop.f32.mrf.mxu0 }
 0x43b   : > { %v4779_v13 = vadd.f32 %v4778_v12, %v4707_v22 }
 0x43c   : > { %v6062_v2 = vpop.f32.mrf.mxu0 }
 0x43d   : > { %v4782_v6 = vmax.f32 %v4779_v13, 0.0 }
 0x43f   : > { %6066 = vmatmul.mubr.msk.f32.vlgmr.msra.gmra.mxu0 %vm4785_vm5, %v4782_v6 }
 0x4ff   : > { %v4855_v0 = vpop.f32.mrf.mxu0 }
 0x500   : > { %v4856_v63 = vadd.f32 %v4855_v0, %v4784_v55 }
 0x501   : > { %v6067_v10 = vpop.f32.mrf.mxu0 }
 0x502   : > { %v5973_v62 = vmul.f32 -1.442695, %v4856_v63 }
 0x504   : > { %6619 = vpow2.f32 %v5973_v62 }
 0x511   : > { %v6620_v27 = vpop.eup %6619 }
 0x512   : > { %v4862_v5 = vadd.f32 1.0, %v6620_v27 }
 0x514   : > { %6621 = vrcp.f32 %v4862_v5 }
 0x521   : > { %v6622_v9 = vpop.eup %6621 }
 0x522   : > { %5974 = vmatmul.mubr.msk.f32.vlgmr.msra.gmra.mxu1 %vm4708_vm4, %v6622_v9 }
 0x5e2   : > { %v4942_v57 = vpop.f32.mrf.mxu1 }
 0x5e3   : > { %v4950_v29 = vrot.slane %v4942_v57, %v9272_v15 }
 0x5e4   : > { %v4944_v20 = vpop.f32.mrf.mxu1 }
 0x5e5   : > { %v9472_v47 = vmul.f32 %v4950_v29, %v9339_v23  ;;  %v9475_v8 = vmul.f32 %v4950_v29, %v9332_v4  ;;  %v9478_v3 = vmul.f32 %v4950_v29, %v9347_v51  ;;  %v9481_v18 = vmul.f32 %v4950_v29, %v9362_v56 }
 0x5e6   : > { %v9484_v43 = vmul.f32 %v4950_v29, %v9375_v14  ;;  %v9487_v32 = vmul.f32 %v4950_v29, %v9386_v44  ;;  %v9490_v30 = vmul.f32 %v4950_v29, %v9396_v53  ;;  %v4954_v51 = vrot.slane %v4944_v20, %v9272_v15 }
 0x5e7   : > { %v5975_v23 = vmul.f32 -1.442695, %v9472_v47  ;;  %v5977_v4 = vmul.f32 -1.442695, %v9475_v8  ;;  %v5979_v17 = vmul.f32 -1.442695, %v9478_v3  ;;  %v9497_v56 = vmul.f32 %v4950_v29, %v9408_v46 }
 0x5e8   : > { %v5981_v14 = vmul.f32 -1.442695, %v9481_v18  ;;  %v5983_v44 = vmul.f32 -1.442695, %v9484_v43  ;;  %v9502_v38 = vmul.f32 %v4954_v51, %v9354_v28  ;;  %v5985_v53 = vmul.f32 -1.442695, %v9487_v32 }
 0x5e9   : > { %6623 = vpow2.f32 %v5975_v23  ;;  %v9506_v1 = vmul.f32 %v4954_v51, %v9342_v26  ;;  %v5987_v15 = vmul.f32 -1.442695, %v9490_v30  ;;  %v9510_v46 = vmul.f32 %v4954_v51, %v9359_v54 }
 0x5ea   : > { %6625 = vpow2.f32 %v5977_v4  ;;  %v5989_v34 = vmul.f32 -1.442695, %v9497_v56  ;;  %v9514_v45 = vmul.f32 %v4954_v51, %v9372_v21  ;;  %v9517_v28 = vmul.f32 %v4954_v51, %v9382_v52 }
 0x5eb   : > { %6627 = vpow2.f32 %v5979_v17  ;;  %v5976_v11 = vmul.f32 -1.442695, %v9502_v38  ;;  %v9521_v26 = vmul.f32 %v4954_v51, %v9393_v24  ;;  %v5978_v58 = vmul.f32 -1.442695, %v9506_v1 }
 0x5ec   : > { %6629 = vpow2.f32 %v5981_v14  ;;  %v9525_v54 = vmul.f32 %v4954_v51, %v9402_v16  ;;  %v5980_v35 = vmul.f32 -1.442695, %v9510_v46  ;;  %v9529_v21 = vmul.f32 %v4954_v51, %v9414_v33 }
 0x5ed   : > { %6631 = vpow2.f32 %v5983_v44  ;;  %v5982_v52 = vmul.f32 -1.442695, %v9514_v45  ;;  %v5984_v42 = vmul.f32 -1.442695, %v9517_v28  ;;  %v5986_v24 = vmul.f32 -1.442695, %v9521_v26 }
 0x5ee   : > { %6633 = vpow2.f32 %v5985_v53  ;;  %v5988_v61 = vmul.f32 -1.442695, %v9525_v54  ;;  %v5990_v16 = vmul.f32 -1.442695, %v9529_v21 }
 0x5ef   : > { %6635 = vpow2.f32 %v5987_v15 }
 0x5f0   : > { %6637 = vpow2.f32 %v5989_v34 }
 0x5f1   : > { %6639 = vpow2.f32 %v5976_v11 }
 0x5f2   : > { %6641 = vpow2.f32 %v5978_v58 }
 0x5f3   : > { %6643 = vpow2.f32 %v5980_v35 }
 0x5f4   : > { %6645 = vpow2.f32 %v5982_v52 }
 0x5f5   : > { %6647 = vpow2.f32 %v5984_v42 }
 0x5f6   : > { %v6624_v41 = vpop.eup %6623  ;;  %6649 = vpow2.f32 %v5986_v24 }
 0x5f7   : > { %v6626_v7 = vpop.eup %6625  ;;  %v5019_v33 = vadd.f32 1.0, %v6624_v41  ;;  %6651 = vpow2.f32 %v5988_v61 }
 0x5f8   : > { %v6628_v59 = vpop.eup %6627  ;;  %v5021_v48 = vadd.f32 1.0, %v6626_v7  ;;  %6653 = vpow2.f32 %v5990_v16 }
 0x5f9   : > { %v6630_v36 = vpop.eup %6629  ;;  %v5023_v25 = vadd.f32 1.0, %v6628_v59  ;;  %6655 = vrcp.f32 %v5019_v33 }
 0x5fa   : > { %v6632_v22 = vpop.eup %6631  ;;  %v5025_v12 = vadd.f32 1.0, %v6630_v36  ;;  %6657 = vrcp.f32 %v5021_v48 }
 0x5fb   : > { %v6634_v13 = vpop.eup %6633  ;;  %v5027_v2 = vadd.f32 1.0, %v6632_v22  ;;  %6659 = vrcp.f32 %v5023_v25 }
 0x5fc   : > { %v6636_v6 = vpop.eup %6635  ;;  %v5029_v19 = vadd.f32 1.0, %v6634_v13  ;;  %6661 = vrcp.f32 %v5025_v12 }
 0x5fd   : > { %v6638_v39 = vpop.eup %6637  ;;  %v5031_v31 = vadd.f32 1.0, %v6636_v6  ;;  %6663 = vrcp.f32 %v5027_v2 }
 0x5fe   : > { %v6640_v50 = vpop.eup %6639  ;;  %v5033_v40 = vadd.f32 1.0, %v6638_v39  ;;  %6665 = vrcp.f32 %v5029_v19 }
 0x5ff   : > { %v6642_v49 = vpop.eup %6641  ;;  %6667 = vrcp.f32 %v5031_v31  ;;  %v5020_v60 = vadd.f32 1.0, %v6640_v50 }
 0x600   : > { %v6644_v37 = vpop.eup %6643  ;;  %6669 = vrcp.f32 %v5033_v40  ;;  %v5022_v55 = vadd.f32 1.0, %v6642_v49 }
 0x601   : > { %v6646_v0 = vpop.eup %6645  ;;  %v5024_v63 = vadd.f32 1.0, %v6644_v37  ;;  %6671 = vrcp.f32 %v5020_v60 }
 0x602   : > { %v6648_v10 = vpop.eup %6647  ;;  %v5026_v62 = vadd.f32 1.0, %v6646_v0  ;;  %6673 = vrcp.f32 %v5022_v55 }
 0x603   : > { %v6650_v27 = vpop.eup %6649  ;;  %v5028_v5 = vadd.f32 1.0, %v6648_v10  ;;  %6675 = vrcp.f32 %v5024_v63 }
 0x604   : > { %v6652_v9 = vpop.eup %6651  ;;  %v5030_v57 = vadd.f32 1.0, %v6650_v27  ;;  %6677 = vrcp.f32 %v5026_v62 }
 0x605   : > { %v6654_v29 = vpop.eup %6653  ;;  %v5032_v20 = vadd.f32 1.0, %v6652_v9  ;;  %6679 = vrcp.f32 %v5028_v5 }
 0x606   : > { %v6656_v23 = vpop.eup %6655  ;;  %v5034_v4 = vadd.f32 1.0, %v6654_v29  ;;  %6681 = vrcp.f32 %v5030_v57 }
 0x607   : > { %v6658_v17 = vpop.eup %6657  ;;  %6683 = vrcp.f32 %v5032_v20  ;;  %v5067_v35 = vmul.f32 %v6656_v23, %v9472_v47 }
 0x608   : > { %v6660_v51 = vpop.eup %6659  ;;  %6685 = vrcp.f32 %v5034_v4  ;;  %v5069_v24 = vmul.f32 %v6658_v17, %v9475_v8 }
 0x609   : > { %v6662_v14 = vpop.eup %6661  ;;  %v5071_v41 = vmul.f32 %v6660_v51, %v9478_v3 }
 0x60a   : > { %v6664_v44 = vpop.eup %6663 }
 0x60b   : > { %v6666_v53 = vpop.eup %6665  ;;  %v5075_v36 = vmul.f32 %v6664_v44, %v9484_v43 }
 0x60c   : > { %v6668_v15 = vpop.eup %6667 }
 0x60d   : > { %v6670_v34 = vpop.eup %6669  ;;  %v5079_v12 = vmul.f32 %v6668_v15, %v9490_v30 }
 0x60e   : > { %v6672_v11 = vpop.eup %6671  ;;  %v5081_v13 = vmul.f32 %v6670_v34, %v9497_v56 }
 0x60f   : > { %v6674_v58 = vpop.eup %6673  ;;  %v5068_v52 = vmul.f32 %v6672_v11, %v9502_v38  ;;  %v5073_v38 = vmul.f32 %v6662_v14, %v9481_v18 }
 0x610   : > { %v6676_v42 = vpop.eup %6675  ;;  %v5070_v61 = vmul.f32 %v6674_v58, %v9506_v1 }
 0x611   : > { %v6678_v16 = vpop.eup %6677  ;;  %v5072_v7 = vmul.f32 %v6676_v42, %v9510_v46  ;;  %v6002_v47 = vpack.c.bf16 %v5068_v52, %v5067_v35  ;;  %v5077_v46 = vmul.f32 %v6666_v53, %v9487_v32 }
 0x612   : > { %v6680_v33 = vpop.eup %6679  ;;  %v5074_v8 = vmul.f32 %v6678_v16, %v9514_v45  ;;  %v6003_v59 = vpack.c.bf16 %v5070_v61, %v5069_v24 }
 0x613   : > { %v6682_v48 = vpop.eup %6681  ;;  %v5076_v25 = vmul.f32 %v6680_v33, %v9517_v28  ;;  %v6004_v1 = vpack.c.bf16 %v5072_v7, %v5071_v41  ;;  %5147 = vst [vmem:[%s9543_s21] sm:$0xff] %v6002_v47 }
 0x614   : > { %v6684_v3 = vpop.eup %6683  ;;  %v5078_v22 = vmul.f32 %v6682_v48, %v9521_v26  ;;  %v6005_v18 = vpack.c.bf16 %v5074_v8, %v5073_v38  ;;  %5148 = vst [vmem:[%s9543_s21 + $0x8] sm:$0xff] %v6003_v59 }
 0x615   : > { %v6686_v45 = vpop.eup %6685  ;;  %v5080_v43 = vmul.f32 %v6684_v3, %v9525_v54  ;;  %v6006_v28 = vpack.c.bf16 %v5076_v25, %v5075_v36  ;;  %5149 = vst [vmem:[%s9543_s21 + $0x10] sm:$0xff] %v6004_v1 }
 0x616   : > { %v5082_v2 = vmul.f32 %v6686_v45, %v9529_v21  ;;  %v6007_v6 = vpack.c.bf16 %v5078_v22, %v5077_v46  ;;  %5150 = vst [vmem:[%s9543_s21 + $0x18] sm:$0xff] %v6005_v18 }
 0x617   : > { %v6008_v32 = vpack.c.bf16 %v5080_v43, %v5079_v12  ;;  %5151 = vst [vmem:[%s9543_s21 + $0x20] sm:$0xff] %v6006_v28 }
 0x618   : > { %v6009_v26 = vpack.c.bf16 %v5082_v2, %v5081_v13  ;;  %5152 = vst [vmem:[%s9543_s21 + $0x28] sm:$0xff] %v6007_v6 }
 0x619   : > { %5153 = vst [vmem:[%s9543_s21 + $0x30] sm:$0xff] %v6008_v32 }
 0x61a   : > { %5154 = vst [vmem:[%s9543_s21 + $0x38] sm:$0xff] %v6009_v26 }
 0x61b PF: > { %s19_s30 = sadd.s32 1, %s6693_s30  }
 0x61c   : > { %p16_p4 = scmp.ge.s32.totalorder %s19_s30, 4  }
 0x61e   :  { %18 = sbr.rel (!%p16_p4) target bundleno = 1 (0x1), region = 95 }

</bundles_post_ra>
